<compile_context>
chip_gen: v5e
topology: v5e:2x2
jax: 0.10.0
libtpu: 0.0.40
codegen_flags: <defaults>
</compile_context>

<pallas_src>
import functools

import jax
import jax.numpy as jnp
from jax import lax
from jax.experimental import pallas as pl
from jax.experimental.pallas import tpu as pltpu


# ----------------------------------------------------------------------------
# Pallas kernel 1: fused  W @ cols + shift (+ ReLU)    -- all convs / FC
#   W:(Cout, K)  cols:(K, Nblk)  shift:(Cout, 1)  out:(Cout, Nblk)
# ----------------------------------------------------------------------------
def _matmul_bias_act_kernel(w_ref, x_ref, s_ref, o_ref, *, relu):
    acc = jnp.dot(w_ref[...], x_ref[...], preferred_element_type=jnp.float32)
    y = acc + s_ref[...]
    if relu:
        y = jnp.maximum(y, 0.0)
    o_ref[...] = y.astype(o_ref.dtype)


def fused_matmul_bias_act(w, cols, shift, *, relu, out_dtype=jnp.bfloat16,
                          compute_dtype=jnp.bfloat16, block_n=128):
    """y = relu?( w @ cols + shift ).  Lane axis (columns of cols) is tiled by block_n."""
    cout, k = w.shape
    k2, nt = cols.shape
    assert k == k2, (k, k2)
    np_ = ((nt + block_n - 1) // block_n) * block_n
    if np_ != nt:
        cols = jnp.pad(cols, ((0, 0), (0, np_ - nt)))
    w = w.astype(compute_dtype)
    cols = cols.astype(compute_dtype)
    shift = shift.astype(jnp.float32)

    kernel = functools.partial(_matmul_bias_act_kernel, relu=relu)
    y = pl.pallas_call(
        kernel,
        out_shape=jax.ShapeDtypeStruct((cout, np_), out_dtype),
        grid=(np_ // block_n,),
        in_specs=[pl.BlockSpec((cout, k), lambda i: (0, 0)),        # weight resident
                  pl.BlockSpec((k, block_n), lambda i: (0, i)),     # lane-tiled cols
                  pl.BlockSpec((cout, 1), lambda i: (0, 0))],
        out_specs=pl.BlockSpec((cout, block_n), lambda i: (0, i)),  # lane-dense output
        compiler_params=pltpu.CompilerParams(dimension_semantics=("parallel",)),
    )(w, cols, shift)
    return y[:, :nt] if np_ != nt else y


# ----------------------------------------------------------------------------
# Pallas kernels 2/3: linear attention (LAM) in (C, N) layout, N on lanes
# ----------------------------------------------------------------------------
def _lam_attend(Q, K, V, denom, eps=1e-6):
    # Q, K: (d, n)  V: (c, n); attention over n, feature axis 0.
    Qn = Q * lax.rsqrt(jnp.sum(Q * Q, axis=0, keepdims=True) + 1e-12)
    Kn = K * lax.rsqrt(jnp.sum(K * K, axis=0, keepdims=True) + 1e-12)
    k_sum = jnp.sum(Kn, axis=1, keepdims=True)                               # (d, 1)
    tailor = pl.reciprocal(
        denom + jnp.sum(Qn * k_sum, axis=0, keepdims=True) + eps, approx=True)  # (1, n)
    value_sum = jnp.sum(V, axis=1, keepdims=True)                            # (c, 1)
    kv = lax.dot_general(Kn.astype(jnp.bfloat16), V.astype(jnp.bfloat16),
                         (((1,), (1,)), ((), ())),
                         preferred_element_type=jnp.float32)                 # (d, c)
    num = value_sum + lax.dot_general(kv.astype(jnp.bfloat16), Qn.astype(jnp.bfloat16),
                                      (((0,), (0,)), ((), ())),
                                      preferred_element_type=jnp.float32)    # (c, n)
    return num * tailor


def _pos_attn_kernel(x_ref, wqkv_ref, bqkv_ref, g_ref, o_ref, *, denom, dq):
    x = x_ref[0]                                                             # (C, N) bf16
    # fused Q/K/V projection: one matmul, then static row slices
    qkv = jnp.dot(wqkv_ref[...], x, preferred_element_type=jnp.float32) + bqkv_ref[...]
    Q = qkv[:dq]
    K = qkv[dq:2 * dq]
    V = qkv[2 * dq:]
    wv = _lam_attend(Q, K, V, denom)                                         # (C, N)
    o_ref[0] = (x.astype(jnp.float32) + g_ref[...] * wv).astype(o_ref.dtype)


def position_attention(x_bcn, wqkv, bqkv, gamma, *, dq):
    B, C, N = x_bcn.shape
    nrows = wqkv.shape[0]
    kernel = functools.partial(_pos_attn_kernel, denom=float(N), dq=dq)
    return pl.pallas_call(
        kernel,
        out_shape=jax.ShapeDtypeStruct((B, C, N), x_bcn.dtype),
        grid=(B,),
        in_specs=[pl.BlockSpec((1, C, N), lambda b: (b, 0, 0)),
                  pl.BlockSpec((nrows, C), lambda b: (0, 0)),
                  pl.BlockSpec((nrows, 1), lambda b: (0, 0)),
                  pl.BlockSpec((1, 1), lambda b: (0, 0))],
        out_specs=pl.BlockSpec((1, C, N), lambda b: (b, 0, 0)),
        compiler_params=pltpu.CompilerParams(dimension_semantics=("parallel",)),
    )(x_bcn, wqkv.astype(jnp.bfloat16), bqkv.astype(jnp.float32), gamma)


def _chan_attn_kernel(x_ref, g_ref, o_ref, *, denom, eps=1e-6):
    # Channel attention with swapped axes: data stays (C, N); attention axis = C (rows),
    # feature axis = N (lanes).  Q = K = V = x, so the L2-normalization is shared.
    x = x_ref[0].astype(jnp.float32)                                          # (C, N)
    xn = x * lax.rsqrt(jnp.sum(x * x, axis=1, keepdims=True) + 1e-12)
    k_sum = jnp.sum(xn, axis=0, keepdims=True)                                # (1, N)
    tailor = pl.reciprocal(
        denom + jnp.sum(xn * k_sum, axis=1, keepdims=True) + eps, approx=True)  # (C, 1)
    value_sum = jnp.sum(x, axis=0, keepdims=True)                             # (1, N)
    xnb = xn.astype(jnp.bfloat16)
    kv = lax.dot_general(xnb, x.astype(jnp.bfloat16), (((0,), (0,)), ((), ())),
                         preferred_element_type=jnp.float32)                  # (N, N)
    num = value_sum + jnp.dot(xnb, kv.astype(jnp.bfloat16),
                              preferred_element_type=jnp.float32)             # (C, N)
    wv = num * tailor
    o_ref[0] = (x + g_ref[...] * wv).astype(o_ref.dtype)


def channel_attention(x_bcn, gamma):
    B, C, N = x_bcn.shape
    kernel = functools.partial(_chan_attn_kernel, denom=float(C))
    return pl.pallas_call(
        kernel,
        out_shape=jax.ShapeDtypeStruct((B, C, N), x_bcn.dtype),
        grid=(B,),
        in_specs=[pl.BlockSpec((1, C, N), lambda b: (b, 0, 0)),
                  pl.BlockSpec((1, 1), lambda b: (0, 0))],
        out_specs=pl.BlockSpec((1, C, N), lambda b: (b, 0, 0)),
        compiler_params=pltpu.CompilerParams(dimension_semantics=("parallel",)),
    )(x_bcn, gamma)


# ----------------------------------------------------------------------------
# JAX glue: BN folding, block-diagonal grouped weights, im2col, conv wrappers
# ----------------------------------------------------------------------------
def _fold_bn(bn, conv_bias, eps=1e-5):
    gamma, beta, mean, var = bn
    scale = gamma / jnp.sqrt(var + eps)
    shift = beta + (conv_bias - mean) * scale
    return scale, shift


def _fold_weight_blockdiag(w, scale, groups):
    """(Cout, cig, kd, kh, kw) -> (Cout, Cin*K3) block-diagonal, BN scale folded in."""
    cout = w.shape[0]
    cig = w.shape[1]
    k3 = w.shape[2] * w.shape[3] * w.shape[4]
    cog = cout // groups
    wf = w.reshape(cout, cig * k3) * scale[:, None]
    if groups == 1:
        return wf
    zero = jnp.zeros((cog, cig * k3), wf.dtype)
    rows = []
    for g in range(groups):
        row = [wf[g * cog:(g + 1) * cog] if gg == g else zero for gg in range(groups)]
        rows.append(jnp.concatenate(row, axis=1))
    return jnp.concatenate(rows, axis=0)


def conv3d_bn_relu(x, w, b, bn, *, groups, ksize, pad, relu=True):
    """x: (Cin, B, D, H, W) channel-major.  Returns (Cout, B, Do, Ho, Wo) bf16."""
    cin, B, D, H, W = x.shape
    kd, kh, kw = ksize
    pd, ph, pw = pad
    cout = w.shape[0]
    scale, shift = _fold_bn(bn, b)
    wbd = _fold_weight_blockdiag(w, scale, groups)                   # (Cout, Cin*K3)

    if (kd, kh, kw) == (1, 1, 1):
        do, ho, wo = D, H, W
        cols = x.reshape(cin, B * D * H * W)
    else:
        xp = jnp.pad(x, ((0, 0), (0, 0), (pd, pd), (ph, ph), (pw, pw)))
        do = D + 2 * pd - kd + 1
        ho = H + 2 * ph - kh + 1
        wo = W + 2 * pw - kw + 1
        taps = [xp[:, :, a:a + do, hh:hh + ho, ww:ww + wo]
                for a in range(kd) for hh in range(kh) for ww in range(kw)]
        cols = jnp.stack(taps, axis=1).reshape(cin * kd * kh * kw, B * do * ho * wo)

    y = fused_matmul_bias_act(wbd, cols, shift[:, None], relu=relu)
    return y.reshape(cout, B, do, ho, wo)


def conv1_bn_relu(X, w, b, bn):
    """Conv3d(1, 24, kernel=(1,1,7), stride=(1,1,2)) + BN + ReLU -> (24, B, D, H, Wb)."""
    B, _, D, H, band = X.shape
    Wb = (band - 7) // 2 + 1
    taps = [X[:, 0, :, :, k:k + 2 * (Wb - 1) + 1:2] for k in range(7)]   # each (B,D,H,Wb)
    cols = jnp.stack(taps, axis=0).reshape(7, B * D * H * Wb)
    scale, shift = _fold_bn(bn, b)
    wm = w.reshape(24, 7) * scale[:, None]
    y = fused_matmul_bias_act(wm, cols, shift[:, None], relu=True)
    return y.reshape(24, B, D, H, Wb)


# ----------------------------------------------------------------------------
# Parameters + full forward
# ----------------------------------------------------------------------------
def init_params(key, band, classes):
    keys = iter(jax.random.split(key, 64))

    def w_(shape, s=0.1):
        return s * jax.random.normal(next(keys), shape, jnp.float32)

    def bn_(c):
        return (1.0 + 0.1 * jax.random.normal(next(keys), (c,), jnp.float32),
                0.1 * jax.random.normal(next(keys), (c,), jnp.float32),
                0.05 * jax.random.normal(next(keys), (c,), jnp.float32),
                1.0 + 0.1 * jnp.abs(jax.random.normal(next(keys), (c,), jnp.float32)))

    kernel_3d = -(-(band - 6) // 2)    # math.ceil((band - 6) / 2)
    return dict(
        conv1_w=w_((24, 1, 1, 1, 7)), conv1_b=w_((24,)), bn1=bn_(24),
        pa_wq=w_((3, 24)), pa_bq=w_((3, 1)),
        pa_wk=w_((3, 24)), pa_bk=w_((3, 1)),
        pa_wv=w_((24, 24)), pa_bv=w_((24, 1)),
        pa_gamma=jnp.full((1, 1), 0.1, jnp.float32),
        ca_gamma=jnp.full((1, 1), 0.1, jnp.float32),
        c2a_w=w_((48, 16, 1, 1, 1)), c2a_b=w_((48,)), bn2a=bn_(48),
        c2b_w=w_((12, 16, 3, 3, 3)), c2b_b=w_((12,)), bn2b=bn_(12),
        c2c_w=w_((48, 16, 1, 1, 1)), c2c_b=w_((48,)), bn2c=bn_(48),
        c2d_w=w_((12, 16, 3, 3, 3)), c2d_b=w_((12,)), bn2d=bn_(12),
        c2e_w=w_((12, 4, 3, 3, 3)), c2e_b=w_((12,)), bn2e=bn_(12),
        c3_w=w_((60, 24, 1, 1, kernel_3d)), c3_b=w_((60,)), bn3=bn_(60),
        fc_w=w_((classes, 60)), fc_b=w_((classes,)),
    )


def ddcd_lam_forward(X, p):
    B, _, D, H, band = X.shape

    # conv1 + BN + ReLU  -> channel-major (24, B, D, H, Wb), bf16
    x2 = conv1_bn_relu(X, p["conv1_w"], p["conv1_b"], p["bn1"])
    C = x2.shape[0]
    Wb = x2.shape[-1]
    Npb = D * H * Wb

    # dual linear-attention branches, (B, C, N) tiles with N on lanes
    x2_bcn = x2.reshape(C, B, Npb).transpose(1, 0, 2)               # tiny transpose
    wqkv = jnp.concatenate([p["pa_wq"], p["pa_wk"], p["pa_wv"]], axis=0)   # (30, 24)
    bqkv = jnp.concatenate([p["pa_bq"], p["pa_bk"], p["pa_bv"]], axis=0)   # (30, 1)
    x2p = position_attention(x2_bcn, wqkv, bqkv, p["pa_gamma"], dq=p["pa_wq"].shape[0])
    x2c = channel_attention(x2_bcn, p["ca_gamma"])
    x2a = jnp.concatenate([x2p, x2c], axis=1)                       # (B, 48, Npb)
    x2a = x2a.transpose(1, 0, 2).reshape(2 * C, B, D, H, Wb)        # back to channel-major

    # left branch
    x2l = conv3d_bn_relu(x2a, p["c2a_w"], p["c2a_b"], p["bn2a"],
                         groups=3, ksize=(1, 1, 1), pad=(0, 0, 0))
    x2l = conv3d_bn_relu(x2l, p["c2b_w"], p["c2b_b"], p["bn2b"],
                         groups=3, ksize=(3, 3, 3), pad=(1, 1, 1))
    # right branch
    x2r = conv3d_bn_relu(x2a, p["c2c_w"], p["c2c_b"], p["bn2c"],
                         groups=3, ksize=(1, 1, 1), pad=(0, 0, 0))
    x2r = conv3d_bn_relu(x2r, p["c2d_w"], p["c2d_b"], p["bn2d"],
                         groups=3, ksize=(3, 3, 3), pad=(1, 1, 1))
    x2r = conv3d_bn_relu(x2r, p["c2e_w"], p["c2e_b"], p["bn2e"],
                         groups=3, ksize=(3, 3, 3), pad=(1, 1, 1))

    x10 = jnp.concatenate([x2a, x2l, x2r], axis=0)                  # (72, B, D, H, Wb)
    k3 = p["c3_w"].shape[-1]
    x10 = conv3d_bn_relu(x10, p["c3_w"], p["c3_b"], p["bn3"],
                         groups=3, ksize=(1, 1, k3), pad=(0, 0, 0)) # (60, B, D, H, 1)
    x10 = x10[..., 0]                                               # squeeze(-1)

    pooled = jnp.mean(x10.astype(jnp.float32), axis=(2, 3))         # (60, B)
    logits = fused_matmul_bias_act(p["fc_w"], pooled, p["fc_b"][:, None],
                                   relu=False, out_dtype=jnp.float32,
                                   compute_dtype=jnp.float32)       # (classes, B)
    return logits.T                                                 # (B, classes)


if __name__ == "__main__":
    B, D, H, band, classes = 2, 8, 8, 16, 9
    key = jax.random.PRNGKey(0)
    kx, kp = jax.random.split(key)
    X = jax.random.normal(kx, (B, 1, D, H, band), jnp.float32)
    params = init_params(kp, band, classes)

    out = jax.jit(ddcd_lam_forward)(X, params)
    out = jax.block_until_ready(out)

    assert out.shape == (B, classes), out.shape
    assert bool(jnp.all(jnp.isfinite(out)))
    print("KERNEL_OK")
</pallas_src>

<mosaic_0001>
module attributes {stable_mosaic.version = 11 : i64} {
  func.func @_matmul_bias_act_kernel(%arg0: i32, %arg1: memref<24x7xbf16, #tpu.memory_space<vmem>>, %arg2: memref<7x128xbf16, #tpu.memory_space<vmem>>, %arg3: memref<24x1xf32, #tpu.memory_space<vmem>>, %arg4: memref<24x128xbf16, #tpu.memory_space<vmem>>) attributes {dimension_semantics = [#tpu.dimension_semantics<parallel>], iteration_bounds = array<i64: 5>, scalar_prefetch = 0 : i64, scratch_operands = 0 : i64, tpu.core_type = #tpu.core_type<tc>, window_params = [{pipeline_mode = #tpu.pipeline_mode<synchronous>, transform_indices = @transform_0, window_bounds = array<i64: 24, 7>}, {transform_indices = @transform_1, window_bounds = array<i64: 7, 128>}, {pipeline_mode = #tpu.pipeline_mode<synchronous>, transform_indices = @transform_2, window_bounds = array<i64: 24, 1>}, {transform_indices = @transform_3, window_bounds = array<i64: 24, 128>}]} {
    %c0 = arith.constant 0 : index
    %c0_0 = arith.constant 0 : index
    %0 = vector.load %arg1[%c0, %c0_0] : memref<24x7xbf16, #tpu.memory_space<vmem>>, vector<24x7xbf16>
    %c0_1 = arith.constant 0 : index
    %c0_2 = arith.constant 0 : index
    %1 = vector.load %arg2[%c0_1, %c0_2] : memref<7x128xbf16, #tpu.memory_space<vmem>>, vector<7x128xbf16>
    %cst = arith.constant dense<0.000000e+00> : vector<24x128xf32>
    %2 = tpu.matmul %0, %1, %cst {dimension_numbers = #tpu.dot_dimension_numbers<[1], [0], [0], [1], [0, 0, 1, 1], [], []>} : vector<24x7xbf16>, vector<7x128xbf16>, vector<24x128xf32> -> vector<24x128xf32>
    %c0_3 = arith.constant 0 : index
    %c0_4 = arith.constant 0 : index
    %3 = vector.load %arg3[%c0_3, %c0_4] : memref<24x1xf32, #tpu.memory_space<vmem>>, vector<24x1xf32>
    %4 = vector.broadcast %3 : vector<24x1xf32> to vector<24x128xf32>
    %5 = arith.addf %2, %4 : vector<24x128xf32>
    %cst_5 = arith.constant 0.000000e+00 : f32
    %6 = vector.broadcast %cst_5 : f32 to vector<24x128xf32>
    %7 = arith.maximumf %5, %6 : vector<24x128xf32>
    %8 = arith.truncf %7 : vector<24x128xf32> to vector<24x128xbf16>
    %c0_6 = arith.constant 0 : index
    %c0_7 = arith.constant 0 : index
    %9 = vector.load %arg4[%c0_6, %c0_7] : memref<24x128xbf16, #tpu.memory_space<vmem>>, vector<24x128xbf16>
    tpu.vector_store %arg4[%c0_6, %c0_7], %8 {strides = array<i32>} : memref<24x128xbf16, #tpu.memory_space<vmem>>, vector<24x128xbf16>,
    return
  }
  func.func @transform_0(%arg0: i32) -> (i32, i32) {
    %c0_i32 = arith.constant 0 : i32
    %c0_i32_0 = arith.constant 0 : i32
    %c0_i32_1 = arith.constant 0 : i32
    return %c0_i32, %c0_i32_0 : i32, i32
  }
  func.func @transform_1(%arg0: i32) -> (i32, i32) {
    %c0_i32 = arith.constant 0 : i32
    %c0_i32_0 = arith.constant 0 : i32
    return %c0_i32, %arg0 : i32, i32
  }
  func.func @transform_2(%arg0: i32) -> (i32, i32) {
    %c0_i32 = arith.constant 0 : i32
    %c0_i32_0 = arith.constant 0 : i32
    %c0_i32_1 = arith.constant 0 : i32
    return %c0_i32, %c0_i32_0 : i32, i32
  }
  func.func @transform_3(%arg0: i32) -> (i32, i32) {
    %c0_i32 = arith.constant 0 : i32
    %c0_i32_0 = arith.constant 0 : i32
    return %c0_i32, %arg0 : i32, i32
  }
}

module attributes {stable_mosaic.version = 11 : i64} {
  func.func @_pos_attn_kernel(%arg0: i32, %arg1: memref<1x24x320xbf16, #tpu.memory_space<vmem>>, %arg2: memref<30x24xbf16, #tpu.memory_space<vmem>>, %arg3: memref<30x1xf32, #tpu.memory_space<vmem>>, %arg4: memref<1x1xf32, #tpu.memory_space<vmem>>, %arg5: memref<1x24x320xbf16, #tpu.memory_space<vmem>>) attributes {dimension_semantics = [#tpu.dimension_semantics<parallel>], iteration_bounds = array<i64: 2>, scalar_prefetch = 0 : i64, scratch_operands = 0 : i64, tpu.core_type = #tpu.core_type<tc>, window_params = [{transform_indices = @transform_0, window_bounds = array<i64: 1, 24, 320>}, {pipeline_mode = #tpu.pipeline_mode<synchronous>, transform_indices = @transform_1, window_bounds = array<i64: 30, 24>}, {pipeline_mode = #tpu.pipeline_mode<synchronous>, transform_indices = @transform_2, window_bounds = array<i64: 30, 1>}, {pipeline_mode = #tpu.pipeline_mode<synchronous>, transform_indices = @transform_3, window_bounds = array<i64: 1, 1>}, {transform_indices = @transform_4, window_bounds = array<i64: 1, 24, 320>}]} {
    %c0 = arith.constant 0 : index
    %c0_0 = arith.constant 0 : index
    %c0_1 = arith.constant 0 : index
    %0 = vector.load %arg1[%c0, %c0_0, %c0_1] : memref<1x24x320xbf16, #tpu.memory_space<vmem>>, vector<1x24x320xbf16>
    %1 = vector.shape_cast %0 : vector<1x24x320xbf16> to vector<24x320xbf16>
    %c0_2 = arith.constant 0 : index
    %c0_3 = arith.constant 0 : index
    %2 = vector.load %arg2[%c0_2, %c0_3] : memref<30x24xbf16, #tpu.memory_space<vmem>>, vector<30x24xbf16>
    %cst = arith.constant dense<0.000000e+00> : vector<30x320xf32>
    %3 = tpu.matmul %2, %1, %cst {dimension_numbers = #tpu.dot_dimension_numbers<[1], [0], [0], [1], [0, 0, 1, 1], [], []>} : vector<30x24xbf16>, vector<24x320xbf16>, vector<30x320xf32> -> vector<30x320xf32>
    %c0_4 = arith.constant 0 : index
    %c0_5 = arith.constant 0 : index
    %4 = vector.load %arg3[%c0_4, %c0_5] : memref<30x1xf32, #tpu.memory_space<vmem>>, vector<30x1xf32>
    %5 = vector.broadcast %4 : vector<30x1xf32> to vector<30x320xf32>
    %6 = arith.addf %3, %5 : vector<30x320xf32>
    %7 = vector.extract_strided_slice %6 {offsets = [0, 0], sizes = [3, 320], strides = [1, 1]} : vector<30x320xf32> to vector<3x320xf32>
    %8 = vector.extract_strided_slice %6 {offsets = [3, 0], sizes = [3, 320], strides = [1, 1]} : vector<30x320xf32> to vector<3x320xf32>
    %9 = vector.extract_strided_slice %6 {offsets = [6, 0], sizes = [24, 320], strides = [1, 1]} : vector<30x320xf32> to vector<24x320xf32>
    %10 = arith.mulf %7, %7 : vector<3x320xf32>
    %cst_6 = arith.constant dense<0.000000e+00> : vector<320xf32>
    %11 = vector.multi_reduction <add>, %10, %cst_6 [0] : vector<3x320xf32> to vector<320xf32>
    %12 = vector.shape_cast %11 : vector<320xf32> to vector<1x320xf32>
    %cst_7 = arith.constant 9.99999996E-13 : f32
    %13 = vector.broadcast %cst_7 : f32 to vector<1x320xf32>
    %14 = arith.addf %12, %13 : vector<1x320xf32>
    %15 = math.rsqrt %14 : vector<1x320xf32>
    %16 = vector.broadcast %15 : vector<1x320xf32> to vector<3x320xf32>
    %17 = arith.mulf %7, %16 : vector<3x320xf32>
    %18 = arith.mulf %8, %8 : vector<3x320xf32>
    %cst_8 = arith.constant dense<0.000000e+00> : vector<320xf32>
    %19 = vector.multi_reduction <add>, %18, %cst_8 [0] : vector<3x320xf32> to vector<320xf32>
    %20 = vector.shape_cast %19 : vector<320xf32> to vector<1x320xf32>
    %cst_9 = arith.constant 9.99999996E-13 : f32
    %21 = vector.broadcast %cst_9 : f32 to vector<1x320xf32>
    %22 = arith.addf %20, %21 : vector<1x320xf32>
    %23 = math.rsqrt %22 : vector<1x320xf32>
    %24 = vector.broadcast %23 : vector<1x320xf32> to vector<3x320xf32>
    %25 = arith.mulf %8, %24 : vector<3x320xf32>
    %cst_10 = arith.constant dense<0.000000e+00> : vector<3xf32>
    %26 = vector.multi_reduction <add>, %25, %cst_10 [1] : vector<3x320xf32> to vector<3xf32>
    %27 = vector.shape_cast %26 : vector<3xf32> to vector<3x1xf32>
    %28 = vector.broadcast %27 : vector<3x1xf32> to vector<3x320xf32>
    %29 = arith.mulf %17, %28 : vector<3x320xf32>
    %cst_11 = arith.constant dense<0.000000e+00> : vector<320xf32>
    %30 = vector.multi_reduction <add>, %29, %cst_11 [0] : vector<3x320xf32> to vector<320xf32>
    %31 = vector.shape_cast %30 : vector<320xf32> to vector<1x320xf32>
    %cst_12 = arith.constant 3.200000e+02 : f32
    %32 = vector.broadcast %cst_12 : f32 to vector<1x320xf32>
    %33 = arith.addf %32, %31 : vector<1x320xf32>
    %cst_13 = arith.constant 9.99999997E-7 : f32
    %34 = vector.broadcast %cst_13 : f32 to vector<1x320xf32>
    %35 = arith.addf %33, %34 : vector<1x320xf32>
    %36 = tpu.reciprocal %35 {approx = true} : vector<1x320xf32> -> vector<1x320xf32>
    %cst_14 = arith.constant dense<0.000000e+00> : vector<24xf32>
    %37 = vector.multi_reduction <add>, %9, %cst_14 [1] : vector<24x320xf32> to vector<24xf32>
    %38 = vector.shape_cast %37 : vector<24xf32> to vector<24x1xf32>
    %39 = arith.truncf %25 : vector<3x320xf32> to vector<3x320xbf16>
    %40 = arith.truncf %9 : vector<24x320xf32> to vector<24x320xbf16>
    %cst_15 = arith.constant dense<0.000000e+00> : vector<3x24xf32>
    %41 = tpu.matmul %39, %40, %cst_15 {dimension_numbers = #tpu.dot_dimension_numbers<[1], [1], [0], [0], [0, 0, 1, 0], [], []>} : vector<3x320xbf16>, vector<24x320xbf16>, vector<3x24xf32> -> vector<3x24xf32>
    %42 = arith.truncf %41 : vector<3x24xf32> to vector<3x24xbf16>
    %43 = arith.truncf %17 : vector<3x320xf32> to vector<3x320xbf16>
    %cst_16 = arith.constant dense<0.000000e+00> : vector<24x320xf32>
    %44 = tpu.matmul %42, %43, %cst_16 {dimension_numbers = #tpu.dot_dimension_numbers<[0], [0], [1], [1], [0, 1, 1, 1], [], []>} : vector<3x24xbf16>, vector<3x320xbf16>, vector<24x320xf32> -> vector<24x320xf32>
    %45 = vector.broadcast %38 : vector<24x1xf32> to vector<24x320xf32>
    %46 = arith.addf %45, %44 : vector<24x320xf32>
    %47 = vector.broadcast %36 : vector<1x320xf32> to vector<24x320xf32>
    %48 = arith.mulf %46, %47 : vector<24x320xf32>
    %49 = arith.extf %1 : vector<24x320xbf16> to vector<24x320xf32>
    %c0_17 = arith.constant 0 : index
    %c0_18 = arith.constant 0 : index
    %50 = vector.load %arg4[%c0_17, %c0_18] : memref<1x1xf32, #tpu.memory_space<vmem>>, vector<1x1xf32>
    %51 = vector.broadcast %50 : vector<1x1xf32> to vector<24x320xf32>
    %52 = arith.mulf %51, %48 : vector<24x320xf32>
    %53 = arith.addf %49, %52 : vector<24x320xf32>
    %54 = arith.truncf %53 : vector<24x320xf32> to vector<24x320xbf16>
    %c0_19 = arith.constant 0 : index
    %c0_20 = arith.constant 0 : index
    %c0_21 = arith.constant 0 : index
    %55 = vector.load %arg5[%c0_19, %c0_20, %c0_21] : memref<1x24x320xbf16, #tpu.memory_space<vmem>>, vector<1x24x320xbf16>
    %56 = vector.shape_cast %55 : vector<1x24x320xbf16> to vector<24x320xbf16>
    %57 = vector.shape_cast %54 : vector<24x320xbf16> to vector<1x24x320xbf16>
    tpu.vector_store %arg5[%c0_19, %c0_20, %c0_21], %57 {strides = array<i32>} : memref<1x24x320xbf16, #tpu.memory_space<vmem>>, vector<1x24x320xbf16>,
    return
  }
  func.func @transform_0(%arg0: i32) -> (i32, i32, i32) {
    %c0_i32 = arith.constant 0 : i32
    %c0_i32_0 = arith.constant 0 : i32
    %c0_i32_1 = arith.constant 0 : i32
    return %arg0, %c0_i32, %c0_i32_0 : i32, i32, i32
  }
  func.func @transform_1(%arg0: i32) -> (i32, i32) {
    %c0_i32 = arith.constant 0 : i32
    %c0_i32_0 = arith.constant 0 : i32
    %c0_i32_1 = arith.constant 0 : i32
    return %c0_i32, %c0_i32_0 : i32, i32
  }
  func.func @transform_2(%arg0: i32) -> (i32, i32) {
    %c0_i32 = arith.constant 0 : i32
    %c0_i32_0 = arith.constant 0 : i32
    %c0_i32_1 = arith.constant 0 : i32
    return %c0_i32, %c0_i32_0 : i32, i32
  }
  func.func @transform_3(%arg0: i32) -> (i32, i32) {
    %c0_i32 = arith.constant 0 : i32
    %c0_i32_0 = arith.constant 0 : i32
    %c0_i32_1 = arith.constant 0 : i32
    return %c0_i32, %c0_i32_0 : i32, i32
  }
  func.func @transform_4(%arg0: i32) -> (i32, i32, i32) {
    %c0_i32 = arith.constant 0 : i32
    %c0_i32_0 = arith.constant 0 : i32
    %c0_i32_1 = arith.constant 0 : i32
    return %arg0, %c0_i32, %c0_i32_0 : i32, i32, i32
  }
}

module attributes {stable_mosaic.version = 11 : i64} {
  func.func @_chan_attn_kernel(%arg0: i32, %arg1: memref<1x24x320xbf16, #tpu.memory_space<vmem>>, %arg2: memref<1x1xf32, #tpu.memory_space<vmem>>, %arg3: memref<1x24x320xbf16, #tpu.memory_space<vmem>>) attributes {dimension_semantics = [#tpu.dimension_semantics<parallel>], iteration_bounds = array<i64: 2>, scalar_prefetch = 0 : i64, scratch_operands = 0 : i64, tpu.core_type = #tpu.core_type<tc>, window_params = [{transform_indices = @transform_0, window_bounds = array<i64: 1, 24, 320>}, {pipeline_mode = #tpu.pipeline_mode<synchronous>, transform_indices = @transform_1, window_bounds = array<i64: 1, 1>}, {transform_indices = @transform_2, window_bounds = array<i64: 1, 24, 320>}]} {
    %c0 = arith.constant 0 : index
    %c0_0 = arith.constant 0 : index
    %c0_1 = arith.constant 0 : index
    %0 = vector.load %arg1[%c0, %c0_0, %c0_1] : memref<1x24x320xbf16, #tpu.memory_space<vmem>>, vector<1x24x320xbf16>
    %1 = vector.shape_cast %0 : vector<1x24x320xbf16> to vector<24x320xbf16>
    %2 = arith.extf %1 : vector<24x320xbf16> to vector<24x320xf32>
    %3 = arith.mulf %2, %2 : vector<24x320xf32>
    %cst = arith.constant dense<0.000000e+00> : vector<24xf32>
    %4 = vector.multi_reduction <add>, %3, %cst [1] : vector<24x320xf32> to vector<24xf32>
    %5 = vector.shape_cast %4 : vector<24xf32> to vector<24x1xf32>
    %cst_2 = arith.constant 9.99999996E-13 : f32
    %6 = vector.broadcast %cst_2 : f32 to vector<24x1xf32>
    %7 = arith.addf %5, %6 : vector<24x1xf32>
    %8 = math.rsqrt %7 : vector<24x1xf32>
    %9 = vector.broadcast %8 : vector<24x1xf32> to vector<24x320xf32>
    %10 = arith.mulf %2, %9 : vector<24x320xf32>
    %cst_3 = arith.constant dense<0.000000e+00> : vector<320xf32>
    %11 = vector.multi_reduction <add>, %10, %cst_3 [0] : vector<24x320xf32> to vector<320xf32>
    %12 = vector.shape_cast %11 : vector<320xf32> to vector<1x320xf32>
    %13 = vector.broadcast %12 : vector<1x320xf32> to vector<24x320xf32>
    %14 = arith.mulf %10, %13 : vector<24x320xf32>
    %cst_4 = arith.constant dense<0.000000e+00> : vector<24xf32>
    %15 = vector.multi_reduction <add>, %14, %cst_4 [1] : vector<24x320xf32> to vector<24xf32>
    %16 = vector.shape_cast %15 : vector<24xf32> to vector<24x1xf32>
    %cst_5 = arith.constant 2.400000e+01 : f32
    %17 = vector.broadcast %cst_5 : f32 to vector<24x1xf32>
    %18 = arith.addf %17, %16 : vector<24x1xf32>
    %cst_6 = arith.constant 9.99999997E-7 : f32
    %19 = vector.broadcast %cst_6 : f32 to vector<24x1xf32>
    %20 = arith.addf %18, %19 : vector<24x1xf32>
    %21 = tpu.reciprocal %20 {approx = true} : vector<24x1xf32> -> vector<24x1xf32>
    %cst_7 = arith.constant dense<0.000000e+00> : vector<320xf32>
    %22 = vector.multi_reduction <add>, %2, %cst_7 [0] : vector<24x320xf32> to vector<320xf32>
    %23 = vector.shape_cast %22 : vector<320xf32> to vector<1x320xf32>
    %24 = arith.truncf %10 : vector<24x320xf32> to vector<24x320xbf16>
    %25 = arith.truncf %2 : vector<24x320xf32> to vector<24x320xbf16>
    %cst_8 = arith.constant dense<0.000000e+00> : vector<320x320xf32>
    %26 = tpu.matmul %24, %25, %cst_8 {dimension_numbers = #tpu.dot_dimension_numbers<[0], [0], [1], [1], [0, 1, 1, 1], [], []>} : vector<24x320xbf16>, vector<24x320xbf16>, vector<320x320xf32> -> vector<320x320xf32>
    %27 = arith.truncf %26 : vector<320x320xf32> to vector<320x320xbf16>
    %cst_9 = arith.constant dense<0.000000e+00> : vector<24x320xf32>
    %28 = tpu.matmul %24, %27, %cst_9 {dimension_numbers = #tpu.dot_dimension_numbers<[1], [0], [0], [1], [0, 0, 1, 1], [], []>} : vector<24x320xbf16>, vector<320x320xbf16>, vector<24x320xf32> -> vector<24x320xf32>
    %29 = vector.broadcast %23 : vector<1x320xf32> to vector<24x320xf32>
    %30 = arith.addf %29, %28 : vector<24x320xf32>
    %31 = vector.broadcast %21 : vector<24x1xf32> to vector<24x320xf32>
    %32 = arith.mulf %30, %31 : vector<24x320xf32>
    %c0_10 = arith.constant 0 : index
    %c0_11 = arith.constant 0 : index
    %33 = vector.load %arg2[%c0_10, %c0_11] : memref<1x1xf32, #tpu.memory_space<vmem>>, vector<1x1xf32>
    %34 = vector.broadcast %33 : vector<1x1xf32> to vector<24x320xf32>
    %35 = arith.mulf %34, %32 : vector<24x320xf32>
    %36 = arith.addf %2, %35 : vector<24x320xf32>
    %37 = arith.truncf %36 : vector<24x320xf32> to vector<24x320xbf16>
    %c0_12 = arith.constant 0 : index
    %c0_13 = arith.constant 0 : index
    %c0_14 = arith.constant 0 : index
    %38 = vector.load %arg3[%c0_12, %c0_13, %c0_14] : memref<1x24x320xbf16, #tpu.memory_space<vmem>>, vector<1x24x320xbf16>
    %39 = vector.shape_cast %38 : vector<1x24x320xbf16> to vector<24x320xbf16>
    %40 = vector.shape_cast %37 : vector<24x320xbf16> to vector<1x24x320xbf16>
    tpu.vector_store %arg3[%c0_12, %c0_13, %c0_14], %40 {strides = array<i32>} : memref<1x24x320xbf16, #tpu.memory_space<vmem>>, vector<1x24x320xbf16>,
    return
  }
  func.func @transform_0(%arg0: i32) -> (i32, i32, i32) {
    %c0_i32 = arith.constant 0 : i32
    %c0_i32_0 = arith.constant 0 : i32
    %c0_i32_1 = arith.constant 0 : i32
    return %arg0, %c0_i32, %c0_i32_0 : i32, i32, i32
  }
  func.func @transform_1(%arg0: i32) -> (i32, i32) {
    %c0_i32 = arith.constant 0 : i32
    %c0_i32_0 = arith.constant 0 : i32
    %c0_i32_1 = arith.constant 0 : i32
    return %c0_i32, %c0_i32_0 : i32, i32
  }
  func.func @transform_2(%arg0: i32) -> (i32, i32, i32) {
    %c0_i32 = arith.constant 0 : i32
    %c0_i32_0 = arith.constant 0 : i32
    %c0_i32_1 = arith.constant 0 : i32
    return %arg0, %c0_i32, %c0_i32_0 : i32, i32, i32
  }
}

module attributes {stable_mosaic.version = 11 : i64} {
  func.func @_matmul_bias_act_kernel(%arg0: i32, %arg1: memref<48x48xbf16, #tpu.memory_space<vmem>>, %arg2: memref<48x128xbf16, #tpu.memory_space<vmem>>, %arg3: memref<48x1xf32, #tpu.memory_space<vmem>>, %arg4: memref<48x128xbf16, #tpu.memory_space<vmem>>) attributes {dimension_semantics = [#tpu.dimension_semantics<parallel>], iteration_bounds = array<i64: 5>, scalar_prefetch = 0 : i64, scratch_operands = 0 : i64, tpu.core_type = #tpu.core_type<tc>, window_params = [{pipeline_mode = #tpu.pipeline_mode<synchronous>, transform_indices = @transform_0, window_bounds = array<i64: 48, 48>}, {transform_indices = @transform_1, window_bounds = array<i64: 48, 128>}, {pipeline_mode = #tpu.pipeline_mode<synchronous>, transform_indices = @transform_2, window_bounds = array<i64: 48, 1>}, {transform_indices = @transform_3, window_bounds = array<i64: 48, 128>}]} {
    %c0 = arith.constant 0 : index
    %c0_0 = arith.constant 0 : index
    %0 = vector.load %arg1[%c0, %c0_0] : memref<48x48xbf16, #tpu.memory_space<vmem>>, vector<48x48xbf16>
    %c0_1 = arith.constant 0 : index
    %c0_2 = arith.constant 0 : index
    %1 = vector.load %arg2[%c0_1, %c0_2] : memref<48x128xbf16, #tpu.memory_space<vmem>>, vector<48x128xbf16>
    %cst = arith.constant dense<0.000000e+00> : vector<48x128xf32>
    %2 = tpu.matmul %0, %1, %cst {dimension_numbers = #tpu.dot_dimension_numbers<[1], [0], [0], [1], [0, 0, 1, 1], [], []>} : vector<48x48xbf16>, vector<48x128xbf16>, vector<48x128xf32> -> vector<48x128xf32>
    %c0_3 = arith.constant 0 : index
    %c0_4 = arith.constant 0 : index
    %3 = vector.load %arg3[%c0_3, %c0_4] : memref<48x1xf32, #tpu.memory_space<vmem>>, vector<48x1xf32>
    %4 = vector.broadcast %3 : vector<48x1xf32> to vector<48x128xf32>
    %5 = arith.addf %2, %4 : vector<48x128xf32>
    %cst_5 = arith.constant 0.000000e+00 : f32
    %6 = vector.broadcast %cst_5 : f32 to vector<48x128xf32>
    %7 = arith.maximumf %5, %6 : vector<48x128xf32>
    %8 = arith.truncf %7 : vector<48x128xf32> to vector<48x128xbf16>
    %c0_6 = arith.constant 0 : index
    %c0_7 = arith.constant 0 : index
    %9 = vector.load %arg4[%c0_6, %c0_7] : memref<48x128xbf16, #tpu.memory_space<vmem>>, vector<48x128xbf16>
    tpu.vector_store %arg4[%c0_6, %c0_7], %8 {strides = array<i32>} : memref<48x128xbf16, #tpu.memory_space<vmem>>, vector<48x128xbf16>,
    return
  }
  func.func @transform_0(%arg0: i32) -> (i32, i32) {
    %c0_i32 = arith.constant 0 : i32
    %c0_i32_0 = arith.constant 0 : i32
    %c0_i32_1 = arith.constant 0 : i32
    return %c0_i32, %c0_i32_0 : i32, i32
  }
  func.func @transform_1(%arg0: i32) -> (i32, i32) {
    %c0_i32 = arith.constant 0 : i32
    %c0_i32_0 = arith.constant 0 : i32
    return %c0_i32, %arg0 : i32, i32
  }
  func.func @transform_2(%arg0: i32) -> (i32, i32) {
    %c0_i32 = arith.constant 0 : i32
    %c0_i32_0 = arith.constant 0 : i32
    %c0_i32_1 = arith.constant 0 : i32
    return %c0_i32, %c0_i32_0 : i32, i32
  }
  func.func @transform_3(%arg0: i32) -> (i32, i32) {
    %c0_i32 = arith.constant 0 : i32
    %c0_i32_0 = arith.constant 0 : i32
    return %c0_i32, %arg0 : i32, i32
  }
}

module attributes {stable_mosaic.version = 11 : i64} {
  func.func @_matmul_bias_act_kernel(%arg0: i32, %arg1: memref<12x1296xbf16, #tpu.memory_space<vmem>>, %arg2: memref<1296x128xbf16, #tpu.memory_space<vmem>>, %arg3: memref<12x1xf32, #tpu.memory_space<vmem>>, %arg4: memref<12x128xbf16, #tpu.memory_space<vmem>>) attributes {dimension_semantics = [#tpu.dimension_semantics<parallel>], iteration_bounds = array<i64: 5>, scalar_prefetch = 0 : i64, scratch_operands = 0 : i64, tpu.core_type = #tpu.core_type<tc>, window_params = [{pipeline_mode = #tpu.pipeline_mode<synchronous>, transform_indices = @transform_0, window_bounds = array<i64: 12, 1296>}, {transform_indices = @transform_1, window_bounds = array<i64: 1296, 128>}, {pipeline_mode = #tpu.pipeline_mode<synchronous>, transform_indices = @transform_2, window_bounds = array<i64: 12, 1>}, {transform_indices = @transform_3, window_bounds = array<i64: 12, 128>}]} {
    %c0 = arith.constant 0 : index
    %c0_0 = arith.constant 0 : index
    %0 = vector.load %arg1[%c0, %c0_0] : memref<12x1296xbf16, #tpu.memory_space<vmem>>, vector<12x1296xbf16>
    %c0_1 = arith.constant 0 : index
    %c0_2 = arith.constant 0 : index
    %1 = vector.load %arg2[%c0_1, %c0_2] : memref<1296x128xbf16, #tpu.memory_space<vmem>>, vector<1296x128xbf16>
    %cst = arith.constant dense<0.000000e+00> : vector<12x128xf32>
    %2 = tpu.matmul %0, %1, %cst {dimension_numbers = #tpu.dot_dimension_numbers<[1], [0], [0], [1], [0, 0, 1, 1], [], []>} : vector<12x1296xbf16>, vector<1296x128xbf16>, vector<12x128xf32> -> vector<12x128xf32>
    %c0_3 = arith.constant 0 : index
    %c0_4 = arith.constant 0 : index
    %3 = vector.load %arg3[%c0_3, %c0_4] : memref<12x1xf32, #tpu.memory_space<vmem>>, vector<12x1xf32>
    %4 = vector.broadcast %3 : vector<12x1xf32> to vector<12x128xf32>
    %5 = arith.addf %2, %4 : vector<12x128xf32>
    %cst_5 = arith.constant 0.000000e+00 : f32
    %6 = vector.broadcast %cst_5 : f32 to vector<12x128xf32>
    %7 = arith.maximumf %5, %6 : vector<12x128xf32>
    %8 = arith.truncf %7 : vector<12x128xf32> to vector<12x128xbf16>
    %c0_6 = arith.constant 0 : index
    %c0_7 = arith.constant 0 : index
    %9 = vector.load %arg4[%c0_6, %c0_7] : memref<12x128xbf16, #tpu.memory_space<vmem>>, vector<12x128xbf16>
    tpu.vector_store %arg4[%c0_6, %c0_7], %8 {strides = array<i32>} : memref<12x128xbf16, #tpu.memory_space<vmem>>, vector<12x128xbf16>,
    return
  }
  func.func @transform_0(%arg0: i32) -> (i32, i32) {
    %c0_i32 = arith.constant 0 : i32
    %c0_i32_0 = arith.constant 0 : i32
    %c0_i32_1 = arith.constant 0 : i32
    return %c0_i32, %c0_i32_0 : i32, i32
  }
  func.func @transform_1(%arg0: i32) -> (i32, i32) {
    %c0_i32 = arith.constant 0 : i32
    %c0_i32_0 = arith.constant 0 : i32
    return %c0_i32, %arg0 : i32, i32
  }
  func.func @transform_2(%arg0: i32) -> (i32, i32) {
    %c0_i32 = arith.constant 0 : i32
    %c0_i32_0 = arith.constant 0 : i32
    %c0_i32_1 = arith.constant 0 : i32
    return %c0_i32, %c0_i32_0 : i32, i32
  }
  func.func @transform_3(%arg0: i32) -> (i32, i32) {
    %c0_i32 = arith.constant 0 : i32
    %c0_i32_0 = arith.constant 0 : i32
    return %c0_i32, %arg0 : i32, i32
  }
}

module attributes {stable_mosaic.version = 11 : i64} {
  func.func @_matmul_bias_act_kernel(%arg0: i32, %arg1: memref<12x324xbf16, #tpu.memory_space<vmem>>, %arg2: memref<324x128xbf16, #tpu.memory_space<vmem>>, %arg3: memref<12x1xf32, #tpu.memory_space<vmem>>, %arg4: memref<12x128xbf16, #tpu.memory_space<vmem>>) attributes {dimension_semantics = [#tpu.dimension_semantics<parallel>], iteration_bounds = array<i64: 5>, scalar_prefetch = 0 : i64, scratch_operands = 0 : i64, tpu.core_type = #tpu.core_type<tc>, window_params = [{pipeline_mode = #tpu.pipeline_mode<synchronous>, transform_indices = @transform_0, window_bounds = array<i64: 12, 324>}, {transform_indices = @transform_1, window_bounds = array<i64: 324, 128>}, {pipeline_mode = #tpu.pipeline_mode<synchronous>, transform_indices = @transform_2, window_bounds = array<i64: 12, 1>}, {transform_indices = @transform_3, window_bounds = array<i64: 12, 128>}]} {
    %c0 = arith.constant 0 : index
    %c0_0 = arith.constant 0 : index
    %0 = vector.load %arg1[%c0, %c0_0] : memref<12x324xbf16, #tpu.memory_space<vmem>>, vector<12x324xbf16>
    %c0_1 = arith.constant 0 : index
    %c0_2 = arith.constant 0 : index
    %1 = vector.load %arg2[%c0_1, %c0_2] : memref<324x128xbf16, #tpu.memory_space<vmem>>, vector<324x128xbf16>
    %cst = arith.constant dense<0.000000e+00> : vector<12x128xf32>
    %2 = tpu.matmul %0, %1, %cst {dimension_numbers = #tpu.dot_dimension_numbers<[1], [0], [0], [1], [0, 0, 1, 1], [], []>} : vector<12x324xbf16>, vector<324x128xbf16>, vector<12x128xf32> -> vector<12x128xf32>
    %c0_3 = arith.constant 0 : index
    %c0_4 = arith.constant 0 : index
    %3 = vector.load %arg3[%c0_3, %c0_4] : memref<12x1xf32, #tpu.memory_space<vmem>>, vector<12x1xf32>
    %4 = vector.broadcast %3 : vector<12x1xf32> to vector<12x128xf32>
    %5 = arith.addf %2, %4 : vector<12x128xf32>
    %cst_5 = arith.constant 0.000000e+00 : f32
    %6 = vector.broadcast %cst_5 : f32 to vector<12x128xf32>
    %7 = arith.maximumf %5, %6 : vector<12x128xf32>
    %8 = arith.truncf %7 : vector<12x128xf32> to vector<12x128xbf16>
    %c0_6 = arith.constant 0 : index
    %c0_7 = arith.constant 0 : index
    %9 = vector.load %arg4[%c0_6, %c0_7] : memref<12x128xbf16, #tpu.memory_space<vmem>>, vector<12x128xbf16>
    tpu.vector_store %arg4[%c0_6, %c0_7], %8 {strides = array<i32>} : memref<12x128xbf16, #tpu.memory_space<vmem>>, vector<12x128xbf16>,
    return
  }
  func.func @transform_0(%arg0: i32) -> (i32, i32) {
    %c0_i32 = arith.constant 0 : i32
    %c0_i32_0 = arith.constant 0 : i32
    %c0_i32_1 = arith.constant 0 : i32
    return %c0_i32, %c0_i32_0 : i32, i32
  }
  func.func @transform_1(%arg0: i32) -> (i32, i32) {
    %c0_i32 = arith.constant 0 : i32
    %c0_i32_0 = arith.constant 0 : i32
    return %c0_i32, %arg0 : i32, i32
  }
  func.func @transform_2(%arg0: i32) -> (i32, i32) {
    %c0_i32 = arith.constant 0 : i32
    %c0_i32_0 = arith.constant 0 : i32
    %c0_i32_1 = arith.constant 0 : i32
    return %c0_i32, %c0_i32_0 : i32, i32
  }
  func.func @transform_3(%arg0: i32) -> (i32, i32) {
    %c0_i32 = arith.constant 0 : i32
    %c0_i32_0 = arith.constant 0 : i32
    return %c0_i32, %arg0 : i32, i32
  }
}

module attributes {stable_mosaic.version = 11 : i64} {
  func.func @_matmul_bias_act_kernel(%arg0: i32, %arg1: memref<60x360xbf16, #tpu.memory_space<vmem>>, %arg2: memref<360x128xbf16, #tpu.memory_space<vmem>>, %arg3: memref<60x1xf32, #tpu.memory_space<vmem>>, %arg4: memref<60x128xbf16, #tpu.memory_space<vmem>>) attributes {dimension_semantics = [#tpu.dimension_semantics<parallel>], iteration_bounds = array<i64: 1>, scalar_prefetch = 0 : i64, scratch_operands = 0 : i64, tpu.core_type = #tpu.core_type<tc>, window_params = [{pipeline_mode = #tpu.pipeline_mode<synchronous>, transform_indices = @transform_0, window_bounds = array<i64: 60, 360>}, {transform_indices = @transform_1, window_bounds = array<i64: 360, 128>}, {pipeline_mode = #tpu.pipeline_mode<synchronous>, transform_indices = @transform_2, window_bounds = array<i64: 60, 1>}, {transform_indices = @transform_3, window_bounds = array<i64: 60, 128>}]} {
    %c0 = arith.constant 0 : index
    %c0_0 = arith.constant 0 : index
    %0 = vector.load %arg1[%c0, %c0_0] : memref<60x360xbf16, #tpu.memory_space<vmem>>, vector<60x360xbf16>
    %c0_1 = arith.constant 0 : index
    %c0_2 = arith.constant 0 : index
    %1 = vector.load %arg2[%c0_1, %c0_2] : memref<360x128xbf16, #tpu.memory_space<vmem>>, vector<360x128xbf16>
    %cst = arith.constant dense<0.000000e+00> : vector<60x128xf32>
    %2 = tpu.matmul %0, %1, %cst {dimension_numbers = #tpu.dot_dimension_numbers<[1], [0], [0], [1], [0, 0, 1, 1], [], []>} : vector<60x360xbf16>, vector<360x128xbf16>, vector<60x128xf32> -> vector<60x128xf32>
    %c0_3 = arith.constant 0 : index
    %c0_4 = arith.constant 0 : index
    %3 = vector.load %arg3[%c0_3, %c0_4] : memref<60x1xf32, #tpu.memory_space<vmem>>, vector<60x1xf32>
    %4 = vector.broadcast %3 : vector<60x1xf32> to vector<60x128xf32>
    %5 = arith.addf %2, %4 : vector<60x128xf32>
    %cst_5 = arith.constant 0.000000e+00 : f32
    %6 = vector.broadcast %cst_5 : f32 to vector<60x128xf32>
    %7 = arith.maximumf %5, %6 : vector<60x128xf32>
    %8 = arith.truncf %7 : vector<60x128xf32> to vector<60x128xbf16>
    %c0_6 = arith.constant 0 : index
    %c0_7 = arith.constant 0 : index
    %9 = vector.load %arg4[%c0_6, %c0_7] : memref<60x128xbf16, #tpu.memory_space<vmem>>, vector<60x128xbf16>
    tpu.vector_store %arg4[%c0_6, %c0_7], %8 {strides = array<i32>} : memref<60x128xbf16, #tpu.memory_space<vmem>>, vector<60x128xbf16>,
    return
  }
  func.func @transform_0(%arg0: i32) -> (i32, i32) {
    %c0_i32 = arith.constant 0 : i32
    %c0_i32_0 = arith.constant 0 : i32
    %c0_i32_1 = arith.constant 0 : i32
    return %c0_i32, %c0_i32_0 : i32, i32
  }
  func.func @transform_1(%arg0: i32) -> (i32, i32) {
    %c0_i32 = arith.constant 0 : i32
    %c0_i32_0 = arith.constant 0 : i32
    return %c0_i32, %arg0 : i32, i32
  }
  func.func @transform_2(%arg0: i32) -> (i32, i32) {
    %c0_i32 = arith.constant 0 : i32
    %c0_i32_0 = arith.constant 0 : i32
    %c0_i32_1 = arith.constant 0 : i32
    return %c0_i32, %c0_i32_0 : i32, i32
  }
  func.func @transform_3(%arg0: i32) -> (i32, i32) {
    %c0_i32 = arith.constant 0 : i32
    %c0_i32_0 = arith.constant 0 : i32
    return %c0_i32, %arg0 : i32, i32
  }
}

module attributes {stable_mosaic.version = 11 : i64} {
  func.func @_matmul_bias_act_kernel(%arg0: i32, %arg1: memref<9x60xf32, #tpu.memory_space<vmem>>, %arg2: memref<60x128xf32, #tpu.memory_space<vmem>>, %arg3: memref<9x1xf32, #tpu.memory_space<vmem>>, %arg4: memref<9x128xf32, #tpu.memory_space<vmem>>) attributes {dimension_semantics = [#tpu.dimension_semantics<parallel>], iteration_bounds = array<i64: 1>, scalar_prefetch = 0 : i64, scratch_operands = 0 : i64, tpu.core_type = #tpu.core_type<tc>, window_params = [{pipeline_mode = #tpu.pipeline_mode<synchronous>, transform_indices = @transform_0, window_bounds = array<i64: 9, 60>}, {transform_indices = @transform_1, window_bounds = array<i64: 60, 128>}, {pipeline_mode = #tpu.pipeline_mode<synchronous>, transform_indices = @transform_2, window_bounds = array<i64: 9, 1>}, {transform_indices = @transform_3, window_bounds = array<i64: 9, 128>}]} {
    %c0 = arith.constant 0 : index
    %c0_0 = arith.constant 0 : index
    %0 = vector.load %arg1[%c0, %c0_0] : memref<9x60xf32, #tpu.memory_space<vmem>>, vector<9x60xf32>
    %c0_1 = arith.constant 0 : index
    %c0_2 = arith.constant 0 : index
    %1 = vector.load %arg2[%c0_1, %c0_2] : memref<60x128xf32, #tpu.memory_space<vmem>>, vector<60x128xf32>
    %cst = arith.constant dense<0.000000e+00> : vector<9x128xf32>
    %2 = tpu.matmul %0, %1, %cst {dimension_numbers = #tpu.dot_dimension_numbers<[1], [0], [0], [1], [0, 0, 1, 1], [], []>} : vector<9x60xf32>, vector<60x128xf32>, vector<9x128xf32> -> vector<9x128xf32>
    %c0_3 = arith.constant 0 : index
    %c0_4 = arith.constant 0 : index
    %3 = vector.load %arg3[%c0_3, %c0_4] : memref<9x1xf32, #tpu.memory_space<vmem>>, vector<9x1xf32>
    %4 = vector.broadcast %3 : vector<9x1xf32> to vector<9x128xf32>
    %5 = arith.addf %2, %4 : vector<9x128xf32>
    %c0_5 = arith.constant 0 : index
    %c0_6 = arith.constant 0 : index
    %6 = vector.load %arg4[%c0_5, %c0_6] : memref<9x128xf32, #tpu.memory_space<vmem>>, vector<9x128xf32>
    tpu.vector_store %arg4[%c0_5, %c0_6], %5 {strides = array<i32>} : memref<9x128xf32, #tpu.memory_space<vmem>>, vector<9x128xf32>,
    return
  }
  func.func @transform_0(%arg0: i32) -> (i32, i32) {
    %c0_i32 = arith.constant 0 : i32
    %c0_i32_0 = arith.constant 0 : i32
    %c0_i32_1 = arith.constant 0 : i32
    return %c0_i32, %c0_i32_0 : i32, i32
  }
  func.func @transform_1(%arg0: i32) -> (i32, i32) {
    %c0_i32 = arith.constant 0 : i32
    %c0_i32_0 = arith.constant 0 : i32
    return %c0_i32, %arg0 : i32, i32
  }
  func.func @transform_2(%arg0: i32) -> (i32, i32) {
    %c0_i32 = arith.constant 0 : i32
    %c0_i32_0 = arith.constant 0 : i32
    %c0_i32_1 = arith.constant 0 : i32
    return %c0_i32, %c0_i32_0 : i32, i32
  }
  func.func @transform_3(%arg0: i32) -> (i32, i32) {
    %c0_i32 = arith.constant 0 : i32
    %c0_i32_0 = arith.constant 0 : i32
    return %c0_i32, %arg0 : i32, i32
  }
}

</mosaic_0001>

<bundles_post_ra>
// kernel: ddcd_lam_forward.10
= control target key start
LH: loop header
LB: loop body
LE: loop exit
PB: predicated region body
PF: predicated region fallthrough
CT: control target
= control target key end

     0   :  { %s439_s12 = smov 0   ;;  %s441_s13 = smov 0   ;;  %s505_s0 = inlined_call_operand.vmem [shape: bf16[24,7], index: 0, kind: input, shape index: {}]   ;;  %s506_s1 = inlined_call_operand.vmem [shape: bf16[7,640], index: 1, kind: input, shape index: {}]   ;;  %s507_s2 = inlined_call_operand.vmem [shape: f32[24,1], index: 2, kind: input, shape index: {}]   ;;  %s508_s3 = inlined_call_operand.vmem [shape: bf16[24,640], index: 3, kind: output, shape index: {}]  }
   0x1   :  { %s443_s14 = smov 0  }
   0x2 LB: > { %s452_s15 = sadd.s32 4294967295, %s415_s14   ;;  %s454_s16 = sadd.s32 1, %s415_s14   ;;  %s415_s14 = sphi %s443_s14, %s512_s14   ;;  %s411_s13 = sphi %s441_s13, %s511_s13   ;;  %s407_s12 = sphi %s439_s12, %s510_s12  }
   0x3   : > { %s85_s17 = ssub.s32 %s415_s14, %s454_s16  ;;  %s88_s18 = sadd.s32 1, %s411_s13 }
   0x4   : > { %p86_p0 = scmp.eq.s32.totalorder %s85_s17, 0  ;;  %p98_p1 = scmp.ne.s32.totalorder %s411_s13, %s407_s12 }
   0x5   : > { %p99_p2 = scmp.eq.s32.totalorder %s452_s15, 4  ;;  %p346_p3 = scmp.ge.s32.totalorder %s415_s14, 1 }
   0x6   : > { %s462_s19 = scalar_select %p86_p0, %s411_s13, %s88_s18  }
   0x7   : > { %p464_p4 = por %p99_p2, %p98_p1  ;;  %p136_p5 = scmp.lt.s32.totalorder %s415_s14, 6 }
   0x9   : > { %p137_p6 = pnand %p346_p3, %p136_p5 }
   0xa   : > { %p158_p7 = scmp.lt.s32.totalorder (!%p137_p6), %s452_s15, 4  ;;  %s155_s9 = sand.u32 (!%p137_p6), 1, %s407_s12  }
   0xb   : > { %140 = sbr.rel (%p137_p6) target bundleno = 177 (0xb1), region = 32 }
   0xc   : > { %s364_s10 = smul.u32 (!%p137_p6), 12, %s155_s9 }
   0xe   : > { %s157_s11 = scalar_lea.vmem (!%p137_p6), [#allocation2], %s364_s10 }
  0x10   : > { %vm200_vm0 = vcmask 1042432   ;;  %vm201_vm1 = vcmask 1043456   ;;  %v417_v0 = vmov 65535   ;;  %v165_v2 = vld [vmem:[%s505_s0 + $0x8] sm:$0xf]  ;;  %v167_v3 = vld [vmem:[%s507_s2] sm:$0xff] }
  0x11   : > { %v202_v1 = vsel %vm200_vm0, 4294967295, %v417_v0  ;;  %s159_s25 = scalar_select %p158_p7, %s452_s15, 4  ;;  %v418_v4 = vmov 0   ;;  %v169_v5 = vld [vmem:[%s507_s2 + $0x10] sm:$0xff]  ;;  %v190_v7 = vunpack.c.l.b16 %v165_v2  ;;  %v357_v10 = vld [vmem:[%s505_s0] sm:$0xff]  ;;  %v168_v12 = vld [vmem:[%s507_s2 + $0x8] sm:$0xff] }
  0x12   : > { %391 = vset.pattern.permute.xlu0 %v418_v4  ;;  %392 = vset.pattern.permute.xlu1 %v418_v4  ;;  %v203_v6 = vsel %vm201_vm1, %v202_v1, 0  ;;  %vm193_vm2 = vcmask 56320   ;;  %s354_s12 = sshll.u32 (%p464_p4), %s452_s15, 2 }
  0x13   : > { %172 = vperm.xlu0 %391, %v167_v3   ;;  %182 = vperm.xlu1 %392, %v169_v5   ;;  %s347_s28 = sshll.u32 %s159_s25, 2  ;;  %v192_v11 = vpack.c.b16 %v190_v7, %v190_v7  ;;  %s242_s18 = scalar_lea.vmem (%p464_p4), %s508_s3, %s354_s12 }
  0x14   : > { %s161_s4 = scalar_lea.vmem %s506_s1, %s347_s28 }
  0x15   : > { %v166_v8 = vld [vmem:[%s161_s4] sm:$0xf] }
  0x16   : > { %v205_v9 = vand.u32 %v203_v6, %v166_v8 }
  0x18   : > { %214 = vmatpush.bf16.msra.mxu0 %v205_v9  ;;  %363 = vmatpush.bf16.msra.mxu1 %v205_v9 }
  0x1b   : > { %177 = vperm.xlu0 %391, %v168_v12   ;;  %352 = vmatmul.msk.bf16.vlgmr.msra.gmra.mxu0 %vm193_vm2, %v357_v10 }
  0x1c   : > { %353 = vmatmul.msk.bf16.vlgmr.msra.gmra.mxu1 %vm193_vm2, %v192_v11 }
  0x85   : > { %v173_v13 = vpop.permute.xlu0 %172  ;;  %v183_v14 = vpop.permute.xlu1 %182 }
  0x8d   : > { %v178_v20 = vpop.permute.xlu0 %177 }
  0x98   : > { %v216_v15 = vpop.f32.mrf.mxu0 }
  0x99   : > { %v221_v16 = vpop.f32.mrf.mxu1  ;;  %v217_v21 = vadd.f32 %v216_v15, %v173_v13 }
  0x9a   : > { %v222_v17 = vadd.f32 %v221_v16, %v183_v14 }
  0x9b   : > { %v225_v25 = vmax.f32 %v217_v21, 0.0 }
  0x9c   : > { %v227_v18 = vmax.f32 %v222_v17, 0.0 }
  0x9e   : > { %v230_v19 = vpack.c.bf16 %v227_v18, %v227_v18 }
  0xa0   : > { %233 = vst [vmem:[%s157_s11 + $0x8] sm:$0xf] %v230_v19  ;;  %v218_v22 = vpop.f32.mrf.mxu0 }
  0xa1   : > { %v223_v23 = vpop.f32.mrf.mxu1  ;;  %v219_v24 = vadd.f32 %v218_v22, %v178_v20 }
  0xa3   : > { %v226_v26 = vmax.f32 %v219_v24, 0.0  ;;  %240 = sbr.rel (!%p464_p4) target bundleno = 177 (0xb1), region = 36 }
  0xa5   : > { %v361_v27 = vpack.c.bf16 %v226_v26, %v225_v25 }
  0xa7   : > { %362 = vst [vmem:[%s157_s11] sm:$0xff] %v361_v27   ;;  %v263_v30 = vld [vmem:[%s157_s11 + $0x8] sm:$0xf] (%p464_p4) }
  0xa8   : > { %264 = vst [vmem:[%s242_s18 + $0x28] sm:$0xf] %v263_v30 }
  0xae   : > { %v259_v28 = vld [vmem:[%s157_s11] sm:$0xf]  ;;  %v261_v29 = vld [vmem:[%s157_s11 + $0x4] sm:$0xf] }
  0xaf   : > { %260 = vst [vmem:[%s242_s18] sm:$0xf] %v259_v28 }
  0xb0   : > { %262 = vst [vmem:[%s242_s18 + $0x14] sm:$0xf] %v261_v29 }
  0xb1 PF: > { %p10_p8 = scmp.ge.s32.totalorder %s454_s16, 7   ;;  %s510_s12 = smov %s411_s13 }
  0xb2   : > { %s511_s13 = smov %s462_s19  ;;  %s512_s14 = smov %s454_s16 }
  0xb3   :  { %12 = sbr.rel (!%p10_p8) target bundleno = 2 (0x2), region = 103 }

// kernel: ddcd_lam_forward.11
= control target key start
LH: loop header
LB: loop body
LE: loop exit
PB: predicated region body
PF: predicated region fallthrough
CT: control target
= control target key end

     0   :  { %s1066_s17 = smov 0   ;;  %s1353_s0 = inlined_call_operand.vmem [shape: bf16[2,24,320], index: 0, kind: input, shape index: {}]   ;;  %s1354_s1 = inlined_call_operand.vmem [shape: bf16[30,24], index: 1, kind: input, shape index: {}]   ;;  %s1355_s2 = inlined_call_operand.vmem [shape: f32[30,1], index: 2, kind: input, shape index: {}]   ;;  %s1356_s3 = inlined_call_operand.<no memory space> [shape: f32[1,1], index: 3, kind: input, shape index: {}]   ;;  %s1357_s4 = inlined_call_operand.vmem [shape: bf16[2,24,320], index: 4, kind: output, shape index: {}]  }
   0x1   :  { %v9_v0 = vstv %s1356_s3 }
   0x2   :  { %10 = vst [vmem:[#allocation2] sm:$0x1] %v9_v0 }
   0x3 LB: > { %s949_s18 = sadd.s32 4294967295, %s1034_s17   ;;  %p953_p0 = scmp.ge.s32.totalorder %s1034_s17, 1  ;;  %s1034_s17 = sphi %s1066_s17, %s16_s17  }
   0x4   : > { %p164_p1 = scmp.lt.s32.totalorder %s1034_s17, 3 }
   0x6   : > { %p165_p2 = pnand %p953_p0, %p164_p1 }
   0x7   : > { %p190_p3 = scmp.lt.s32.totalorder (!%p165_p2), %s949_s18, 1 }
   0x8   : > { %168 = sbr.rel (%p165_p2) target bundleno = 686 (0x2ae), region = 36 }
   0xd   : > { %v211_v1 = vld [vmem:[%s1355_s2] sm:$0xff]  ;;  %v1036_v2 = vmov 0   ;;  %v214_v3 = vld [vmem:[%s1355_s2 + $0x18] sm:$0x3f]  ;;  %s1359_s18 = smov (!%p190_p3, %s949_s18), 1  ;;  %v213_v4 = vld [vmem:[%s1355_s2 + $0x10] sm:$0xff] }
   0xe   : > { %1008 = vset.pattern.permute.xlu1 %v1036_v2  ;;  %1007 = vset.pattern.permute.xlu0 %v1036_v2  ;;  %s996_s22 = smul.u32 36, %s1359_s18  ;;  %v212_v7 = vld [vmem:[%s1355_s2 + $0x8] sm:$0xff]  ;;  %vm276_vm0 = vcmask 1043456   ;;  %v994_v26 = vld [vmem:[%s1354_s1] sm:$0xff]  ;;  %vm269_vm1 = vcmask 195584   ;;  %vm346_vm2 = vcmask 1042432  }
   0xf   : > { %232 = vperm.xlu1 %1008, %v214_v3   ;;  %217 = vperm.xlu0 %1007, %v211_v1   ;;  %v962_v27 = vld [vmem:[%s1354_s1 + $0x8] sm:$0xf]  ;;  %v995_v28 = vld [vmem:[%s1354_s1 + $0x8] sm:$0x70]  ;;  %vm516_vm3 = vcmask 1047558   ;;  %vm520_vm4 = vcmask 523270  }
  0x10   : > { %s1088_s25 = scalar_lea.vmem %s1353_s0, %s996_s22  ;;  %v963_v29 = vor.u32 %v995_v28, %v962_v27  ;;  %vm361_vm5 = vcmask 518144   ;;  %vm526_vm6 = vcmask 523264   ;;  %vm536_vm7 = vcmask 1045504   ;;  %s1322_s12 = scalar_lea.vmem %s1357_s4, %s996_s22 }
  0x11   : > { %v1094_v5 = vld [vmem:[%s1088_s25 + $0x18] sm:$0xff]  ;;  %v1097_v6 = vld [vmem:[%s1088_s25 + $0x20] sm:$0xf]  ;;  %v992_v14 = vld [vmem:[%s1088_s25 + $0x8] sm:$0xf0]  ;;  %vm540_vm8 = vcmask 521216  }
  0x12   : > { %v257_v8 = vunpack.c.l.b16 %v1094_v5  ;;  %v258_v9 = vunpack.c.h.b16 %v1094_v5  ;;  %v259_v10 = vunpack.c.l.b16 %v1097_v6  ;;  %v966_v11 = vld [vmem:[%s1088_s25] sm:$0xf]  ;;  %v991_v15 = vld [vmem:[%s1088_s25 + $0x4] sm:$0xf]  ;;  %v968_v16 = vld [vmem:[%s1088_s25 + $0xc] sm:$0xf0] }
  0x13   : > { %v974_v18 = vld [vmem:[%s1088_s25 + $0x8] sm:$0xf]  ;;  %v993_v19 = vld [vmem:[%s1088_s25 + $0x10] sm:$0xf0]  ;;  %v967_v23 = vor.u32 %v992_v14, %v966_v11  ;;  %v971_v24 = vor.u32 %v991_v15, %v968_v16  ;;  %vm586_vm9 = vcmask 1044480   ;;  %vm675_vm10 = vcmask 1040384  }
  0x14   : > { %v263_v12 = vpack.c.b16 %v257_v8, %v257_v8  ;;  %v264_v13 = vpack.c.b16 %v258_v9, %v258_v9  ;;  %v265_v17 = vpack.c.b16 %v259_v10, %v259_v10  ;;  %v975_v25 = vor.u32 %v993_v19, %v974_v18 }
  0x15   : > { %vm676_vm11 = vcmask 1041408  }
  0x16   : > { %v278_v20 = vsel %vm276_vm0, %v263_v12, 0  ;;  %v281_v21 = vsel %vm276_vm0, %v264_v13, 0  ;;  %v284_v22 = vsel %vm276_vm0, %v265_v17, 0  ;;  %vm471_vm0 = vcmask 1045507  }
  0x17   : > { %222 = vperm.xlu1 %1008, %v212_v7   ;;  %227 = vperm.xlu0 %1007, %v213_v4  }
  0x18   : > { %292 = vmatpush.bf16.msra.mxu0 %v278_v20  ;;  %311 = vmatpush.bf16.msra.mxu1 %v281_v21 }
  0x19   : > { %330 = vmatpush.bf16.msra.mxu2 %v284_v22 }
  0x1c   : > { %293 = vmatpush.bf16.msra.mxu0 %v967_v23  ;;  %312 = vmatpush.bf16.msra.mxu1 %v971_v24 }
  0x1d   : > { %331 = vmatpush.bf16.msra.mxu2 %v975_v25 }
  0x1f   : > { %976 = vmatmul.msk.bf16.vlgmr.msra.gmra.mxu0 %vm269_vm1, %v994_v26  ;;  %978 = vmatmul.msk.bf16.vlgmr.msra.gmra.mxu1 %vm269_vm1, %v994_v26 }
  0x20   : > { %980 = vmatmul.msk.bf16.vlgmr.msra.gmra.mxu2 %vm269_vm1, %v994_v26 }
  0x2f   : > { %977 = vmatmul.msk.bf16.gmra.mxu0 %vm269_vm1, %v963_v29  ;;  %979 = vmatmul.msk.bf16.gmra.mxu1 %vm269_vm1, %v963_v29 }
  0x30   : > { %981 = vmatmul.msk.bf16.gmra.mxu2 %vm269_vm1, %v963_v29 }
  0x81   : > { %v1123_v30 = vpop.permute.xlu1 %232  ;;  %v218_v31 = vpop.permute.xlu0 %217 }
  0x89   : > { %v223_v47 = vpop.permute.xlu1 %222  ;;  %v228_v26 = vpop.permute.xlu0 %227 }
  0x9c   : > { %v295_v32 = vpop.f32.mrf.mxu0  ;;  %v314_v33 = vpop.f32.mrf.mxu1 }
  0x9d   : > { %v1125_v34 = vadd.f32 %v295_v32, %v218_v31  ;;  %v1127_v35 = vadd.f32 %v314_v33, %v218_v31 }
  0x9f   : > { %v343_v36 = vmul.f32 %v1125_v34, %v1125_v34  ;;  %v344_v37 = vmul.f32 %v1127_v35, %v1127_v35  ;;  %v517_v52 = vsel %vm516_vm3, %v1125_v34, 0.0  ;;  %v518_v53 = vsel %vm516_vm3, %v1127_v35, 0.0 }
  0xa0   : > { %v519_v61 = vadd.f32 %v518_v53, %v517_v52 }
  0xa1   : > { %v347_v38 = vsel %vm346_vm2, %v343_v36, 0.0  ;;  %v408_v39 = vrot.slane %v343_v36, 3  ;;  %v354_v40 = vsel %vm346_vm2, %v344_v37, 0.0  ;;  %v409_v41 = vrot.slane %v344_v37, 3 }
  0xa2   : > { %v348_v42 = vrot.slane %v347_v38, 4  ;;  %v355_v43 = vrot.slane %v354_v40, 4 }
  0xa3   : > { %v414_v44 = vsel %vm346_vm2, %v408_v39, 0.0  ;;  %v421_v45 = vsel %vm346_vm2, %v409_v41, 0.0  ;;  %v333_v46 = vpop.f32.mrf.mxu2 }
  0xa4   : > { %v349_v48 = vadd.f32 %v348_v42, %v347_v38  ;;  %v415_v49 = vrot.slane %v414_v44, 4  ;;  %v297_v50 = vpop.f32.mrf.mxu0  ;;  %v316_v51 = vpop.f32.mrf.mxu1  ;;  %v356_v54 = vadd.f32 %v355_v43, %v354_v40  ;;  %v422_v55 = vrot.slane %v421_v45, 4 }
  0xa5   : > { %v1141_v56 = vadd.f32 %v333_v46, %v218_v31  ;;  %v1145_v60 = vadd.f32 %v297_v50, %v223_v47  ;;  %v1147_v63 = vadd.f32 %v316_v51, %v223_v47 }
  0xa6   : > { %v350_v57 = vrot.slane %v349_v48, 2  ;;  %v416_v58 = vadd.f32 %v415_v49, %v414_v44  ;;  %v357_v2 = vrot.slane %v356_v54, 2  ;;  %v423_v3 = vadd.f32 %v422_v55, %v421_v45 }
  0xa7   : > { %v345_v59 = vmul.f32 %v1141_v56, %v1141_v56  ;;  %v521_v0 = vsel %vm520_vm4, %v1141_v56, 0.0  ;;  %v525_v21 = vadd.f32 %v1147_v63, %v1145_v60  ;;  %v548_v46 = vpack.c.bf16 %v1145_v60, %v1125_v34 }
  0xa8   : > { %v417_v62 = vrot.slane %v416_v58, 2  ;;  %v351_v1 = vadd.f32 %v350_v57, %v349_v48  ;;  %v522_v9 = vadd.f32 %v521_v0, %v519_v61  ;;  %v424_v20 = vrot.slane %v423_v3, 2 }
  0xa9   : > { %v362_v4 = vsel %vm361_vm5, %v345_v59, 0.0  ;;  %v410_v7 = vrot.slane %v345_v59, 3  ;;  %v358_v22 = vadd.f32 %v357_v2, %v356_v54  ;;  %v549_v57 = vpack.c.bf16 %v1147_v63, %v1127_v35 }
  0xaa   : > { %v363_v8 = vrot.slane %v362_v4, 4  ;;  %v352_v10 = vrot.slane %v351_v1, 1  ;;  %v418_v11 = vadd.f32 %v417_v62, %v416_v58  ;;  %523 = vadd.xlane.f32.xlu0 %v522_v9  ;;  %v425_v37 = vadd.f32 %v424_v20, %v423_v3 }
  0xab   : > { %v428_v12 = vsel %vm361_vm5, %v410_v7, 0.0  ;;  %v335_v13 = vpop.f32.mrf.mxu2  ;;  %v359_v32 = vrot.slane %v358_v22, 1 }
  0xac   : > { %v364_v14 = vadd.f32 %v363_v8, %v362_v4  ;;  %v429_v15 = vrot.slane %v428_v12, 4  ;;  %v1152_v16 = vadd.f32 %v335_v13, %v223_v47  ;;  %v300_v17 = vpop.f32.mrf.mxu0  ;;  %v319_v18 = vpop.f32.mrf.mxu1  ;;  %v353_v19 = vadd.f32 %v352_v10, %v351_v1 }
  0xad   : > { %v301_v31 = vadd.f32 %v300_v17, %v228_v26  ;;  %v419_v33 = vrot.slane %v418_v11, 1  ;;  %v320_v36 = vadd.f32 %v319_v18, %v228_v26  ;;  %v360_v40 = vadd.f32 %v359_v32, %v358_v22 }
  0xae   : > { %v365_v23 = vrot.slane %v364_v14, 2  ;;  %v430_v24 = vadd.f32 %v429_v15, %v428_v12  ;;  %v527_v25 = vsel %vm526_vm6, %v1152_v16, 0.0  ;;  %v1158_v28 = vadd.f32 1e-12, %v353_v19 }
  0xaf   : > { %v528_v27 = vadd.f32 %v527_v25, %v525_v21  ;;  %v420_v41 = vadd.f32 %v419_v33, %v418_v11  ;;  %v426_v43 = vrot.slane %v425_v37, 1  ;;  %v1163_v50 = vadd.f32 1e-12, %v360_v40 }
  0xb0   : > { %v431_v29 = vrot.slane %v430_v24, 2  ;;  %1010 = vrsqrt.f32 %v1158_v28  ;;  %v366_v38 = vadd.f32 %v365_v23, %v364_v14  ;;  %v531_v51 = vadd.f32 %v320_v36, %v301_v31 }
  0xb1   : > { %529 = vadd.xlane.f32.xlu1 %v528_v27  ;;  %v1167_v54 = vadd.f32 1e-12, %v420_v41  ;;  %1012 = vrsqrt.f32 %v1163_v50  ;;  %v427_v62 = vadd.f32 %v426_v43, %v425_v37  ;;  %v587_v10 = vrot.slane %v548_v46, 3 }
  0xb2   : > { %v432_v39 = vadd.f32 %v431_v29, %v430_v24  ;;  %v367_v44 = vrot.slane %v366_v38, 1  ;;  %v550_v15 = vpack.c.bf16 %v1152_v16, %v1141_v56  ;;  %v1037_v19 = vmov 65535  }
  0xb3   : > { %v338_v42 = vpop.f32.mrf.mxu2  ;;  %1014 = vrsqrt.f32 %v1167_v54  ;;  %v1184_v12 = vadd.f32 1e-12, %v427_v62  ;;  %v677_v20 = vsel %vm675_vm10, 4294967295, %v1037_v19  ;;  %v590_v16 = vrot.slane %v549_v57, 3 }
  0xb4   : > { %v433_v45 = vrot.slane %v432_v39, 1  ;;  %v339_v47 = vadd.f32 %v338_v42, %v228_v26  ;;  %v302_v48 = vpop.f32.mrf.mxu0  ;;  %v321_v49 = vpop.f32.mrf.mxu1  ;;  %v368_v0 = vadd.f32 %v367_v44, %v366_v38  ;;  %v1203_v27 = vsel %vm676_vm11, %v677_v20, 0 }
  0xb5   : > { %v303_v52 = vadd.f32 %v302_v48, %v1123_v30  ;;  %v322_v53 = vadd.f32 %v321_v49, %v1123_v30  ;;  %vm378_vm13 = vweird.f32 %v1158_v28  ;;  %v593_v38 = vrot.slane %v550_v15, 3 }
  0xb6   : > { %v434_v55 = vadd.f32 %v433_v45, %v432_v39  ;;  %v532_v58 = vsel %vm526_vm6, %v339_v47, 0.0  ;;  %v1173_v59 = vpop.eup %1010  ;;  %v1186_v13 = vadd.f32 1e-12, %v368_v0  ;;  %vm388_vm1 = vweird.f32 %v1163_v50 }
  0xb7   : > { %v533_v60 = vadd.f32 %v532_v58, %v531_v51  ;;  %v551_v61 = vpack.c.bf16 %v303_v52, %v301_v31  ;;  %v552_v2 = vpack.c.bf16 %v322_v53, %v320_v36  ;;  %v373_v3 = vmul.f32 %v1173_v59, %v1158_v28  ;;  %v1188_v14 = vpop.eup %1012 }
  0xb8   : > { %v1175_v1 = vadd.f32 1e-12, %v434_v55  ;;  %v537_v63 = vsel %vm536_vm7, %v303_v52, 0.0  ;;  %v538_v7 = vsel %vm536_vm7, %v322_v53, 0.0  ;;  %vm379_vm12 = vweird.f32 %v1173_v59 }
  0xb9   : > { %534 = vadd.xlane.f32.xlu0 %v533_v60  ;;  %v588_v4 = vrot.slane %v551_v61, 3  ;;  %v591_v8 = vrot.slane %v552_v2, 3  ;;  %v374_v9 = vmul.f32 %v1173_v59, %v373_v3  ;;  %v539_v21 = vadd.f32 %v538_v7, %v537_v63  ;;  %vm380_vm14 = vmor %vm378_vm13, %vm379_vm12 }
  0xba   : > { %1016 = vrsqrt.f32 %v1175_v1  ;;  %v383_v22 = vmul.f32 %v1188_v14, %v1163_v50  ;;  %vm389_vm15 = vweird.f32 %v1188_v14  ;;  %vm444_vm10 = vweird.f32 %v1167_v54 }
  0xbb   : > { %v340_v11 = vpop.f32.mrf.mxu2  ;;  %615 = vmatpush.bf16.xpose.msrb.mxu0 %v588_v4  ;;  %628 = vmatpush.bf16.xpose.msra.mxu3 %v591_v8  ;;  %v375_v18 = vmul.f32 0.5, %v374_v9  ;;  %1018 = vrsqrt.f32 %v1184_v12  ;;  %v589_v39 = vsel %vm586_vm9, %v587_v10, %v588_v4  ;;  %v592_v41 = vsel %vm586_vm9, %v590_v16, %v591_v8  ;;  %v1009_v8 = vld [vmem:[#allocation2] ss:$0 sm:$0xff] }
  0xbc   : > { %v341_v17 = vadd.f32 %v340_v11, %v1123_v30  ;;  %1020 = vrsqrt.f32 %v1186_v13  ;;  %v1200_v30 = vpop.eup %1014  ;;  %v384_v29 = vmul.f32 %v1188_v14, %v383_v22 }
  0xbd   : > { %v376_v25 = vsub.f32 1.5, %v375_v18  ;;  %v439_v36 = vmul.f32 %v1200_v30, %v1167_v54  ;;  %vm445_vm3 = vweird.f32 %v1200_v30 }
  0xbe   : > { %v553_v23 = vpack.c.bf16 %v341_v17, %v339_v47  ;;  %v541_v24 = vsel %vm540_vm8, %v341_v17, 0.0  ;;  %v385_v40 = vmul.f32 0.5, %v384_v29  ;;  %vm390_vm8 = vmor %vm388_vm1, %vm389_vm15  ;;  %vm454_vm1 = vweird.f32 %v1184_v12 }
  0xbf   : > { %v542_v26 = vadd.f32 %v541_v24, %v539_v21  ;;  %v377_v33 = vmul.f32 %v1173_v59, %v376_v25  ;;  %v440_v28 = vmul.f32 %v1200_v30, %v439_v36  ;;  %vm446_vm12 = vmor %vm444_vm10, %vm445_vm3 }
  0xc0   : > { %v1206_v31 = vpop.eup %1016  ;;  %v594_v32 = vrot.slane %v553_v23, 3  ;;  %v386_v47 = vsub.f32 1.5, %v385_v40 }
  0xc1   : > { %v459_v37 = vmul.f32 %v1206_v31, %v1175_v1  ;;  %543 = vadd.xlane.f32.xlu1 %v542_v26  ;;  %v381_v42 = vsel %vm380_vm14, %v1173_v59, %v377_v33  ;;  %v1221_v43 = vpop.eup %1018  ;;  %v441_v49 = vmul.f32 0.5, %v440_v28  ;;  %vm465_vm4 = vweird.f32 %v1206_v31 }
  0xc2   : > { %v607_v45 = vsel %vm526_vm6, %v594_v32, 0  ;;  %v1226_v46 = vmul.f32 %v381_v42, %v1125_v34  ;;  %v1021_v48 = vpop.eup %1020  ;;  %v449_v51 = vmul.f32 %v1221_v43, %v1184_v12  ;;  %v387_v55 = vmul.f32 %v1188_v14, %v386_v47 }
  0xc3   : > { %v460_v44 = vmul.f32 %v1206_v31, %v459_v37  ;;  %616 = vmatpush.bf16.xpose.msrb.mxu0 %v589_v39  ;;  %629 = vmatpush.bf16.xpose.msra.mxu3 %v592_v41  ;;  %v393_v57 = vmul.f32 %v1021_v48, %v1186_v13  ;;  %v595_v50 = vsel %vm586_vm9, %v593_v38, %v594_v32  ;;  %v442_v58 = vsub.f32 1.5, %v441_v49 }
  0xc4   : > { %v649_v53 = vpack.c.bf16 %v1226_v46, %v1226_v46  ;;  %v450_v59 = vmul.f32 %v1221_v43, %v449_v51  ;;  %v391_v62 = vsel %vm390_vm8, %v1188_v14, %v387_v55  ;;  %vm464_vm9 = vweird.f32 %v1175_v1 }
  0xc5   : > { %v461_v52 = vmul.f32 0.5, %v460_v44  ;;  %v394_v0 = vmul.f32 %v1021_v48, %v393_v57  ;;  %v1244_v2 = vmul.f32 %v391_v62, %v1127_v35  ;;  %v443_v3 = vmul.f32 %v1200_v30, %v442_v58  ;;  %vm466_vm13 = vmor %vm464_vm9, %vm465_vm4 }
  0xc6   : > { %v680_v61 = vand.u32 %v1203_v27, %v649_v53  ;;  %v451_v63 = vmul.f32 0.5, %v450_v59  ;;  %v604_v7 = vsel %vm526_vm6, %v595_v50, 0  ;;  %vm455_vm14 = vweird.f32 %v1221_v43 }
  0xc7   : > { %v462_v60 = vsub.f32 1.5, %v461_v52  ;;  %v395_v9 = vmul.f32 0.5, %v394_v0  ;;  %v650_v10 = vpack.c.bf16 %v1244_v2, %v1244_v2  ;;  %v447_v54 = vsel %vm446_vm12, %v1200_v30, %v443_v3  ;;  %vm456_vm3 = vmor %vm454_vm1, %vm455_vm14 }
  0xc8   : > { %695 = vmatpush.bf16.msrb.mxu1 %v680_v61  ;;  %v452_v11 = vsub.f32 1.5, %v451_v63  ;;  %v468_v14 = vmul.f32 %v447_v54, %v1125_v34  ;;  %vm399_vm15 = vweird.f32 %v1021_v48  ;;  %vm398_vm4 = vweird.f32 %v1186_v13 }
  0xc9   : > { %v463_v4 = vmul.f32 %v1206_v31, %v462_v60  ;;  %v396_v15 = vsub.f32 1.5, %v395_v9  ;;  %v683_v18 = vand.u32 %v1203_v27, %v650_v10  ;;  %vm475_vm8 = vcmask 521219   ;;  %vm400_vm10 = vmor %vm398_vm4, %vm399_vm15 }
  0xca   : > { %v453_v19 = vmul.f32 %v1221_v43, %v452_v11  ;;  %v545_v20 = vpack.c.bf16 %v468_v14, %v468_v14  ;;  %v472_v22 = vsel %vm471_vm0, %v468_v14, 0.0 }
  0xcb   : > { %641 = vmatpush.bf16.xpose.msra.mxu0 %v607_v45  ;;  %v467_v1 = vsel %vm466_vm13, %v1206_v31, %v463_v4  ;;  %v397_v21 = vmul.f32 %v1021_v48, %v396_v15  ;;  %713 = vmatpush.bf16.msrb.mxu2 %v683_v18 }
  0xcc   : > { %v470_v17 = vmul.f32 %v467_v1, %v1141_v56  ;;  %v457_v34 = vsel %vm456_vm3, %v1221_v43, %v453_v19  ;;  %v555_v23 = vshrl.u32 %v545_v20, 16  ;;  %v558_v24 = vshll.u32 %v545_v20, 16 }
  0xcd   : > { %815 = vperm.xlu0 %1007, %v1009_v8   ;;  %v469_v25 = vmul.f32 %v457_v34, %v1127_v35  ;;  %v401_v30 = vsel %vm400_vm10, %v1021_v48, %v397_v21 }
  0xce   : > { %v404_v12 = vmul.f32 %v401_v30, %v1141_v56  ;;  %v476_v16 = vsel %vm475_vm8, %v470_v17, 0.0  ;;  %v557_v26 = vrot.slane %v555_v23, 1  ;;  %v560_v29 = vrot.slane %v558_v24, 2 }
  0xcf   : > { %v546_v31 = vpack.c.bf16 %v469_v25, %v469_v25  ;;  %v473_v13 = vsel %vm471_vm0, %v469_v25, 0.0  ;;  %v547_v42 = vpack.c.bf16 %v470_v17, %v470_v17  ;;  %vm668_vm0 = vcmask 23552  }
  0xd0   : > { %v651_v32 = vpack.c.bf16 %v404_v12, %v404_v12  ;;  %v474_v33 = vadd.f32 %v473_v13, %v472_v22  ;;  %v561_v36 = vor.u32 %v560_v29, %v557_v26 }
  0xd1   : > { %v563_v37 = vshrl.u32 %v546_v31, 16  ;;  %v566_v38 = vshll.u32 %v546_v31, 16  ;;  %v571_v28 = vshrl.u32 %v547_v42, 16  ;;  %v574_v43 = vshll.u32 %v547_v42, 16 }
  0xd2   : > { %v686_v39 = vand.u32 %v1203_v27, %v651_v32  ;;  %v477_v40 = vadd.f32 %v476_v16, %v474_v33  ;;  %617 = vmatmul.bf16.vlgmr.msrb.gmra.mxu0 %v561_v36 }
  0xd3   : > { %642 = vmatpush.bf16.xpose.msra.mxu0 %v604_v7  ;;  %v565_v41 = vrot.slane %v563_v37, 1  ;;  %v568_v35 = vrot.slane %v566_v38, 2  ;;  %v573_v44 = vrot.slane %v571_v28, 1  ;;  %v576_v45 = vrot.slane %v574_v43, 2 }
  0xd4   : > { %731 = vmatpush.bf16.msrb.mxu3 %v686_v39 }
  0xd5   : > { %v569_v56 = vor.u32 %v568_v35, %v565_v41  ;;  %v577_v47 = vor.u32 %v576_v45, %v573_v44 }
  0xd7   : > { %630 = vmatmul.bf16.vlgmr.msra.gmra.mxu3 %v569_v56 }
  0xe2   : > { %982 = vmatmul.msk.bf16.vlgmr.msra.gmra.mxu0 %vm526_vm6, %v577_v47 }
 0x11d   : > { %v524_v25 = vpop.xlane.xlu0 %523 }
 0x124   : > { %v530_v35 = vpop.xlane.xlu1 %529 }
 0x12c   : > { %v1278_v33 = vpop.xlane.xlu0 %534 }
 0x14f   : > { %v618_v48 = vpop.f32.mrf.mxu0 }
 0x157   : > { %v620_v49 = vpop.f32.mrf.mxu0 }
 0x15a   : > { %v631_v51 = vpop.f32.mrf.mxu3 }
 0x15b   : > { %v632_v52 = vadd.f32 %v631_v51, %v618_v48 }
 0x15f   : > { %v644_v27 = vpop.f32.mrf.mxu0 }
 0x160   : > { %v645_v53 = vadd.f32 %v644_v27, %v632_v52  ;;  %v1286_v27 = vpop.permute.xlu0 %815 }
 0x162   : > { %v633_v55 = vpop.f32.mrf.mxu3  ;;  %v648_v57 = vpack.c.bf16 %v645_v53, %v645_v53 }
 0x164   : > { %652 = vxpose.xlu2.c.b16.start.end [1/1] (short) (narrow) %v648_v57, 32 }
 0x167   : > { %v646_v50 = vpop.f32.mrf.mxu0 }
 0x1e5   : > { %478 = vadd.xlane.f32.xlu2 %v477_v40 }
 0x205   : > { %v660_v58 = vpop.trf.xlu2 }
 0x206   : > { %983 = vmatmul.msk.bf16.vlgmr.msrb.gmra.mxu1 %vm668_vm0, %v660_v58  ;;  %985 = vmatmul.msk.bf16.vlgmr.msrb.gmra.mxu2 %vm668_vm0, %v660_v58 }
 0x207   : > { %987 = vmatmul.msk.bf16.vlgmr.msrb.gmra.mxu3 %vm668_vm0, %v660_v58 }
 0x215   : > { %v661_v59 = vpop.trf.xlu2 }
 0x216   : > { %984 = vmatmul.msk.bf16.gmra.mxu1 %vm668_vm0, %v661_v59  ;;  %986 = vmatmul.msk.bf16.gmra.mxu2 %vm668_vm0, %v661_v59 }
 0x217   : > { %988 = vmatmul.msk.bf16.gmra.mxu3 %vm668_vm0, %v661_v59 }
 0x258   : > { %v479_v60 = vpop.xlane.xlu2 %478 }
 0x259   : > { %v481_v61 = vrot.slane %v479_v60, 3 }
 0x25b   : > { %v483_v62 = vmul.f32 %v481_v61, %v1226_v46  ;;  %v484_v0 = vmul.f32 %v481_v61, %v1244_v2  ;;  %v485_v3 = vmul.f32 %v481_v61, %v404_v12 }
 0x25d   : > { %v486_v63 = vsel %vm346_vm2, %v483_v62, 0.0  ;;  %v493_v4 = vsel %vm346_vm2, %v484_v0, 0.0  ;;  %v500_v8 = vsel %vm361_vm5, %v485_v3, 0.0  ;;  %v544_v0 = vpop.xlane.xlu1 %543  ;;  %vm888_vm2 = vcmask 519168  }
 0x25e   : > { %v487_v7 = vrot.slane %v486_v63, 4  ;;  %v494_v9 = vrot.slane %v493_v4, 4  ;;  %v501_v10 = vrot.slane %v500_v8, 4 }
 0x260   : > { %v488_v54 = vadd.f32 %v487_v7, %v486_v63  ;;  %v495_v11 = vadd.f32 %v494_v9, %v493_v4  ;;  %v502_v1 = vadd.f32 %v501_v10, %v500_v8  ;;  %v201_v63 = vld [vmem:[%s1088_s25] sm:$0xff]  ;;  %v202_v10 = vld [vmem:[%s1088_s25 + $0x8] sm:$0xf] }
 0x262   : > { %v489_v14 = vrot.slane %v488_v54, 2  ;;  %v496_v15 = vrot.slane %v495_v11, 2  ;;  %v503_v17 = vrot.slane %v502_v1, 2 }
 0x264   : > { %v490_v18 = vadd.f32 %v489_v14, %v488_v54  ;;  %v497_v46 = vadd.f32 %v496_v15, %v495_v11  ;;  %v504_v19 = vadd.f32 %v503_v17, %v502_v1 }
 0x266   : > { %v491_v2 = vrot.slane %v490_v18, 1  ;;  %v498_v20 = vrot.slane %v497_v46, 1  ;;  %v505_v21 = vrot.slane %v504_v19, 1 }
 0x268   : > { %v492_v34 = vadd.f32 %v491_v2, %v490_v18  ;;  %v499_v22 = vadd.f32 %v498_v20, %v497_v46  ;;  %v506_v23 = vadd.f32 %v505_v21, %v504_v19  ;;  %v802_v18 = vunpack.c.l.bf16 %v201_v63 }
 0x269   : > { %v803_v46 = vunpack.c.h.bf16 %v201_v63 }
 0x26a   : > { %v507_v24 = vadd.f32 320.0, %v492_v34  ;;  %v508_v30 = vadd.f32 320.0, %v499_v22  ;;  %v509_v12 = vadd.f32 320.0, %v506_v23  ;;  %v804_v34 = vunpack.c.l.bf16 %v202_v10 }
 0x26c   : > { %v510_v26 = vadd.f32 1e-06, %v507_v24  ;;  %v511_v29 = vadd.f32 1e-06, %v508_v30  ;;  %v512_v31 = vadd.f32 1e-06, %v509_v12 }
 0x26e   : > { %1022 = vrcp.f32 %v510_v26 }
 0x26f   : > { %1024 = vrcp.f32 %v511_v29 }
 0x270   : > { %1026 = vrcp.f32 %v512_v31 }
 0x274   : > { %v1023_v56 = vpop.eup %1022 }
 0x275   : > { %v1281_v47 = vpop.eup %1024 }
 0x276   : > { %v1283_v48 = vpop.eup %1026 }
 0x283   : > { %v697_v16 = vpop.f32.mrf.mxu1 }
 0x284   : > { %v751_v13 = vrot.slane %v697_v16, 2 }
 0x286   : > { %v778_v38 = vadd.f32 %v751_v13, %v524_v25 }
 0x288   : > { %v790_v44 = vmul.f32 %v1023_v56, %v778_v38 }
 0x289   : > { %v715_v32 = vpop.f32.mrf.mxu2 }
 0x28a   : > { %v752_v36 = vrot.slane %v715_v32, 2  ;;  %v733_v37 = vpop.f32.mrf.mxu3  ;;  %v818_v50 = vmul.f32 %v1286_v27, %v790_v44 }
 0x28b   : > { %v753_v39 = vrot.slane %v733_v37, 2  ;;  %v699_v40 = vpop.f32.mrf.mxu1 }
 0x28c   : > { %v754_v41 = vrot.slane %v699_v40, 2  ;;  %v779_v42 = vadd.f32 %v752_v36, %v524_v25  ;;  %v842_v14 = vrot.slane %v818_v50, 6 }
 0x28d   : > { %v780_v28 = vadd.f32 %v753_v39, %v524_v25 }
 0x28e   : > { %v755_v43 = vsel %vm536_vm7, %v751_v13, %v754_v41  ;;  %v791_v49 = vmul.f32 %v1281_v47, %v779_v42 }
 0x28f   : > { %v781_v45 = vadd.f32 %v755_v43, %v530_v35  ;;  %v792_v53 = vmul.f32 %v1283_v48, %v780_v28 }
 0x290   : > { %v819_v3 = vmul.f32 %v1286_v27, %v791_v49 }
 0x291   : > { %v793_v51 = vmul.f32 %v1023_v56, %v781_v45  ;;  %v717_v52 = vpop.f32.mrf.mxu2  ;;  %v820_v9 = vmul.f32 %v1286_v27, %v792_v53  ;;  %v808_v45 = vunpack.c.l.bf16 %v1094_v5 }
 0x292   : > { %v756_v55 = vrot.slane %v717_v52, 2  ;;  %v735_v57 = vpop.f32.mrf.mxu3  ;;  %v845_v24 = vrot.slane %v819_v3, 6 }
 0x293   : > { %v1291_v58 = vmul.f32 %v1286_v27, %v793_v51  ;;  %v758_v59 = vrot.slane %v735_v57, 2  ;;  %v702_v60 = vpop.f32.mrf.mxu1  ;;  %v848_v25 = vrot.slane %v820_v9, 6  ;;  %v203_v51 = vld [vmem:[%s1088_s25 + $0xc] sm:$0xff] }
 0x294   : > { %v757_v61 = vsel %vm536_vm7, %v752_v36, %v756_v55  ;;  %v760_v62 = vrot.slane %v702_v60, 2  ;;  %v805_v3 = vunpack.c.l.bf16 %v203_v51 }
 0x295   : > { %v843_v4 = vrot.slane %v1291_v58, 6  ;;  %v782_v7 = vadd.f32 %v757_v61, %v530_v35  ;;  %v759_v8 = vsel %vm536_vm7, %v753_v39, %v758_v59 }
 0x296   : > { %v783_v54 = vadd.f32 %v759_v8, %v530_v35  ;;  %v761_v11 = vsel %vm536_vm7, %v754_v41, %v760_v62  ;;  %v787_v1 = vadd.f32 %v760_v62, %v544_v0 }
 0x297   : > { %v794_v15 = vmul.f32 %v1281_v47, %v782_v7  ;;  %v784_v17 = vadd.f32 %v761_v11, %v1278_v33  ;;  %v844_v20 = vsel %vm676_vm11, %v842_v14, %v843_v4 }
 0x298   : > { %v795_v19 = vmul.f32 %v1283_v48, %v783_v54  ;;  %v799_v2 = vmul.f32 %v1023_v56, %v787_v1  ;;  %v872_v36 = vadd.f32 %v844_v20, %v802_v18 }
 0x299   : > { %v822_v21 = vmul.f32 %v1286_v27, %v794_v15  ;;  %v796_v22 = vmul.f32 %v1023_v56, %v784_v17  ;;  %v720_v23 = vpop.f32.mrf.mxu2 }
 0x29a   : > { %v823_v30 = vmul.f32 %v1286_v27, %v795_v19  ;;  %v762_v12 = vrot.slane %v720_v23, 2  ;;  %v738_v16 = vpop.f32.mrf.mxu3  ;;  %v827_v31 = vmul.f32 %v1286_v27, %v799_v2 }
 0x29b   : > { %v846_v26 = vrot.slane %v822_v21, 6  ;;  %v824_v29 = vmul.f32 %v1286_v27, %v796_v22  ;;  %v764_v13 = vrot.slane %v738_v16, 2  ;;  %v704_v32 = vpop.f32.mrf.mxu1 }
 0x29c   : > { %v849_v37 = vrot.slane %v823_v30, 6  ;;  %v763_v38 = vsel %vm536_vm7, %v756_v55, %v762_v12  ;;  %v788_v39 = vadd.f32 %v762_v12, %v544_v0  ;;  %v857_v52 = vrot.slane %v827_v31, 6 }
 0x29d   : > { %v847_v40 = vsel %vm676_vm11, %v845_v24, %v846_v26  ;;  %v851_v41 = vrot.slane %v824_v29, 6  ;;  %v785_v35 = vadd.f32 %v763_v38, %v1278_v33  ;;  %v765_v42 = vsel %vm536_vm7, %v758_v59, %v764_v13  ;;  %v204_v59 = vld [vmem:[%s1088_s25 + $0x14] sm:$0xf] }
 0x29e   : > { %v873_v56 = vadd.f32 %v847_v40, %v803_v46  ;;  %v850_v28 = vsel %vm676_vm11, %v848_v25, %v849_v37  ;;  %v800_v43 = vmul.f32 %v1281_v47, %v788_v39  ;;  %v786_v44 = vadd.f32 %v765_v42, %v1278_v33 }
 0x29f   : > { %v874_v49 = vadd.f32 %v850_v28, %v804_v34  ;;  %v797_v53 = vmul.f32 %v1281_v47, %v785_v35  ;;  %v809_v55 = vunpack.c.h.bf16 %v1094_v5  ;;  %v789_v60 = vadd.f32 %v764_v13, %v544_v0 }
 0x2a0   : > { %v881_v57 = vpack.c.bf16 %v873_v56, %v872_v36  ;;  %v828_v50 = vmul.f32 %v1286_v27, %v800_v43  ;;  %v798_v61 = vmul.f32 %v1283_v48, %v786_v44  ;;  %v852_v63 = vsel %vm676_vm11, %v843_v4, %v851_v41 }
 0x2a1   : > { %v882_v33 = vpack.c.bf16 %v874_v49, %v874_v49  ;;  %v825_v58 = vmul.f32 %v1286_v27, %v797_v53  ;;  %v722_v62 = vpop.f32.mrf.mxu2  ;;  %v806_v47 = vunpack.c.h.bf16 %v203_v51  ;;  %v858_v8 = vsel %vm676_vm11, %v851_v41, %v857_v52 }
 0x2a2   : > { %887 = vst [vmem:[%s1322_s12] sm:$0xff] %v881_v57  ;;  %v859_v7 = vrot.slane %v828_v50, 6  ;;  %v740_v5 = vpop.f32.mrf.mxu3  ;;  %v801_v10 = vmul.f32 %v1283_v48, %v789_v60  ;;  %v826_v54 = vmul.f32 %v1286_v27, %v798_v61  ;;  %v810_v0 = vunpack.c.l.bf16 %v1097_v6 }
 0x2a3   : > { %v853_v9 = vrot.slane %v825_v58, 6  ;;  %889 = vst.msk [vmem:[%s1322_s12 + $0x8] sm:$0xf] %vm888_vm2, %v882_v33  ;;  %v807_v11 = vunpack.c.l.bf16 %v204_v59  ;;  %v875_v17 = vadd.f32 %v852_v63, %v805_v3  ;;  %v878_v48 = vadd.f32 %v858_v8, %v808_v45 }
 0x2a4   : > { %v829_v14 = vmul.f32 %v1286_v27, %v801_v10  ;;  %v855_v15 = vrot.slane %v826_v54, 6 }
 0x2a5   : > { %v854_v1 = vsel %vm676_vm11, %v846_v26, %v853_v9  ;;  %v860_v4 = vsel %vm676_vm11, %v853_v9, %v859_v7 }
 0x2a6   : > { %v876_v18 = vadd.f32 %v854_v1, %v806_v47  ;;  %v879_v46 = vadd.f32 %v860_v4, %v809_v55  ;;  %v856_v19 = vsel %vm676_vm11, %v849_v37, %v855_v15  ;;  %v861_v2 = vrot.slane %v829_v14, 6 }
 0x2a7   : > { %v877_v21 = vadd.f32 %v856_v19, %v807_v11 }
 0x2a8   : > { %v883_v6 = vpack.c.bf16 %v876_v18, %v875_v17  ;;  %v885_v20 = vpack.c.bf16 %v879_v46, %v878_v48  ;;  %v862_v34 = vsel %vm676_vm11, %v855_v15, %v861_v2 }
 0x2a9   : > { %v880_v22 = vadd.f32 %v862_v34, %v810_v0  ;;  %v884_v23 = vpack.c.bf16 %v877_v21, %v877_v21 }
 0x2aa   : > { %890 = vst [vmem:[%s1322_s12 + $0xc] sm:$0xff] %v883_v6 }
 0x2ab   : > { %892 = vst [vmem:[%s1322_s12 + $0x18] sm:$0xff] %v885_v20  ;;  %v886_v27 = vpack.c.bf16 %v880_v22, %v880_v22 }
 0x2ac   : > { %891 = vst.msk [vmem:[%s1322_s12 + $0x14] sm:$0xf] %vm888_vm2, %v884_v23 }
 0x2ad   : > { %893 = vst.msk [vmem:[%s1322_s12 + $0x20] sm:$0xf] %vm888_vm2, %v886_v27 }
 0x2ae PF: > { %s16_s17 = sadd.s32 1, %s1034_s17  }
 0x2af   : > { %p13_p4 = scmp.ge.s32.totalorder %s16_s17, 4  }
 0x2b1   :  { %15 = sbr.rel (!%p13_p4) target bundleno = 3 (0x3), region = 66 }

// kernel: ddcd_lam_forward.12
= control target key start
LH: loop header
LB: loop body
LE: loop exit
PB: predicated region body
PF: predicated region fallthrough
CT: control target
= control target key end

     0   :  { %s1264_s11 = smov 0   ;;  %s1860_s0 = inlined_call_operand.vmem [shape: bf16[2,24,320], index: 0, kind: input, shape index: {}]   ;;  %s1861_s1 = inlined_call_operand.<no memory space> [shape: f32[1,1], index: 1, kind: input, shape index: {}]   ;;  %s1862_s2 = inlined_call_operand.vmem [shape: bf16[2,24,320], index: 2, kind: output, shape index: {}]  }
   0x1   :  { %v7_v0 = vstv %s1861_s1 }
   0x2   :  { %8 = vst [vmem:[#allocation2] sm:$0x1] %v7_v0 }
   0x3 LB: > { %s1123_s12 = sadd.s32 4294967295, %s1243_s11   ;;  %p1127_p0 = scmp.ge.s32.totalorder %s1243_s11, 1  ;;  %s1243_s11 = sphi %s1264_s11, %s14_s11  }
   0x4   : > { %p114_p1 = scmp.lt.s32.totalorder %s1243_s11, 3 }
   0x6   : > { %p115_p2 = pnand %p1127_p0, %p114_p1 }
   0x8   : > { %118 = sbr.rel (%p115_p2) target bundleno = 1158 (0x486), region = 28 }
   0xd   : > { %p136_p3 = scmp.lt.s32.totalorder %s1123_s12, 1  ;;  %vm172_vm0 = vcmask 523264   ;;  %vm447_vm10 = vcmask 1043456   ;;  %vm386_vm11 = vcmask 195584   ;;  %vm1062_vm12 = vcmask 519168  }
   0xf   : > { %s2001_s12 = smov (!%p136_p3, %s1123_s12), 1 }
  0x10   : > { %s1213_s1 = smul.u32 36, %s2001_s12 }
  0x12   : > { %s1280_s15 = scalar_lea.vmem %s1860_s0, %s1213_s1  ;;  %s1821_s18 = scalar_lea.vmem %s1862_s2, %s1213_s1 }
  0x13   : > { %v147_v1 = vld [vmem:[%s1280_s15] sm:$0xff]  ;;  %v148_v2 = vld [vmem:[%s1280_s15 + $0x8] sm:$0xf]  ;;  %v149_v3 = vld [vmem:[%s1280_s15 + $0xc] sm:$0xff] }
  0x14   : > { %v1285_v4 = vunpack.c.l.bf16 %v147_v1  ;;  %v1287_v5 = vunpack.c.h.bf16 %v147_v1  ;;  %v1289_v6 = vunpack.c.l.bf16 %v148_v2  ;;  %v150_v7 = vld [vmem:[%s1280_s15 + $0x14] sm:$0xf]  ;;  %v1292_v8 = vunpack.c.l.bf16 %v149_v3  ;;  %v1295_v9 = vld [vmem:[%s1280_s15 + $0x18] sm:$0xff]  ;;  %v1298_v10 = vld [vmem:[%s1280_s15 + $0x20] sm:$0xf] }
  0x15   : > { %v1300_v11 = vunpack.c.h.bf16 %v149_v3  ;;  %v1302_v12 = vunpack.c.l.bf16 %v150_v7  ;;  %v1305_v13 = vunpack.c.l.bf16 %v1295_v9  ;;  %v1308_v14 = vunpack.c.h.bf16 %v1295_v9 }
  0x16   : > { %1902 = vst [vmem:[#allocation3_spill] sm:$0xff] %v1285_v4  ;;  %v162_v15 = vmul.f32 %v1285_v4, %v1285_v4  ;;  %v163_v16 = vmul.f32 %v1287_v5, %v1287_v5  ;;  %v164_v17 = vmul.f32 %v1289_v6, %v1289_v6  ;;  %v165_v18 = vmul.f32 %v1292_v8, %v1292_v8 }
  0x17   : > { %1903 = vst [vmem:[#allocation4_spill] sm:$0xff] %v1287_v5  ;;  %v1319_v19 = vunpack.c.l.bf16 %v1298_v10  ;;  %v168_v20 = vmul.f32 %v1305_v13, %v1305_v13  ;;  %v166_v23 = vmul.f32 %v1300_v11, %v1300_v11  ;;  %v169_v24 = vmul.f32 %v1308_v14, %v1308_v14 }
  0x18   : > { %1904 = vst [vmem:[#allocation5_spill] sm:$0xff] %v1289_v6  ;;  %v171_v21 = vadd.f32 %v163_v16, %v162_v15  ;;  %v173_v22 = vsel %vm172_vm0, %v164_v17, 0.0  ;;  %v167_v25 = vmul.f32 %v1302_v12, %v1302_v12 }
  0x19   : > { %1905 = vst [vmem:[#allocation6_spill] sm:$0xff] %v1292_v8  ;;  %v170_v26 = vmul.f32 %v1319_v19, %v1319_v19  ;;  %v182_v28 = vadd.f32 %v169_v24, %v168_v20  ;;  %v177_v30 = vadd.f32 %v166_v23, %v165_v18 }
  0x1a   : > { %1906 = vst [vmem:[#allocation7_spill] sm:$0xff] %v1300_v11  ;;  %v174_v27 = vadd.f32 %v173_v22, %v171_v21  ;;  %v178_v32 = vsel %vm172_vm0, %v167_v25, 0.0 }
  0x1b   : > { %1907 = vst [vmem:[#allocation8_spill] sm:$0xff] %v1302_v12  ;;  %v183_v29 = vsel %vm172_vm0, %v170_v26, 0.0  ;;  %v179_v33 = vadd.f32 %v178_v32, %v177_v30 }
  0x1c   : > { %1908 = vst [vmem:[#allocation9_spill] sm:$0xff] %v1305_v13  ;;  %175 = vadd.xlane.f32.xlu0 %v174_v27  ;;  %v184_v31 = vadd.f32 %v183_v29, %v182_v28 }
  0x1d   : > { %1909 = vst [vmem:[#allocation10_spill] sm:$0xff] %v1308_v14 }
  0x1e   : > { %1910 = vst [vmem:[#allocation11_spill] sm:$0xff] %v1319_v19  ;;  %185 = vadd.xlane.f32.xlu1 %v184_v31 }
  0x24   : > { %180 = vadd.xlane.f32.xlu0 %v179_v33 }
  0x8f   : > { %v176_v34 = vpop.xlane.xlu0 %175 }
  0x90   : > { %v187_v35 = vadd.f32 1e-12, %v176_v34 }
  0x91   : > { %v186_v36 = vpop.xlane.xlu1 %185 }
  0x92   : > { %1225 = vrsqrt.f32 %v187_v35  ;;  %v189_v37 = vadd.f32 1e-12, %v186_v36  ;;  %vm196_vm5 = vweird.f32 %v187_v35 }
  0x94   : > { %1227 = vrsqrt.f32 %v189_v37  ;;  %vm216_vm1 = vweird.f32 %v189_v37 }
  0x97   : > { %v181_v38 = vpop.xlane.xlu0 %180 }
  0x98   : > { %v1226_v39 = vpop.eup %1225  ;;  %v188_v40 = vadd.f32 1e-12, %v181_v38 }
  0x99   : > { %v191_v41 = vmul.f32 %v1226_v39, %v187_v35  ;;  %vm197_vm3 = vweird.f32 %v1226_v39 }
  0x9a   : > { %v1228_v42 = vpop.eup %1227  ;;  %1229 = vrsqrt.f32 %v188_v40  ;;  %vm198_vm6 = vmor %vm196_vm5, %vm197_vm3  ;;  %vm206_vm8 = vweird.f32 %v188_v40 }
  0x9b   : > { %v192_v43 = vmul.f32 %v1226_v39, %v191_v41  ;;  %v211_v44 = vmul.f32 %v1228_v42, %v189_v37  ;;  %vm217_vm2 = vweird.f32 %v1228_v42 }
  0x9c   : > { %vm218_vm4 = vmor %vm216_vm1, %vm217_vm2 }
  0x9d   : > { %v193_v45 = vmul.f32 0.5, %v192_v43  ;;  %v212_v46 = vmul.f32 %v1228_v42, %v211_v44 }
  0x9f   : > { %v194_v47 = vsub.f32 1.5, %v193_v45  ;;  %v213_v48 = vmul.f32 0.5, %v212_v46 }
  0xa0   : > { %v1230_v49 = vpop.eup %1229 }
  0xa1   : > { %v201_v50 = vmul.f32 %v1230_v49, %v188_v40  ;;  %v214_v51 = vsub.f32 1.5, %v213_v48  ;;  %v195_v52 = vmul.f32 %v1226_v39, %v194_v47  ;;  %vm207_vm7 = vweird.f32 %v1230_v49 }
  0xa2   : > { %vm208_vm9 = vmor %vm206_vm8, %vm207_vm7 }
  0xa3   : > { %v202_v53 = vmul.f32 %v1230_v49, %v201_v50  ;;  %v215_v54 = vmul.f32 %v1228_v42, %v214_v51  ;;  %v199_v56 = vsel %vm198_vm6, %v1226_v39, %v195_v52 }
  0xa4   : > { %v222_v59 = vmul.f32 %v199_v56, %v1289_v6  ;;  %v220_v62 = vmul.f32 %v199_v56, %v1285_v4  ;;  %v221_v63 = vmul.f32 %v199_v56, %v1287_v5 }
  0xa5   : > { %v203_v55 = vmul.f32 0.5, %v202_v53  ;;  %v219_v57 = vsel %vm218_vm4, %v1228_v42, %v215_v54 }
  0xa6   : > { %v228_v61 = vmul.f32 %v219_v57, %v1319_v19  ;;  %v226_v1 = vmul.f32 %v219_v57, %v1305_v13  ;;  %v227_v15 = vmul.f32 %v219_v57, %v1308_v14  ;;  %v245_v16 = vsel %vm172_vm0, %v222_v59, 0.0 }
  0xa7   : > { %v204_v58 = vsub.f32 1.5, %v203_v55 }
  0xa8   : > { %v248_v17 = vsel %vm172_vm0, %v228_v61, 0.0  ;;  %v1355_v47 = vpack.c.bf16 %v228_v61, %v228_v61  ;;  %v1357_v48 = vpack.c.bf16 %v226_v1, %v226_v1  ;;  %v1359_v51 = vpack.c.bf16 %v227_v15, %v227_v15 }
  0xa9   : > { %v205_v60 = vmul.f32 %v1230_v49, %v204_v58 }
  0xab   : > { %v209_v0 = vsel %vm208_vm9, %v1230_v49, %v205_v60 }
  0xac   : > { %v223_v2 = vmul.f32 %v209_v0, %v1292_v8  ;;  %v224_v3 = vmul.f32 %v209_v0, %v1300_v11  ;;  %v225_v7 = vmul.f32 %v209_v0, %v1302_v12 }
  0xae   : > { %v229_v18 = vadd.f32 %v223_v2, %v220_v62  ;;  %v237_v20 = vadd.f32 %v224_v3, %v221_v63  ;;  %v246_v21 = vsel %vm172_vm0, %v225_v7, 0.0  ;;  %v1346_v22 = vpack.c.bf16 %v225_v7, %v222_v59 }
  0xaf   : > { %v247_v23 = vadd.f32 %v246_v21, %v245_v16  ;;  %v1348_v24 = vpack.c.bf16 %v223_v2, %v220_v62  ;;  %v1350_v25 = vpack.c.bf16 %v224_v3, %v221_v63 }
  0xb0   : > { %v230_v26 = vadd.f32 %v229_v18, %v226_v1  ;;  %v238_v27 = vadd.f32 %v237_v20, %v227_v15  ;;  %346 = vxpose.xlu2.c.b16.start [1/2] (short) (narrow) %v1346_v22, 64  ;;  %v1132_v18 = vld [vmem:[%s1280_s15] sm:$0xf] }
  0xb1   : > { %322 = vxpose.binary.xlu1.c.b16.start [1/4] (short) %v1350_v25, %v1348_v24, 128  ;;  %v249_v28 = vadd.f32 %v248_v17, %v247_v23  ;;  %v374_v17 = vunpack.c.l.b16 %v1295_v9  ;;  %v1211_v23 = vld [vmem:[%s1280_s15 + $0x8] sm:$0xf0] }
  0xb2   : > { %v231_v29 = vrot.slane %v230_v26, 4  ;;  %v239_v30 = vrot.slane %v238_v27, 4 }
  0xb3   : > { %v250_v31 = vrot.slane %v249_v28, 4 }
  0xb4   : > { %v232_v32 = vadd.f32 %v231_v29, %v230_v26  ;;  %v240_v33 = vadd.f32 %v239_v30, %v238_v27  ;;  %v1210_v26 = vld [vmem:[%s1280_s15 + $0x4] sm:$0xf]  ;;  %v1134_v27 = vld [vmem:[%s1280_s15 + $0xc] sm:$0xf0]  ;;  %v1212_v29 = vld [vmem:[%s1280_s15 + $0x10] sm:$0xf0] }
  0xb5   : > { %v251_v34 = vadd.f32 %v250_v31, %v249_v28  ;;  %v1140_v28 = vld [vmem:[%s1280_s15 + $0x8] sm:$0xf] }
  0xb6   : > { %v233_v35 = vrot.slane %v232_v32, 2  ;;  %v241_v36 = vrot.slane %v240_v33, 2 }
  0xb7   : > { %v252_v37 = vrot.slane %v251_v34, 2 }
  0xb8   : > { %v234_v38 = vadd.f32 %v233_v35, %v232_v32  ;;  %v242_v39 = vadd.f32 %v241_v36, %v240_v33  ;;  %v1133_v33 = vor.u32 %v1211_v23, %v1132_v18 }
  0xb9   : > { %v253_v40 = vadd.f32 %v252_v37, %v251_v34  ;;  %v1137_v34 = vor.u32 %v1210_v26, %v1134_v27 }
  0xba   : > { %v235_v41 = vrot.slane %v234_v38, 1  ;;  %v243_v42 = vrot.slane %v242_v39, 1 }
  0xbb   : > { %v254_v43 = vrot.slane %v253_v40, 1 }
  0xbc   : > { %v236_v44 = vadd.f32 %v235_v41, %v234_v38  ;;  %v244_v45 = vadd.f32 %v243_v42, %v242_v39 }
  0xbd   : > { %v255_v46 = vadd.f32 %v254_v43, %v253_v40 }
  0xbe   : > { %v256_v49 = vmul.f32 %v236_v44, %v220_v62  ;;  %v257_v50 = vmul.f32 %v244_v45, %v221_v63  ;;  %v262_v53 = vmul.f32 %v236_v44, %v226_v1  ;;  %v263_v54 = vmul.f32 %v244_v45, %v227_v15 }
  0xbf   : > { %v258_v52 = vmul.f32 %v255_v46, %v222_v59  ;;  %v264_v56 = vmul.f32 %v255_v46, %v228_v61  ;;  %v259_v0 = vmul.f32 %v236_v44, %v223_v2  ;;  %v260_v62 = vmul.f32 %v244_v45, %v224_v3 }
  0xc0   : > { %347 = vxpose.xlu2.c.b16.end [2/2] (short) (narrow) %v1355_v47, 64  ;;  %v265_v55 = vadd.f32 %v257_v50, %v256_v49  ;;  %v275_v58 = vadd.f32 %v263_v54, %v262_v53  ;;  %v261_v59 = vmul.f32 %v255_v46, %v225_v7  ;;  %v375_v2 = vunpack.c.h.b16 %v1295_v9 }
  0xc1   : > { %323 = vxpose.binary.xlu1.c.b16.end [2/4] (short) %v1359_v51, %v1357_v48, 128  ;;  %v266_v57 = vsel %vm172_vm0, %v258_v52, 0.0  ;;  %v276_v63 = vsel %vm172_vm0, %v264_v56, 0.0  ;;  %v270_v61 = vadd.f32 %v260_v62, %v259_v0  ;;  %v376_v3 = vunpack.c.l.b16 %v1298_v10 }
  0xc2   : > { %v267_v60 = vadd.f32 %v266_v57, %v265_v55  ;;  %v277_v1 = vadd.f32 %v276_v63, %v275_v58  ;;  %v271_v15 = vsel %vm172_vm0, %v261_v59, 0.0  ;;  %v380_v7 = vpack.c.b16 %v374_v17, %v374_v17 }
  0xc3   : > { %v272_v16 = vadd.f32 %v271_v15, %v270_v61  ;;  %v381_v20 = vpack.c.b16 %v375_v2, %v375_v2  ;;  %v382_v21 = vpack.c.b16 %v376_v3, %v376_v3  ;;  %v1141_v9 = vor.u32 %v1212_v29, %v1140_v28 }
  0xc4   : > { %268 = vadd.xlane.f32.xlu0 %v267_v60  ;;  %v449_v30 = vsel %vm447_vm10, %v380_v7, 0 }
  0xc5   : > { %v452_v31 = vsel %vm447_vm10, %v381_v20, 0  ;;  %v455_v32 = vsel %vm447_vm10, %v382_v21, 0  ;;  %463 = vmatpush.bf16.msra.mxu0 %v449_v30 }
  0xc6   : > { %572 = vmatpush.bf16.msra.mxu1 %v452_v31  ;;  %681 = vmatpush.bf16.msra.mxu2 %v455_v32 }
  0xc9   : > { %464 = vmatpush.bf16.msra.mxu0 %v1133_v33 }
  0xca   : > { %573 = vmatpush.bf16.msra.mxu1 %v1137_v34  ;;  %682 = vmatpush.bf16.msra.mxu2 %v1141_v9 }
  0xcc   : > { %273 = vadd.xlane.f32.xlu0 %v272_v16 }
 0x151   : > { %278 = vadd.xlane.f32.xlu2 %v277_v1  ;;  %v354_v5 = vpop.trf.xlu2 }
 0x15d   : > { %v330_v10 = vpop.trf.xlu1 }
 0x15e   : > { %1142 = vmatmul.msk.bf16.vlgmr.msra.gmra.mxu0 %vm386_vm11, %v330_v10  ;;  %1162 = vmatmul.msk.bf16.vlgmr.msra.gmra.mxu1 %vm386_vm11, %v330_v10 }
 0x15f   : > { %1182 = vmatmul.msk.bf16.vlgmr.msra.gmra.mxu2 %vm386_vm11, %v330_v10 }
 0x165   : > { %v331_v35 = vpop.trf.xlu1 }
 0x16d   : > { %v332_v36 = vpop.trf.xlu1 }
 0x16e   : > { %1143 = vmatmul.msk.bf16.gmra.mxu0 %vm386_vm11, %v332_v36  ;;  %1163 = vmatmul.msk.bf16.gmra.mxu1 %vm386_vm11, %v332_v36 }
 0x16f   : > { %1183 = vmatmul.msk.bf16.gmra.mxu2 %vm386_vm11, %v332_v36 }
 0x175   : > { %v333_v37 = vpop.trf.xlu1 }
 0x17d   : > { %v334_v38 = vpop.trf.xlu1 }
 0x17e   : > { %1144 = vmatmul.msk.bf16.gmra.mxu0 %vm386_vm11, %v334_v38  ;;  %1164 = vmatmul.msk.bf16.gmra.mxu1 %vm386_vm11, %v334_v38 }
 0x17f   : > { %1184 = vmatmul.msk.bf16.gmra.mxu2 %vm386_vm11, %v334_v38 }
 0x185   : > { %v335_v39 = vpop.trf.xlu1 }
 0x18d   : > { %v336_v40 = vpop.trf.xlu1 }
 0x18e   : > { %1145 = vmatmul.msk.bf16.gmra.mxu0 %vm386_vm11, %v336_v40  ;;  %1165 = vmatmul.msk.bf16.gmra.mxu1 %vm386_vm11, %v336_v40 }
 0x18f   : > { %1185 = vmatmul.msk.bf16.gmra.mxu2 %vm386_vm11, %v336_v40 }
 0x195   : > { %v337_v41 = vpop.trf.xlu1 }
 0x19d   : > { %v338_v42 = vpop.trf.xlu1 }
 0x19e   : > { %1146 = vmatmul.msk.bf16.gmra.mxu0 %vm386_vm11, %v338_v42  ;;  %1166 = vmatmul.msk.bf16.gmra.mxu1 %vm386_vm11, %v338_v42 }
 0x19f   : > { %1186 = vmatmul.msk.bf16.gmra.mxu2 %vm386_vm11, %v338_v42 }
 0x1a5   : > { %v1391_v43 = vpop.trf.xlu1 }
 0x1ad   : > { %v340_v44 = vpop.trf.xlu1 }
 0x1ae   : > { %1147 = vmatmul.msk.bf16.gmra.mxu0 %vm386_vm11, %v340_v44  ;;  %1167 = vmatmul.msk.bf16.gmra.mxu1 %vm386_vm11, %v340_v44 }
 0x1af   : > { %1187 = vmatmul.msk.bf16.gmra.mxu2 %vm386_vm11, %v340_v44 }
 0x1b5   : > { %v1396_v45 = vpop.trf.xlu1 }
 0x1bd   : > { %v342_v46 = vpop.trf.xlu1 }
 0x1be   : > { %1148 = vmatmul.msk.bf16.gmra.mxu0 %vm386_vm11, %v342_v46  ;;  %1168 = vmatmul.msk.bf16.gmra.mxu1 %vm386_vm11, %v342_v46 }
 0x1bf   : > { %1188 = vmatmul.msk.bf16.gmra.mxu2 %vm386_vm11, %v342_v46 }
 0x1c5   : > { %v1401_v49 = vpop.trf.xlu1 }
 0x1cd   : > { %v344_v50 = vpop.trf.xlu1 }
 0x1ce   : > { %1149 = vmatmul.msk.bf16.gmra.mxu0 %vm386_vm11, %v344_v50  ;;  %1169 = vmatmul.msk.bf16.gmra.mxu1 %vm386_vm11, %v344_v50 }
 0x1cf   : > { %1189 = vmatmul.msk.bf16.gmra.mxu2 %vm386_vm11, %v344_v50 }
 0x1d5   : > { %v345_v28 = vpop.trf.xlu1 }
 0x1db   : > { %v1406_v52 = vpop.f32.mrf.mxu0  ;;  %v1408_v53 = vpop.f32.mrf.mxu1 }
 0x1de   : > { %1150 = vmatmul.msk.bf16.gmra.mxu0 %vm386_vm11, %v331_v35  ;;  %1170 = vmatmul.msk.bf16.gmra.mxu1 %vm386_vm11, %v331_v35 }
 0x1df   : > { %1190 = vmatmul.msk.bf16.gmra.mxu2 %vm386_vm11, %v331_v35 }
 0x1e2   : > { %v1413_v54 = vpop.f32.mrf.mxu2 }
 0x1e3   : > { %1911 = vst [vmem:[#allocation12_spill] sm:$0xff] %v1413_v54  ;;  %v1415_v55 = vpop.f32.mrf.mxu0  ;;  %v1417_v56 = vpop.f32.mrf.mxu1 }
 0x1ea   : > { %v1423_v60 = vpop.f32.mrf.mxu2 }
 0x1eb   : > { %1912 = vst [vmem:[#allocation13_spill] sm:$0xff] %v1423_v60  ;;  %v1427_v62 = vpop.f32.mrf.mxu0  ;;  %v1429_v63 = vpop.f32.mrf.mxu1 }
 0x1ee   : > { %1151 = vmatmul.msk.bf16.gmra.mxu0 %vm386_vm11, %v333_v37  ;;  %1171 = vmatmul.msk.bf16.gmra.mxu1 %vm386_vm11, %v333_v37 }
 0x1ef   : > { %1191 = vmatmul.msk.bf16.gmra.mxu2 %vm386_vm11, %v333_v37 }
 0x1f2   : > { %v1434_v59 = vpop.f32.mrf.mxu2 }
 0x1f3   : > { %1913 = vst [vmem:[#allocation14_spill] sm:$0xff] %v1434_v59  ;;  %v1436_v1 = vpop.f32.mrf.mxu0  ;;  %v1438_v61 = vpop.f32.mrf.mxu1 }
 0x1fa   : > { %v1444_v17 = vpop.f32.mrf.mxu2 }
 0x1fb   : > { %1914 = vst [vmem:[#allocation15_spill] sm:$0xff] %v1444_v17  ;;  %v1448_v3 = vpop.f32.mrf.mxu0  ;;  %v1450_v18 = vpop.f32.mrf.mxu1 }
 0x1fe   : > { %1152 = vmatmul.msk.bf16.gmra.mxu0 %vm386_vm11, %v335_v39  ;;  %1172 = vmatmul.msk.bf16.gmra.mxu1 %vm386_vm11, %v335_v39 }
 0x1ff   : > { %1192 = vmatmul.msk.bf16.gmra.mxu2 %vm386_vm11, %v335_v39 }
 0x202   : > { %v1455_v7 = vpop.f32.mrf.mxu2 }
 0x203   : > { %1915 = vst [vmem:[#allocation16_spill] sm:$0xff] %v1455_v7  ;;  %v1457_v20 = vpop.f32.mrf.mxu0  ;;  %v1459_v21 = vpop.f32.mrf.mxu1 }
 0x20a   : > { %v1465_v27 = vpop.f32.mrf.mxu2 }
 0x20b   : > { %1916 = vst [vmem:[#allocation17_spill] sm:$0xff] %v1465_v27  ;;  %v1469_v29 = vpop.f32.mrf.mxu0  ;;  %v1471_v30 = vpop.f32.mrf.mxu1 }
 0x20e   : > { %1153 = vmatmul.msk.bf16.gmra.mxu0 %vm386_vm11, %v337_v41  ;;  %1173 = vmatmul.msk.bf16.gmra.mxu1 %vm386_vm11, %v337_v41 }
 0x20f   : > { %1193 = vmatmul.msk.bf16.gmra.mxu2 %vm386_vm11, %v337_v41 }
 0x212   : > { %v1476_v31 = vpop.f32.mrf.mxu2 }
 0x213   : > { %1917 = vst [vmem:[#allocation18_spill] sm:$0xff] %v1476_v31  ;;  %v1478_v32 = vpop.f32.mrf.mxu0  ;;  %v1480_v33 = vpop.f32.mrf.mxu1 }
 0x21a   : > { %v1486_v10 = vpop.f32.mrf.mxu2 }
 0x21b   : > { %1918 = vst [vmem:[#allocation19_spill] sm:$0xff] %v1486_v10  ;;  %v486_v36 = vpop.f32.mrf.mxu0  ;;  %v1490_v37 = vpop.f32.mrf.mxu1 }
 0x21e   : > { %1154 = vmatmul.msk.bf16.gmra.mxu0 %vm386_vm11, %v1391_v43  ;;  %1174 = vmatmul.msk.bf16.gmra.mxu1 %vm386_vm11, %v1391_v43 }
 0x21f   : > { %1194 = vmatmul.msk.bf16.gmra.mxu2 %vm386_vm11, %v1391_v43 }
 0x222   : > { %v1498_v38 = vpop.f32.mrf.mxu2 }
 0x223   : > { %1919 = vst [vmem:[#allocation20_spill] sm:$0xff] %v1498_v38  ;;  %v488_v39 = vpop.f32.mrf.mxu0  ;;  %v1500_v40 = vpop.f32.mrf.mxu1 }
 0x22a   : > { %v1504_v42 = vpop.f32.mrf.mxu2 }
 0x22b   : > { %1920 = vst [vmem:[#allocation21_spill] sm:$0xff] %v1504_v42  ;;  %v491_v46 = vpop.f32.mrf.mxu0  ;;  %v1508_v50 = vpop.f32.mrf.mxu1 }
 0x22e   : > { %1155 = vmatmul.msk.bf16.gmra.mxu0 %vm386_vm11, %v1396_v45  ;;  %1175 = vmatmul.msk.bf16.gmra.mxu1 %vm386_vm11, %v1396_v45 }
 0x22f   : > { %1195 = vmatmul.msk.bf16.gmra.mxu2 %vm386_vm11, %v1396_v45 }
 0x232   : > { %v1516_v43 = vpop.f32.mrf.mxu2 }
 0x233   : > { %1921 = vst [vmem:[#allocation22_spill] sm:$0xff] %v1516_v43  ;;  %v493_v0 = vpop.f32.mrf.mxu0  ;;  %v1518_v2 = vpop.f32.mrf.mxu1 }
 0x234   : > { %v799_v13 = vpack.c.bf16 %v493_v0, %v491_v46 }
 0x23a   : > { %v1522_v35 = vpop.f32.mrf.mxu2 }
 0x23b   : > { %v496_v57 = vpop.f32.mrf.mxu0  ;;  %v1526_v15 = vpop.f32.mrf.mxu1 }
 0x23e   : > { %1156 = vmatmul.msk.bf16.gmra.mxu0 %vm386_vm11, %v1401_v49  ;;  %1176 = vmatmul.msk.bf16.gmra.mxu1 %vm386_vm11, %v1401_v49 }
 0x23f   : > { %1196 = vmatmul.msk.bf16.gmra.mxu2 %vm386_vm11, %v1401_v49 }
 0x242   : > { %v1534_v45 = vpop.f32.mrf.mxu2 }
 0x243   : > { %v498_v23 = vpop.f32.mrf.mxu0  ;;  %v1536_v34 = vpop.f32.mrf.mxu1 }
 0x244   : > { %v802_v58 = vpack.c.bf16 %v498_v23, %v496_v57 }
 0x24a   : > { %v1540_v41 = vpop.f32.mrf.mxu2 }
 0x24b   : > { %v501_v16 = vpop.f32.mrf.mxu0  ;;  %v1544_v26 = vpop.f32.mrf.mxu1 }
 0x24e   : > { %1157 = vmatmul.msk.bf16.gmra.mxu0 %vm386_vm11, %v345_v28  ;;  %1177 = vmatmul.msk.bf16.gmra.mxu1 %vm386_vm11, %v345_v28 }
 0x24f   : > { %1197 = vmatmul.msk.bf16.gmra.mxu2 %vm386_vm11, %v345_v28 }
 0x252   : > { %v1549_v49 = vpop.f32.mrf.mxu2 }
 0x253   : > { %v503_v9 = vpop.f32.mrf.mxu0  ;;  %v1551_v19 = vpop.f32.mrf.mxu1 }
 0x254   : > { %v805_v12 = vpack.c.bf16 %v503_v9, %v501_v16  ;;  %v1923_v9 = vpack.c.bf16 %v1478_v32, %v1469_v29  ;;  %v1926_v29 = vpack.c.bf16 %v1436_v1, %v1427_v62 }
 0x256   : > { %850 = vmatpush.bf16.msra.mxu3 %v805_v12  ;;  %v796_v12 = vpack.c.bf16 %v488_v39, %v486_v36  ;;  %v1925_v36 = vpack.c.bf16 %v1457_v20, %v1448_v3  ;;  %v1928_v3 = vpack.c.bf16 %v1415_v55, %v1406_v52 }
 0x25a   : > { %v1555_v6 = vpop.f32.mrf.mxu2  ;;  %851 = vmatpush.bf16.msra.mxu3 %v802_v58 }
 0x25b   : > { %v1559_v11 = vpop.f32.mrf.mxu0  ;;  %v1561_v28 = vpop.f32.mrf.mxu1 }
 0x25e   : > { %1158 = vmatmul.msk.bf16.gmra.mxu0 %vm386_vm11, %v354_v5  ;;  %1178 = vmatmul.msk.bf16.gmra.mxu1 %vm386_vm11, %v354_v5 }
 0x25f   : > { %1198 = vmatmul.msk.bf16.gmra.mxu2 %vm386_vm11, %v354_v5  ;;  %852 = vmatpush.bf16.msra.mxu3 %v799_v13 }
 0x262   : > { %v1566_v57 = vpop.f32.mrf.mxu2 }
 0x263   : > { %1922 = vst [vmem:[#allocation23_spill] sm:$0xff] %v1566_v57  ;;  %853 = vmatpush.bf16.msra.mxu3 %v796_v12  ;;  %v1568_v58 = vpop.f32.mrf.mxu0  ;;  %v1570_v16 = vpop.f32.mrf.mxu1 }
 0x264   : > { %v355_v12 = vpop.trf.xlu2 }
 0x267   : > { %854 = vmatpush.bf16.msra.mxu3 %v1923_v9 }
 0x26a   : > { %v1579_v5 = vpop.f32.mrf.mxu2 }
 0x26b   : > { %1924 = vst [vmem:[#allocation24_spill] sm:$0xff] %v1579_v5  ;;  %855 = vmatpush.bf16.msra.mxu3 %v1925_v36  ;;  %v1586_v39 = vpop.f32.mrf.mxu0  ;;  %v1588_v46 = vpop.f32.mrf.mxu1 }
 0x26c   : > { %v356_v55 = vpop.trf.xlu2 }
 0x26e   : > { %1159 = vmatmul.msk.bf16.gmra.mxu0 %vm386_vm11, %v355_v12  ;;  %1179 = vmatmul.msk.bf16.gmra.mxu1 %vm386_vm11, %v355_v12 }
 0x26f   : > { %1199 = vmatmul.msk.bf16.gmra.mxu2 %vm386_vm11, %v355_v12  ;;  %856 = vmatpush.bf16.msra.mxu3 %v1926_v29 }
 0x272   : > { %v1596_v32 = vpop.f32.mrf.mxu2 }
 0x273   : > { %1927 = vst [vmem:[#allocation25_spill] sm:$0xff] %v1596_v32  ;;  %857 = vmatpush.bf16.msra.mxu3 %v1928_v3  ;;  %v1601_v20 = vpop.f32.mrf.mxu0  ;;  %v1603_v9 = vpop.f32.mrf.mxu1 }
 0x276   : > { %858 = vmatmul.bf16.vlgmr.msra.gmra.mxu3 %v1348_v24 }
 0x27a   : > { %v1610_v62 = vpop.f32.mrf.mxu2 }
 0x27b   : > { %1929 = vst [vmem:[#allocation26_spill] sm:$0xff] %v1610_v62  ;;  %v516_v29 = vpop.f32.mrf.mxu0  ;;  %v1614_v52 = vpop.f32.mrf.mxu1 }
 0x27e   : > { %1160 = vmatmul.msk.bf16.gmra.mxu0 %vm386_vm11, %v356_v55  ;;  %1180 = vmatmul.msk.bf16.gmra.mxu1 %vm386_vm11, %v356_v55 }
 0x27f   : > { %1200 = vmatmul.msk.bf16.gmra.mxu2 %vm386_vm11, %v356_v55  ;;  %v357_v55 = vpop.trf.xlu2 }
 0x282   : > { %v1619_v3 = vpop.f32.mrf.mxu2 }
 0x283   : > { %1930 = vst [vmem:[#allocation27_spill] sm:$0xff] %v1619_v3  ;;  %v518_v13 = vpop.f32.mrf.mxu0  ;;  %v1621_v14 = vpop.f32.mrf.mxu1 }
 0x284   : > { %v814_v0 = vpack.c.bf16 %v518_v13, %v516_v29 }
 0x286   : > { %863 = vmatmul.bf16.gmra.mxu3 %v1357_v48 }
 0x28a   : > { %v1626_v1 = vpop.f32.mrf.mxu2 }
 0x28b   : > { %1931 = vst [vmem:[#allocation28_spill] sm:$0xff] %v1626_v1  ;;  %v521_v23 = vpop.f32.mrf.mxu0  ;;  %v1630_v36 = vpop.f32.mrf.mxu1  ;;  %v1936_v1 = vpack.c.bf16 %v1601_v20, %v1586_v39 }
 0x28e   : > { %1161 = vmatmul.msk.bf16.gmra.mxu0 %vm386_vm11, %v357_v55  ;;  %1181 = vmatmul.msk.bf16.gmra.mxu1 %vm386_vm11, %v357_v55 }
 0x28f   : > { %1201 = vmatmul.msk.bf16.gmra.mxu2 %vm386_vm11, %v357_v55 }
 0x292   : > { %v1635_v13 = vpop.f32.mrf.mxu2 }
 0x293   : > { %1932 = vst [vmem:[#allocation29_spill] sm:$0xff] %v1635_v13  ;;  %v523_v29 = vpop.f32.mrf.mxu0  ;;  %v1637_v12 = vpop.f32.mrf.mxu1 }
 0x294   : > { %v817_v8 = vpack.c.bf16 %v523_v29, %v521_v23 }
 0x29a   : > { %v1641_v44 = vpop.f32.mrf.mxu2 }
 0x29b   : > { %1933 = vst [vmem:[#allocation30_spill] sm:$0xff] %v1641_v44  ;;  %v526_v5 = vpop.f32.mrf.mxu0  ;;  %v1645_v32 = vpop.f32.mrf.mxu1 }
 0x2a2   : > { %v1647_v62 = vpop.f32.mrf.mxu2 }
 0x2a3   : > { %1934 = vst [vmem:[#allocation31_spill] sm:$0xff] %v1647_v62  ;;  %v528_v55 = vpop.f32.mrf.mxu0  ;;  %v1649_v3 = vpop.f32.mrf.mxu1 }
 0x2a4   : > { %v820_v38 = vpack.c.bf16 %v528_v55, %v526_v5  ;;  %v1245_v55 = vmov 0  }
 0x2a5   : > { %1223 = vset.pattern.permute.xlu0 %v1245_v55 }
 0x2aa   : > { %v1653_v23 = vpop.f32.mrf.mxu2 }
 0x2ab   : > { %1935 = vst [vmem:[#allocation32_spill] sm:$0xff] %v1653_v23  ;;  %v531_v4 = vpop.f32.mrf.mxu0  ;;  %v1657_v54 = vpop.f32.mrf.mxu1 }
 0x2b2   : > { %v1659_v57 = vpop.f32.mrf.mxu2 }
 0x2b3   : > { %v533_v13 = vpop.f32.mrf.mxu0  ;;  %v1661_v44 = vpop.f32.mrf.mxu1 }
 0x2b4   : > { %v823_v10 = vpack.c.bf16 %v533_v13, %v531_v4 }
 0x2ba   : > { %v1665_v59 = vpop.f32.mrf.mxu2 }
 0x2bb   : > { %v536_v17 = vpop.f32.mrf.mxu0  ;;  %v645_v60 = vpop.f32.mrf.mxu1 }
 0x2c3   : > { %v538_v7 = vpop.f32.mrf.mxu0 }
 0x2c4   : > { %v826_v23 = vpack.c.bf16 %v538_v7, %v536_v17  ;;  %v647_v7 = vpop.f32.mrf.mxu1 }
 0x2cb   : > { %v541_v27 = vpop.f32.mrf.mxu0 }
 0x2d3   : > { %v543_v29 = vpop.f32.mrf.mxu0 }
 0x2d4   : > { %v829_v62 = vpack.c.bf16 %v543_v29, %v541_v27  ;;  %v1937_v27 = vpack.c.bf16 %v1568_v58, %v1559_v11 }
 0x2d6   : > { %868 = vmatpush.bf16.msrb.mxu3 %v829_v62 }
 0x2da   : > { %869 = vmatpush.bf16.msrb.mxu3 %v826_v23  ;;  %v1224_v23 = vld [vmem:[#allocation2] ss:$0 sm:$0xff] }
 0x2db   : > { %v546_v31 = vpop.f32.mrf.mxu0  ;;  %1034 = vperm.xlu0 %1223, %v1224_v23  }
 0x2de   : > { %870 = vmatpush.bf16.msrb.mxu3 %v823_v10 }
 0x2e2   : > { %871 = vmatpush.bf16.msrb.mxu3 %v820_v38  ;;  %v650_v38 = vpop.f32.mrf.mxu1 }
 0x2e3   : > { %v548_v42 = vpop.f32.mrf.mxu0 }
 0x2e6   : > { %872 = vmatpush.bf16.msrb.mxu3 %v817_v8 }
 0x2ea   : > { %873 = vmatpush.bf16.msrb.mxu3 %v814_v0  ;;  %v652_v5 = vpop.f32.mrf.mxu1 }
 0x2eb   : > { %v551_v43 = vpop.f32.mrf.mxu0 }
 0x2ee   : > { %874 = vmatpush.bf16.msrb.mxu3 %v1936_v1 }
 0x2f2   : > { %875 = vmatpush.bf16.msrb.mxu3 %v1937_v27  ;;  %v655_v11 = vpop.f32.mrf.mxu1 }
 0x2f3   : > { %v553_v17 = vpop.f32.mrf.mxu0 }
 0x2f4   : > { %v835_v27 = vpack.c.bf16 %v553_v17, %v551_v43  ;;  %v754_v43 = vpop.f32.mrf.mxu2 }
 0x2f5   : > { %876 = vmatmul.bf16.vlgmr.msrb.gmra.mxu3 %v1350_v25 }
 0x2f9   : > { %v1676_v4 = vpop.f32.mrf.mxu3 }
 0x2fa   : > { %v657_v29 = vpop.f32.mrf.mxu1 }
 0x2fb   : > { %v556_v10 = vpop.f32.mrf.mxu0 }
 0x301   : > { %v1678_v8 = vpop.f32.mrf.mxu3 }
 0x302   : > { %1938 = vst [vmem:[#allocation33_spill] sm:$0xff] %v1678_v8  ;;  %v832_v8 = vpack.c.bf16 %v548_v42, %v546_v31  ;;  %v1943_v31 = vpack.c.bf16 %v1500_v40, %v1490_v37  ;;  %v830_v37 = vpack.c.bf16 %v652_v5, %v650_v38  ;;  %v1947_v40 = vpack.c.bf16 %v1417_v56, %v1408_v53  ;;  %v1959_v38 = vld [vmem:[#allocation20_spill] sm:$0xff] }
 0x303   : > { %v558_v0 = vpop.f32.mrf.mxu0  ;;  %v1950_v53 = vpack.c.bf16 %v1637_v12, %v1630_v36 }
 0x304   : > { %v838_v13 = vpack.c.bf16 %v558_v0, %v556_v10  ;;  %v1941_v10 = vpack.c.bf16 %v1536_v34, %v1526_v15  ;;  %v1942_v0 = vpack.c.bf16 %v1518_v2, %v1508_v50  ;;  %v1945_v15 = vpack.c.bf16 %v1459_v21, %v1450_v18  ;;  %v756_v34 = vpop.f32.mrf.mxu2 }
 0x305   : > { %881 = vmatmul.bf16.gmra.mxu3 %v1359_v51  ;;  %v1946_v2 = vpack.c.bf16 %v1438_v61, %v1429_v63  ;;  %v1948_v18 = vpack.c.bf16 %v1661_v44, %v1657_v54  ;;  %v1949_v63 = vpack.c.bf16 %v1649_v3, %v1645_v32  ;;  %v1952_v54 = vpack.c.bf16 %v1603_v9, %v1588_v46 }
 0x306   : > { %v1953_v3 = vpack.c.bf16 %v1570_v16, %v1561_v28  ;;  %v1954_v46 = vpack.c.bf16 %v1555_v6, %v1549_v49  ;;  %v1956_v28 = vld [vmem:[#allocation22_spill] sm:$0xff] }
 0x307   : > { %v1957_v16 = vpack.c.bf16 %v1522_v35, %v1956_v28  ;;  %v1962_v6 = vld [vmem:[#allocation18_spill] sm:$0xff] }
 0x309   : > { %v1681_v39 = vpop.f32.mrf.mxu3 }
 0x30a   : > { %1939 = vst [vmem:[#allocation34_spill] sm:$0xff] %v1681_v39  ;;  %v1940_v39 = vpack.c.bf16 %v1551_v19, %v1544_v26  ;;  %v1944_v19 = vpack.c.bf16 %v1480_v33, %v1471_v30  ;;  %v827_v30 = vpack.c.bf16 %v647_v7, %v645_v60  ;;  %v1951_v60 = vpack.c.bf16 %v1621_v14, %v1614_v52  ;;  %v1958_v7 = vld [vmem:[#allocation21_spill] sm:$0xff] }
 0x30b   : > { %v561_v20 = vpop.f32.mrf.mxu0  ;;  %v833_v14 = vpack.c.bf16 %v657_v29, %v655_v11  ;;  %v1955_v52 = vpack.c.bf16 %v1540_v41, %v1534_v45  ;;  %v1964_v11 = vld [vmem:[#allocation17_spill] sm:$0xff] }
 0x30c   : > { %v759_v50 = vpop.f32.mrf.mxu2  ;;  %v1970_v29 = vld [vmem:[#allocation13_spill] sm:$0xff] }
 0x311   : > { %v866_v62 = vpop.f32.mrf.mxu3 }
 0x312   : > { %v1961_v62 = vld [vmem:[#allocation19_spill] sm:$0xff] }
 0x313   : > { %v563_v58 = vpop.f32.mrf.mxu0  ;;  %v1963_v49 = vpack.c.bf16 %v1961_v62, %v1962_v6  ;;  %v1993_v62 = vld [vmem:[#allocation4_spill] sm:$0xff]  ;;  %v1994_v6 = vld [vmem:[#allocation7_spill] sm:$0xff] }
 0x314   : > { %v841_v1 = vpack.c.bf16 %v563_v58, %v561_v20  ;;  %v660_v20 = vpop.f32.mrf.mxu1  ;;  %v761_v56 = vpop.f32.mrf.mxu2  ;;  %v1965_v58 = vld [vmem:[#allocation16_spill] sm:$0xff] }
 0x315   : > { %v1966_v41 = vpack.c.bf16 %v1964_v11, %v1965_v58  ;;  %v831_v23 = vpack.c.bf16 %v761_v56, %v759_v50  ;;  %v1987_v56 = vld [vmem:[#allocation23_spill] sm:$0xff]  ;;  %v1995_v11 = vld [vmem:[#allocation10_spill] sm:$0xff] }
 0x316   : > { %890 = vmatpush.bf16.msra.mxu3 %v841_v1  ;;  %v1967_v1 = vld [vmem:[#allocation15_spill] sm:$0xff] }
 0x31a   : > { %891 = vmatpush.bf16.msra.mxu3 %v838_v13  ;;  %v1968_v13 = vld [vmem:[#allocation14_spill] sm:$0xff] }
 0x31b   : > { %v1969_v55 = vpack.c.bf16 %v1967_v1, %v1968_v13  ;;  %v269_v1 = vpop.xlane.xlu0 %268 }
 0x31c   : > { %v662_v42 = vpop.f32.mrf.mxu1  ;;  %v764_v44 = vpop.f32.mrf.mxu2 }
 0x31d   : > { %v836_v12 = vpack.c.bf16 %v662_v42, %v660_v20  ;;  %v1973_v42 = vpack.c.bf16 %v1665_v59, %v1659_v57  ;;  %v1984_v59 = vld [vmem:[#allocation25_spill] sm:$0xff] }
 0x31e   : > { %892 = vmatpush.bf16.msra.mxu3 %v835_v27  ;;  %v1971_v27 = vld [vmem:[#allocation12_spill] sm:$0xff] }
 0x31f   : > { %v1972_v20 = vpack.c.bf16 %v1970_v29, %v1971_v27  ;;  %v280_v29 = vadd.f32 24.0, %v269_v1 }
 0x322   : > { %893 = vmatpush.bf16.msra.mxu3 %v832_v8  ;;  %v1960_v8 = vpack.c.bf16 %v1958_v7, %v1959_v38 }
 0x324   : > { %v665_v26 = vpop.f32.mrf.mxu1  ;;  %v766_v17 = vpop.f32.mrf.mxu2 }
 0x325   : > { %1202 = vmatmul.msk.bf16.vlgmr.msra.gmra.mxu3 %vm172_vm0, %v1346_v22 }
 0x326   : > { %904 = vmatpush.bf16.msrb.mxu3 %v1940_v39 }
 0x32a   : > { %905 = vmatpush.bf16.msrb.mxu3 %v1941_v10 }
 0x32c   : > { %v667_v33 = vpop.f32.mrf.mxu1  ;;  %v769_v9 = vpop.f32.mrf.mxu2 }
 0x32d   : > { %v839_v36 = vpack.c.bf16 %v667_v33, %v665_v26  ;;  %v1975_v26 = vld [vmem:[#allocation31_spill] sm:$0xff] }
 0x32e   : > { %906 = vmatpush.bf16.msrb.mxu3 %v1942_v0  ;;  %v828_v0 = vpack.c.bf16 %v756_v34, %v754_v43  ;;  %v1980_v43 = vld [vmem:[#allocation28_spill] sm:$0xff]  ;;  %v1981_v34 = vld [vmem:[#allocation27_spill] sm:$0xff] }
 0x32f   : > { %v1982_v50 = vpack.c.bf16 %v1980_v43, %v1981_v34 }
 0x332   : > { %907 = vmatpush.bf16.msrb.mxu3 %v1943_v31 }
 0x334   : > { %v670_v61 = vpop.f32.mrf.mxu1  ;;  %v771_v39 = vpop.f32.mrf.mxu2 }
 0x335   : > { %1203 = vmatmul.msk.bf16.gmra.mxu3 %vm172_vm0, %v1355_v47 }
 0x336   : > { %908 = vmatpush.bf16.msrb.mxu3 %v1944_v19 }
 0x33a   : > { %909 = vmatpush.bf16.msrb.mxu3 %v1945_v15  ;;  %v1974_v15 = vld [vmem:[#allocation32_spill] sm:$0xff] }
 0x33c   : > { %v672_v21 = vpop.f32.mrf.mxu1  ;;  %v774_v35 = vpop.f32.mrf.mxu2 }
 0x33d   : > { %v842_v32 = vpack.c.bf16 %v672_v21, %v670_v61 }
 0x33e   : > { %910 = vmatpush.bf16.msrb.mxu3 %v1946_v2  ;;  %v1976_v2 = vpack.c.bf16 %v1974_v15, %v1975_v26 }
 0x342   : > { %911 = vmatpush.bf16.msrb.mxu3 %v1947_v40  ;;  %v1977_v40 = vld [vmem:[#allocation30_spill] sm:$0xff] }
 0x344   : > { %v776_v31 = vpop.f32.mrf.mxu2 }
 0x345   : > { %912 = vmatmul.bf16.vlgmr.msrb.gmra.mxu3 %v1348_v24 }
 0x346   : > { %922 = vmatpush.bf16.msra.mxu3 %v830_v37 }
 0x34a   : > { %923 = vmatpush.bf16.msra.mxu3 %v827_v30  ;;  %v1978_v30 = vld [vmem:[#allocation29_spill] sm:$0xff] }
 0x34b   : > { %v1979_v33 = vpack.c.bf16 %v1977_v40, %v1978_v30  ;;  %v279_v40 = vpop.xlane.xlu2 %278  ;;  %v1996_v30 = vld [vmem:[#allocation33_spill] sm:$0xff] }
 0x34c   : > { %v779_v37 = vpop.f32.mrf.mxu2 }
 0x34e   : > { %924 = vmatpush.bf16.msra.mxu3 %v1948_v18  ;;  %v1983_v18 = vld [vmem:[#allocation26_spill] sm:$0xff] }
 0x34f   : > { %v1985_v57 = vpack.c.bf16 %v1983_v18, %v1984_v59 }
 0x352   : > { %925 = vmatpush.bf16.msra.mxu3 %v1949_v63 }
 0x354   : > { %v781_v63 = vpop.f32.mrf.mxu2 }
 0x355   : > { %917 = vmatmul.bf16.gmra.mxu3 %v1357_v48  ;;  %v843_v61 = vpack.c.bf16 %v781_v63, %v779_v37  ;;  %v282_v63 = vadd.f32 24.0, %v279_v40 }
 0x356   : > { %926 = vmatpush.bf16.msra.mxu3 %v1950_v53  ;;  %v1986_v53 = vld [vmem:[#allocation24_spill] sm:$0xff] }
 0x35a   : > { %927 = vmatpush.bf16.msra.mxu3 %v1951_v60  ;;  %v1988_v60 = vpack.c.bf16 %v1986_v53, %v1987_v56 }
 0x35e   : > { %928 = vmatpush.bf16.msra.mxu3 %v1952_v54  ;;  %v840_v54 = vpack.c.bf16 %v776_v31, %v774_v35 }
 0x362   : > { %929 = vmatpush.bf16.msra.mxu3 %v1953_v3 }
 0x365   : > { %930 = vmatmul.bf16.vlgmr.msra.gmra.mxu3 %v1350_v25 }
 0x366   : > { %944 = vmatpush.bf16.msrb.mxu3 %v842_v32 }
 0x36a   : > { %945 = vmatpush.bf16.msrb.mxu3 %v839_v36  ;;  %v837_v36 = vpack.c.bf16 %v771_v39, %v769_v9 }
 0x36e   : > { %946 = vmatpush.bf16.msrb.mxu3 %v836_v12  ;;  %v834_v12 = vpack.c.bf16 %v766_v17, %v764_v44  ;;  %v1990_v44 = vld [vmem:[#allocation3_spill] sm:$0xff]  ;;  %v1991_v17 = vld [vmem:[#allocation6_spill] sm:$0xff] }
 0x372   : > { %947 = vmatpush.bf16.msrb.mxu3 %v833_v14 }
 0x375   : > { %935 = vmatmul.bf16.gmra.mxu3 %v1359_v51 }
 0x376   : > { %958 = vmatpush.bf16.msra.mxu3 %v1954_v46  ;;  %v1989_v46 = vld [vmem:[#allocation34_spill] sm:$0xff] }
 0x378   : > { %v877_v5 = vpop.f32.mrf.mxu3 }
 0x379   : > { %v878_v21 = vadd.f32 %v877_v5, %v1676_v4  ;;  %v1992_v5 = vld [vmem:[#allocation9_spill] sm:$0xff] }
 0x37a   : > { %959 = vmatpush.bf16.msra.mxu3 %v1955_v52 }
 0x37e   : > { %960 = vmatpush.bf16.msra.mxu3 %v1957_v16 }
 0x380   : > { %v1751_v45 = vpop.f32.mrf.mxu3 }
 0x382   : > { %961 = vmatpush.bf16.msra.mxu3 %v1960_v8  ;;  %v289_v8 = vadd.f32 %v1991_v17, %v1990_v44 }
 0x384   : > { %v290_v39 = vadd.f32 %v289_v8, %v1992_v5 }
 0x385   : > { %1204 = vmatmul.msk.bf16.vlgmr.msrb.gmra.mxu3 %vm172_vm0, %v1346_v22 }
 0x386   : > { %962 = vmatpush.bf16.msra.mxu3 %v1963_v49  ;;  %v297_v49 = vadd.f32 %v1994_v6, %v1993_v62 }
 0x388   : > { %v882_v10 = vpop.f32.mrf.mxu3  ;;  %v298_v58 = vadd.f32 %v297_v49, %v1995_v11 }
 0x389   : > { %v883_v52 = vadd.f32 %v882_v10, %v1989_v46  ;;  %v283_v10 = vadd.f32 1e-06, %v280_v29 }
 0x38a   : > { %963 = vmatpush.bf16.msra.mxu3 %v1966_v41  ;;  %v299_v35 = vrot.slane %v298_v58, 4 }
 0x38b   : > { %1231 = vrcp.f32 %v283_v10 }
 0x38e   : > { %964 = vmatpush.bf16.msra.mxu3 %v1969_v55  ;;  %v300_v55 = vadd.f32 %v299_v35, %v298_v58 }
 0x390   : > { %v884_v19 = vpop.f32.mrf.mxu3  ;;  %v301_v27 = vrot.slane %v300_v55, 2 }
 0x391   : > { %v1803_v34 = vpop.eup %1231 }
 0x392   : > { %965 = vmatpush.bf16.msra.mxu3 %v1972_v20  ;;  %v302_v31 = vadd.f32 %v301_v27, %v300_v55 }
 0x394   : > { %v303_v26 = vrot.slane %v302_v31, 1 }
 0x395   : > { %1205 = vmatmul.msk.bf16.gmra.mxu3 %vm172_vm0, %v1355_v47 }
 0x396   : > { %976 = vmatpush.bf16.msrb.mxu3 %v831_v23  ;;  %v304_v43 = vadd.f32 %v303_v26, %v302_v31 }
 0x39a   : > { %977 = vmatpush.bf16.msrb.mxu3 %v828_v0  ;;  %v274_v0 = vpop.xlane.xlu0 %273 }
 0x39b   : > { %v281_v15 = vadd.f32 24.0, %v274_v0  ;;  %v1998_v0 = vld [vmem:[#allocation8_spill] sm:$0xff] }
 0x39c   : > { %v306_v31 = vsel %vm172_vm0, %v1998_v0, 0.0 }
 0x39d   : > { %v284_v37 = vadd.f32 1e-06, %v281_v15 }
 0x39e   : > { %978 = vmatpush.bf16.msrb.mxu3 %v1973_v42 }
 0x39f   : > { %1233 = vrcp.f32 %v284_v37 }
 0x3a2   : > { %979 = vmatpush.bf16.msrb.mxu3 %v1976_v2 }
 0x3a5   : > { %966 = vmatmul.bf16.vlgmr.msra.gmra.mxu3 %v1348_v24 }
 0x3a6   : > { %980 = vmatpush.bf16.msrb.mxu3 %v1979_v33 }
 0x3a8   : > { %v895_v32 = vpop.f32.mrf.mxu3 }
 0x3a9   : > { %v896_v3 = vadd.f32 %v895_v32, %v878_v21  ;;  %v285_v21 = vadd.f32 1e-06, %v282_v63 }
 0x3aa   : > { %981 = vmatpush.bf16.msrb.mxu3 %v1982_v50 }
 0x3ab   : > { %1235 = vrcp.f32 %v285_v21 }
 0x3ae   : > { %982 = vmatpush.bf16.msrb.mxu3 %v1985_v57 }
 0x3b0   : > { %v897_v14 = vpop.f32.mrf.mxu3 }
 0x3b2   : > { %983 = vmatpush.bf16.msrb.mxu3 %v1988_v60 }
 0x3b5   : > { %971 = vmatmul.bf16.gmra.mxu3 %v1357_v48 }
 0x3b6   : > { %998 = vmatpush.bf16.msra.mxu3 %v843_v61  ;;  %v1806_v61 = vpop.permute.xlu0 %1034 }
 0x3b8   : > { %v900_v28 = vpop.f32.mrf.mxu3 }
 0x3b9   : > { %v1785_v16 = vadd.f32 %v900_v28, %v883_v52 }
 0x3ba   : > { %999 = vmatpush.bf16.msra.mxu3 %v840_v54 }
 0x3be   : > { %1000 = vmatpush.bf16.msra.mxu3 %v837_v36 }
 0x3c0   : > { %v902_v24 = vpop.f32.mrf.mxu3 }
 0x3c2   : > { %1001 = vmatpush.bf16.msra.mxu3 %v834_v12 }
 0x3c5   : > { %984 = vmatmul.bf16.vlgmr.msrb.gmra.mxu3 %v1350_v25  ;;  %v291_v25 = vrot.slane %v290_v39, 4 }
 0x3c8   : > { %v913_v4 = vpop.f32.mrf.mxu3 }
 0x3d0   : > { %v915_v7 = vpop.f32.mrf.mxu3 }
 0x3d5   : > { %989 = vmatmul.bf16.gmra.mxu3 %v1359_v51  ;;  %v292_v51 = vadd.f32 %v291_v25, %v290_v39 }
 0x3d7   : > { %v293_v13 = vrot.slane %v292_v51, 2 }
 0x3d8   : > { %v1789_v38 = vpop.f32.mrf.mxu3 }
 0x3e0   : > { %v920_v9 = vpop.f32.mrf.mxu3 }
 0x3e5   : > { %1206 = vmatmul.msk.bf16.vlgmr.msra.gmra.mxu3 %vm172_vm0, %v1346_v22  ;;  %v294_v22 = vadd.f32 %v293_v13, %v292_v51 }
 0x3e7   : > { %v295_v20 = vrot.slane %v294_v22, 1 }
 0x3e8   : > { %v931_v48 = vpop.f32.mrf.mxu3 }
 0x3e9   : > { %v296_v19 = vadd.f32 %v295_v20, %v294_v22  ;;  %v932_v33 = vadd.f32 %v931_v48, %v913_v4  ;;  %v1997_v20 = vld [vmem:[#allocation5_spill] sm:$0xff] }
 0x3ea   : > { %v305_v10 = vsel %vm172_vm0, %v1997_v20, 0.0 }
 0x3eb   : > { %v1012_v2 = vadd.f32 %v896_v3, %v296_v19  ;;  %v1811_v3 = vpop.eup %1233 }
 0x3ec   : > { %v1236_v48 = vpop.eup %1235 }
 0x3ed   : > { %v1021_v18 = vmul.f32 %v1803_v34, %v1012_v2 }
 0x3f0   : > { %v933_v41 = vpop.f32.mrf.mxu3 }
 0x3f1   : > { %v934_v54 = vadd.f32 %v933_v41, %v915_v7  ;;  %v1018_v7 = vadd.f32 %v1785_v16, %v296_v19 }
 0x3f3   : > { %v1027_v49 = vmul.f32 %v1236_v48, %v1018_v7 }
 0x3f5   : > { %1207 = vmatmul.msk.bf16.gmra.mxu3 %vm172_vm0, %v1355_v47  ;;  %v880_v47 = vadd.f32 %v1751_v45, %v1996_v30  ;;  %v1037_v45 = vmul.f32 %v1806_v61, %v1021_v18  ;;  %v1043_v16 = vmul.f32 %v1806_v61, %v1027_v49 }
 0x3f7   : > { %v898_v59 = vadd.f32 %v897_v14, %v880_v47  ;;  %v1046_v14 = vadd.f32 %v1037_v45, %v1990_v44  ;;  %v1052_v13 = vadd.f32 %v1043_v16, %v1992_v5 }
 0x3f8   : > { %v936_v23 = vpop.f32.mrf.mxu3 }
 0x3f9   : > { %v1015_v56 = vadd.f32 %v898_v59, %v296_v19  ;;  %v937_v44 = vadd.f32 %v936_v23, %v1789_v38  ;;  %v1999_v19 = vld [vmem:[#allocation11_spill] sm:$0xff] }
 0x3fa   : > { %v308_v15 = vsel %vm172_vm0, %v1999_v19, 0.0 }
 0x3fb   : > { %v1024_v12 = vmul.f32 %v1811_v3, %v1015_v56 }
 0x3fd   : > { %v1040_v4 = vmul.f32 %v1806_v61, %v1024_v12 }
 0x400   : > { %v938_v42 = vpop.f32.mrf.mxu3 }
 0x401   : > { %v307_v42 = vadd.f32 %v306_v31, %v305_v10 }
 0x403   : > { %v309_v5 = vadd.f32 %v308_v15, %v307_v42 }
 0x408   : > { %v949_v50 = vpop.f32.mrf.mxu3 }
 0x409   : > { %v950_v57 = vadd.f32 %v949_v50, %v932_v33 }
 0x40b   : > { %v1013_v53 = vadd.f32 %v950_v57, %v304_v43 }
 0x40d   : > { %v1022_v60 = vmul.f32 %v1803_v34, %v1013_v53 }
 0x40f   : > { %v1038_v32 = vmul.f32 %v1806_v61, %v1022_v60 }
 0x410   : > { %v951_v36 = vpop.f32.mrf.mxu3 }
 0x411   : > { %v1047_v46 = vadd.f32 %v1038_v32, %v1993_v62  ;;  %v952_v52 = vadd.f32 %v951_v36, %v934_v54  ;;  %v1049_v62 = vadd.f32 %v1040_v4, %v1991_v17 }
 0x413   : > { %v1055_v28 = vpack.c.bf16 %v1047_v46, %v1046_v14  ;;  %v1016_v24 = vadd.f32 %v952_v52, %v304_v43 }
 0x415   : > { %1061 = vst [vmem:[%s1821_s18] sm:$0xff] %v1055_v28  ;;  %v1025_v9 = vmul.f32 %v1811_v3, %v1016_v24 }
 0x417   : > { %v1041_v8 = vmul.f32 %v1806_v61, %v1025_v9 }
 0x418   : > { %v954_v39 = vpop.f32.mrf.mxu3 }
 0x419   : > { %v1050_v25 = vadd.f32 %v1041_v8, %v1994_v6  ;;  %v955_v58 = vadd.f32 %v954_v39, %v937_v44 }
 0x41b   : > { %v1057_v41 = vpack.c.bf16 %v1050_v25, %v1049_v62  ;;  %v1019_v51 = vadd.f32 %v955_v58, %v304_v43 }
 0x41d   : > { %1064 = vst [vmem:[%s1821_s18 + $0xc] sm:$0xff] %v1057_v41  ;;  %v1028_v35 = vmul.f32 %v1236_v48, %v1019_v51 }
 0x41f   : > { %v1044_v1 = vmul.f32 %v1806_v61, %v1028_v35 }
 0x420   : > { %v956_v38 = vpop.f32.mrf.mxu3 }
 0x421   : > { %v1053_v55 = vadd.f32 %v1044_v1, %v1995_v11  ;;  %v310_v11 = vrot.slane %v309_v5, 4 }
 0x423   : > { %v1059_v23 = vpack.c.bf16 %v1053_v55, %v1052_v13  ;;  %v311_v2 = vadd.f32 %v310_v11, %v309_v5 }
 0x425   : > { %1066 = vst [vmem:[%s1821_s18 + $0x18] sm:$0xff] %v1059_v23  ;;  %v312_v40 = vrot.slane %v311_v2, 2 }
 0x427   : > { %v313_v30 = vadd.f32 %v312_v40, %v311_v2 }
 0x428   : > { %v967_v17 = vpop.f32.mrf.mxu3 }
 0x429   : > { %v314_v33 = vrot.slane %v313_v30, 1 }
 0x42b   : > { %v315_v50 = vadd.f32 %v314_v33, %v313_v30 }
 0x430   : > { %v969_v22 = vpop.f32.mrf.mxu3 }
 0x438   : > { %v972_v29 = vpop.f32.mrf.mxu3 }
 0x440   : > { %v974_v6 = vpop.f32.mrf.mxu3 }
 0x448   : > { %v985_v27 = vpop.f32.mrf.mxu3 }
 0x449   : > { %v986_v43 = vadd.f32 %v985_v27, %v967_v17 }
 0x450   : > { %v987_v26 = vpop.f32.mrf.mxu3 }
 0x451   : > { %v988_v53 = vadd.f32 %v987_v26, %v969_v22 }
 0x458   : > { %v990_v37 = vpop.f32.mrf.mxu3 }
 0x459   : > { %v991_v12 = vadd.f32 %v990_v37, %v972_v29 }
 0x460   : > { %v992_v47 = vpop.f32.mrf.mxu3 }
 0x468   : > { %v1003_v18 = vpop.f32.mrf.mxu3 }
 0x469   : > { %v1004_v59 = vadd.f32 %v1003_v18, %v986_v43 }
 0x46b   : > { %v1014_v57 = vadd.f32 %v1004_v59, %v315_v50 }
 0x46d   : > { %v1023_v63 = vmul.f32 %v1803_v34, %v1014_v57 }
 0x46f   : > { %v1039_v56 = vmul.f32 %v1806_v61, %v1023_v63 }
 0x470   : > { %v1005_v60 = vpop.f32.mrf.mxu3 }
 0x471   : > { %v1048_v45 = vadd.f32 %v1039_v56, %v1997_v20  ;;  %v1006_v21 = vadd.f32 %v1005_v60, %v988_v53 }
 0x473   : > { %v1056_v54 = vpack.c.bf16 %v1048_v45, %v1048_v45  ;;  %v1017_v32 = vadd.f32 %v1006_v21, %v315_v50 }
 0x475   : > { %1063 = vst.msk [vmem:[%s1821_s18 + $0x8] sm:$0xf] %vm1062_vm12, %v1056_v54  ;;  %v1026_v36 = vmul.f32 %v1811_v3, %v1017_v32 }
 0x477   : > { %v1042_v14 = vmul.f32 %v1806_v61, %v1026_v36 }
 0x478   : > { %v1008_v34 = vpop.f32.mrf.mxu3 }
 0x479   : > { %v1051_v46 = vadd.f32 %v1042_v14, %v1998_v0  ;;  %v1009_v52 = vadd.f32 %v1008_v34, %v991_v12 }
 0x47b   : > { %v1058_v28 = vpack.c.bf16 %v1051_v46, %v1051_v46  ;;  %v1020_v24 = vadd.f32 %v1009_v52, %v315_v50 }
 0x47d   : > { %1065 = vst.msk [vmem:[%s1821_s18 + $0x14] sm:$0xf] %vm1062_vm12, %v1058_v28  ;;  %v1029_v4 = vmul.f32 %v1236_v48, %v1020_v24 }
 0x47f   : > { %v1045_v7 = vmul.f32 %v1806_v61, %v1029_v4 }
 0x480   : > { %v1010_v9 = vpop.f32.mrf.mxu3 }
 0x481   : > { %v1054_v44 = vadd.f32 %v1045_v7, %v1999_v19 }
 0x483   : > { %v1060_v8 = vpack.c.bf16 %v1054_v44, %v1054_v44 }
 0x485   : > { %1067 = vst.msk [vmem:[%s1821_s18 + $0x20] sm:$0xf] %vm1062_vm12, %v1060_v8 }
 0x486 PF: > { %s14_s11 = sadd.s32 1, %s1243_s11  }
 0x487   : > { %p11_p4 = scmp.ge.s32.totalorder %s14_s11, 4  }
 0x489   :  { %13 = sbr.rel (!%p11_p4) target bundleno = 3 (0x3), region = 58 }

// kernel: ddcd_lam_forward.15
= control target key start
LH: loop header
LB: loop body
LE: loop exit
PB: predicated region body
PF: predicated region fallthrough
CT: control target
= control target key end

     0   :  { %s628_s12 = smov 0   ;;  %s630_s13 = smov 0   ;;  %s719_s0 = inlined_call_operand.vmem [shape: bf16[48,48], index: 0, kind: input, shape index: {}]   ;;  %s720_s1 = inlined_call_operand.vmem [shape: bf16[48,640], index: 1, kind: input, shape index: {}]   ;;  %s721_s2 = inlined_call_operand.vmem [shape: f32[48,1], index: 2, kind: input, shape index: {}]   ;;  %s722_s3 = inlined_call_operand.vmem [shape: bf16[48,640], index: 3, kind: output, shape index: {}]  }
   0x1   :  { %s632_s14 = smov 0  }
   0x2 LB: > { %s488_s15 = sadd.s32 4294967295, %s605_s14   ;;  %s645_s16 = sadd.s32 1, %s605_s14   ;;  %s605_s14 = sphi %s632_s14, %s726_s14   ;;  %s601_s13 = sphi %s630_s13, %s725_s13   ;;  %s597_s12 = sphi %s628_s12, %s724_s12  }
   0x3   : > { %s38_s17 = ssub.s32 %s605_s14, %s645_s16  ;;  %s41_s18 = sadd.s32 1, %s601_s13 }
   0x4   : > { %p39_p0 = scmp.eq.s32.totalorder %s38_s17, 0  ;;  %p48_p1 = scmp.ne.s32.totalorder %s601_s13, %s597_s12 }
   0x5   : > { %p49_p2 = scmp.eq.s32.totalorder %s605_s14, 0  ;;  %p99_p3 = scmp.eq.s32.totalorder %s488_s15, 4 }
   0x6   : > { %s656_s19 = scalar_select %p39_p0, %s601_s13, %s41_s18  }
   0x7   : > { %p50_p4 = por %p49_p2, %p48_p1  ;;  %p658_p5 = por %p99_p3, %p48_p1 }
   0x8   : > { %p491_p6 = scmp.ge.s32.totalorder %s605_s14, 5 }
   0xa   : > { %127 = sbr.rel (%p491_p6) target bundleno = 26 (0x1a), region = 24 }
   0xf   : > { %130 = sbr.rel (!%p50_p4) target bundleno = 26 (0x1a), region = 28  ;;  %s132_s21 = sand.u32 (%p50_p4), 1, %s601_s13  }
  0x10   : > { %s492_s22 = sshll.u32 (%p50_p4), %s605_s14, 2  ;;  %s553_s23 = smul.u32 (%p50_p4), 24, %s132_s21 }
  0x11   : > { %s136_s26 = scalar_lea.vmem (%p50_p4), %s720_s1, %s492_s22 }
  0x12   : > { %v153_v0 = vld [vmem:[%s136_s26] sm:$0xf] (%p50_p4)  ;;  %v155_v1 = vld [vmem:[%s136_s26 + $0x14] sm:$0xf] (%p50_p4)  ;;  %v157_v2 = vld [vmem:[%s136_s26 + $0x28] sm:$0xf] (%p50_p4) }
  0x13   : > { %s134_s27 = scalar_lea.vmem (%p50_p4), [#allocation2], %s553_s23  ;;  %v159_v3 = vld [vmem:[%s136_s26 + $0x3c] sm:$0xf] (%p50_p4)  ;;  %v161_v4 = vld [vmem:[%s136_s26 + $0x50] sm:$0xf] (%p50_p4) }
  0x14   : > { %154 = vst [vmem:[%s134_s27] sm:$0xf] %v153_v0  ;;  %v163_v5 = vld [vmem:[%s136_s26 + $0x64] sm:$0xf] }
  0x15   : > { %156 = vst [vmem:[%s134_s27 + $0x4] sm:$0xf] %v155_v1 }
  0x16   : > { %158 = vst [vmem:[%s134_s27 + $0x8] sm:$0xf] %v157_v2 }
  0x17   : > { %160 = vst [vmem:[%s134_s27 + $0xc] sm:$0xf] %v159_v3 }
  0x18   : > { %162 = vst [vmem:[%s134_s27 + $0x10] sm:$0xf] %v161_v4 }
  0x19   : > { %164 = vst [vmem:[%s134_s27 + $0x14] sm:$0xf] %v163_v5 }
  0x1a PF: > { %p493_p7 = scmp.ge.s32.totalorder %s605_s14, 1  ;;  %p199_p8 = scmp.lt.s32.totalorder %s605_s14, 6 }
  0x1c   : > { %p200_p9 = pnand %p493_p7, %p199_p8 }
  0x1d   : > { %s206_s28 = sand.u32 (!%p200_p9), 1, %s597_s12  }
  0x1e   : > { %203 = sbr.rel (%p200_p9) target bundleno = 207 (0xcf), region = 69 }
  0x1f   : > { %s671_s29 = smul.u32 (!%p200_p9), 24, %s206_s28 }
  0x21   : > { %s208_s9 = scalar_lea.vmem (!%p200_p9), [#allocation2], %s671_s29  ;;  %s227_s28 = scalar_lea.vmem (!%p200_p9), [#allocation3], %s671_s29 }
  0x23   : > { %v607_v6 = vmov 0   ;;  %v243_v7 = vld [vmem:[%s721_s2 + $0x10] sm:$0xff]  ;;  %v241_v8 = vld [vmem:[%s721_s2] sm:$0xff]  ;;  %v244_v12 = vld [vmem:[%s721_s2 + $0x18] sm:$0xff]  ;;  %vm310_vm0 = vcmask 392192   ;;  %s521_s30 = sshll.u32 (%p658_p5), %s488_s15, 2 }
  0x24   : > { %581 = vset.pattern.permute.xlu1 %v607_v6  ;;  %580 = vset.pattern.permute.xlu0 %v607_v6  ;;  %v245_v9 = vld [vmem:[%s721_s2 + $0x20] sm:$0xff]  ;;  %v529_v10 = vld [vmem:[%s208_s9 + $0x10] sm:$0xff]  ;;  %s370_s29 = scalar_lea.vmem (%p658_p5), %s722_s3, %s521_s30 }
  0x25   : > { %259 = vperm.xlu1 %581, %v243_v7   ;;  %249 = vperm.xlu0 %580, %v241_v8   ;;  %v528_v11 = vld [vmem:[%s208_s9 + $0x8] sm:$0xff]  ;;  %v527_v15 = vld [vmem:[%s208_s9] sm:$0xff]  ;;  %v526_v18 = vld [vmem:[%s719_s0 + $0x10] sm:$0xff] }
  0x26   : > { %582 = vset.pattern.permute.xlu2 %v607_v6  ;;  %325 = vmatpush.bf16.msra.mxu0 %v529_v10  ;;  %v242_v13 = vld [vmem:[%s721_s2 + $0x8] sm:$0xff]  ;;  %v524_v16 = vld [vmem:[%s719_s0] sm:$0xff] }
  0x27   : > { %269 = vperm.xlu2 %582, %v245_v9   ;;  %547 = vmatpush.bf16.msra.mxu1 %v529_v10  ;;  %v246_v14 = vld [vmem:[%s721_s2 + $0x28] sm:$0xff] }
  0x28   : > { %548 = vmatpush.bf16.msra.mxu2 %v529_v10  ;;  %v525_v17 = vld [vmem:[%s719_s0 + $0x8] sm:$0xff] }
  0x2a   : > { %326 = vmatpush.bf16.msra.mxu0 %v528_v11 }
  0x2b   : > { %549 = vmatpush.bf16.msra.mxu1 %v528_v11 }
  0x2c   : > { %550 = vmatpush.bf16.msra.mxu2 %v528_v11 }
  0x2d   : > { %264 = vperm.xlu1 %581, %v244_v12   ;;  %254 = vperm.xlu0 %580, %v242_v13  }
  0x2e   : > { %327 = vmatpush.bf16.msra.mxu0 %v527_v15 }
  0x2f   : > { %274 = vperm.xlu2 %582, %v246_v14   ;;  %551 = vmatpush.bf16.msra.mxu1 %v527_v15 }
  0x30   : > { %552 = vmatpush.bf16.msra.mxu2 %v527_v15 }
  0x31   : > { %518 = vmatmul.msk.bf16.vlgmr.msra.gmra.mxu0 %vm310_vm0, %v524_v16 }
  0x32   : > { %519 = vmatmul.msk.bf16.vlgmr.msra.gmra.mxu1 %vm310_vm0, %v525_v17 }
  0x33   : > { %520 = vmatmul.msk.bf16.vlgmr.msra.gmra.mxu2 %vm310_vm0, %v526_v18 }
  0x81   : > { %v270_v23 = vpop.permute.xlu2 %269 }
  0x89   : > { %v275_v40 = vpop.permute.xlu2 %274 }
  0x97   : > { %v260_v19 = vpop.permute.xlu1 %259  ;;  %v250_v20 = vpop.permute.xlu0 %249 }
  0x9f   : > { %v265_v24 = vpop.permute.xlu1 %264  ;;  %v255_v27 = vpop.permute.xlu0 %254 }
  0xae   : > { %v329_v21 = vpop.f32.mrf.mxu0 }
  0xaf   : > { %v334_v22 = vpop.f32.mrf.mxu1  ;;  %v330_v25 = vadd.f32 %v329_v21, %v250_v20 }
  0xb0   : > { %v335_v26 = vadd.f32 %v334_v22, %v260_v19 }
  0xb1   : > { %v344_v33 = vmax.f32 %v330_v25, 0.0 }
  0xb2   : > { %v346_v34 = vmax.f32 %v335_v26, 0.0 }
  0xb6   : > { %v339_v28 = vpop.f32.mrf.mxu2  ;;  %v331_v29 = vpop.f32.mrf.mxu0 }
  0xb7   : > { %v336_v30 = vpop.f32.mrf.mxu1  ;;  %v332_v31 = vadd.f32 %v331_v29, %v255_v27  ;;  %v340_v39 = vadd.f32 %v339_v28, %v270_v23 }
  0xb8   : > { %v337_v32 = vadd.f32 %v336_v30, %v265_v24 }
  0xb9   : > { %v345_v35 = vmax.f32 %v332_v31, 0.0  ;;  %v348_v43 = vmax.f32 %v340_v39, 0.0 }
  0xba   : > { %v347_v36 = vmax.f32 %v337_v32, 0.0 }
  0xbb   : > { %v533_v37 = vpack.c.bf16 %v345_v35, %v344_v33 }
  0xbc   : > { %v538_v38 = vpack.c.bf16 %v347_v36, %v346_v34 }
  0xbd   : > { %534 = vst [vmem:[%s227_s28] sm:$0xff] %v533_v37  }
  0xbe   : > { %v341_v41 = vpop.f32.mrf.mxu2  ;;  %545 = vst [vmem:[%s227_s28 + $0x8] sm:$0xff] %v538_v38  }
  0xbf   : > { %v342_v42 = vadd.f32 %v341_v41, %v275_v40 }
  0xc1   : > { %v349_v44 = vmax.f32 %v342_v42, 0.0  ;;  %368 = sbr.rel (!%p658_p5) target bundleno = 207 (0xcf), region = 77 }
  0xc3   : > { %v543_v45 = vpack.c.bf16 %v349_v44, %v348_v43 }
  0xc4   : > { %v387_v46 = vld [vmem:[%s227_s28] sm:$0xf] (%p658_p5)  ;;  %v389_v47 = vld [vmem:[%s227_s28 + $0x4] sm:$0xf] (%p658_p5) }
  0xc5   : > { %546 = vst [vmem:[%s227_s28 + $0x10] sm:$0xff] %v543_v45   ;;  %v391_v48 = vld [vmem:[%s227_s28 + $0x8] sm:$0xf] (%p658_p5)  ;;  %v393_v49 = vld [vmem:[%s227_s28 + $0xc] sm:$0xf] (%p658_p5) }
  0xc6   : > { %388 = vst [vmem:[%s370_s29] sm:$0xf] %v387_v46 }
  0xc7   : > { %390 = vst [vmem:[%s370_s29 + $0x14] sm:$0xf] %v389_v47 }
  0xc8   : > { %392 = vst [vmem:[%s370_s29 + $0x28] sm:$0xf] %v391_v48 }
  0xc9   : > { %394 = vst [vmem:[%s370_s29 + $0x3c] sm:$0xf] %v393_v49 }
  0xcc   : > { %v395_v50 = vld [vmem:[%s227_s28 + $0x10] sm:$0xf]  ;;  %v397_v51 = vld [vmem:[%s227_s28 + $0x14] sm:$0xf] }
  0xcd   : > { %396 = vst [vmem:[%s370_s29 + $0x50] sm:$0xf] %v395_v50 }
  0xce   : > { %398 = vst [vmem:[%s370_s29 + $0x64] sm:$0xf] %v397_v51 }
  0xcf PF: > { %p10_p10 = scmp.ge.s32.totalorder %s645_s16, 7   ;;  %s724_s12 = smov %s601_s13 }
  0xd0   : > { %s725_s13 = smov %s656_s19  ;;  %s726_s14 = smov %s645_s16 }
  0xd1   :  { %12 = sbr.rel (!%p10_p10) target bundleno = 2 (0x2), region = 149 }

// kernel: ddcd_lam_forward.16
= control target key start
LH: loop header
LB: loop body
LE: loop exit
PB: predicated region body
PF: predicated region fallthrough
CT: control target
= control target key end

     0   :  { %s2399_s12 = smov 0   ;;  %s2401_s13 = smov 0   ;;  %s2946_s0 = inlined_call_operand.vmem [shape: bf16[12,1296], index: 0, kind: input, shape index: {}]   ;;  %s2947_s1 = inlined_call_operand.vmem [shape: bf16[1296,640], index: 1, kind: input, shape index: {}]   ;;  %s2948_s2 = inlined_call_operand.vmem [shape: f32[12,1], index: 2, kind: input, shape index: {}]   ;;  %s2949_s3 = inlined_call_operand.vmem [shape: bf16[12,640], index: 3, kind: output, shape index: {}]  }
   0x1   :  { %s2403_s14 = smov 0  }
   0x2 LB: > { %s1854_s15 = sadd.s32 4294967295, %s2376_s14   ;;  %s2416_s16 = sadd.s32 1, %s2376_s14   ;;  %s2376_s14 = sphi %s2403_s14, %s2953_s14   ;;  %s2372_s13 = sphi %s2401_s13, %s2952_s13   ;;  %s2368_s12 = sphi %s2399_s12, %s2951_s12  }
   0x3   : > { %s38_s17 = ssub.s32 %s2376_s14, %s2416_s16  ;;  %s41_s18 = sadd.s32 1, %s2372_s13 }
   0x4   : > { %p39_p0 = scmp.eq.s32.totalorder %s38_s17, 0  ;;  %p48_p1 = scmp.ne.s32.totalorder %s2372_s13, %s2368_s12 }
   0x5   : > { %p49_p2 = scmp.eq.s32.totalorder %s2376_s14, 0  ;;  %p99_p3 = scmp.eq.s32.totalorder %s1854_s15, 4 }
   0x6   : > { %s2427_s19 = scalar_select %p39_p0, %s2372_s13, %s41_s18  }
   0x7   : > { %p50_p4 = por %p49_p2, %p48_p1  ;;  %p2429_p5 = por %p99_p3, %p48_p1 }
   0x8   : > { %p1857_p6 = scmp.ge.s32.totalorder %s2376_s14, 5 }
   0xa   : > { %127 = sbr.rel (%p1857_p6) target bundleno = 182 (0xb6), region = 24 }
   0xf   : > { %130 = sbr.rel (!%p50_p4) target bundleno = 182 (0xb6), region = 28  ;;  %s132_s21 = sand.u32 (%p50_p4), 1, %s2372_s13  }
  0x10   : > { %s1858_s22 = sshll.u32 (%p50_p4), %s2376_s14, 2  ;;  %s2326_s23 = smul.u32 (%p50_p4), 648, %s132_s21 }
  0x11   : > { %s2439_s26 = scalar_lea.vmem (%p50_p4), %s2947_s1, %s1858_s22 }
  0x12   : > { %v153_v0 = vld [vmem:[%s2439_s26] sm:$0xf] (%p50_p4)  ;;  %v155_v1 = vld [vmem:[%s2439_s26 + $0x14] sm:$0xf] (%p50_p4)  ;;  %v157_v2 = vld [vmem:[%s2439_s26 + $0x28] sm:$0xf] (%p50_p4) }
  0x13   : > { %s2444_s27 = scalar_lea.vmem (%p50_p4), [#allocation2], %s2326_s23  ;;  %v159_v3 = vld [vmem:[%s2439_s26 + $0x3c] sm:$0xf] (%p50_p4)  ;;  %v161_v4 = vld [vmem:[%s2439_s26 + $0x50] sm:$0xf] (%p50_p4) }
  0x14   : > { %154 = vst [vmem:[%s2444_s27] sm:$0xf] %v153_v0  ;;  %v163_v5 = vld [vmem:[%s2439_s26 + $0x64] sm:$0xf]  ;;  %v165_v6 = vld [vmem:[%s2439_s26 + $0x78] sm:$0xf] }
  0x15   : > { %156 = vst [vmem:[%s2444_s27 + $0x4] sm:$0xf] %v155_v1  ;;  %v167_v7 = vld [vmem:[%s2439_s26 + $0x8c] sm:$0xf]  ;;  %v169_v8 = vld [vmem:[%s2439_s26 + $0xa0] sm:$0xf] }
  0x16   : > { %158 = vst [vmem:[%s2444_s27 + $0x8] sm:$0xf] %v157_v2  ;;  %v171_v9 = vld [vmem:[%s2439_s26 + $0xb4] sm:$0xf]  ;;  %v173_v10 = vld [vmem:[%s2439_s26 + $0xc8] sm:$0xf] }
  0x17   : > { %160 = vst [vmem:[%s2444_s27 + $0xc] sm:$0xf] %v159_v3  ;;  %v175_v11 = vld [vmem:[%s2439_s26 + $0xdc] sm:$0xf]  ;;  %v177_v12 = vld [vmem:[%s2439_s26 + $0xf0] sm:$0xf] }
  0x18   : > { %162 = vst [vmem:[%s2444_s27 + $0x10] sm:$0xf] %v161_v4  ;;  %v179_v13 = vld [vmem:[%s2439_s26 + $0x104] sm:$0xf]  ;;  %v181_v14 = vld [vmem:[%s2439_s26 + $0x118] sm:$0xf] }
  0x19   : > { %164 = vst [vmem:[%s2444_s27 + $0x14] sm:$0xf] %v163_v5  ;;  %v183_v15 = vld [vmem:[%s2439_s26 + $0x12c] sm:$0xf]  ;;  %v185_v16 = vld [vmem:[%s2439_s26 + $0x140] sm:$0xf] }
  0x1a   : > { %166 = vst [vmem:[%s2444_s27 + $0x18] sm:$0xf] %v165_v6  ;;  %v187_v17 = vld [vmem:[%s2439_s26 + $0x154] sm:$0xf]  ;;  %v189_v18 = vld [vmem:[%s2439_s26 + $0x168] sm:$0xf] }
  0x1b   : > { %168 = vst [vmem:[%s2444_s27 + $0x1c] sm:$0xf] %v167_v7  ;;  %v191_v19 = vld [vmem:[%s2439_s26 + $0x17c] sm:$0xf]  ;;  %v193_v20 = vld [vmem:[%s2439_s26 + $0x190] sm:$0xf] }
  0x1c   : > { %170 = vst [vmem:[%s2444_s27 + $0x20] sm:$0xf] %v169_v8  ;;  %v195_v21 = vld [vmem:[%s2439_s26 + $0x1a4] sm:$0xf]  ;;  %v197_v22 = vld [vmem:[%s2439_s26 + $0x1b8] sm:$0xf] }
  0x1d   : > { %172 = vst [vmem:[%s2444_s27 + $0x24] sm:$0xf] %v171_v9  ;;  %v199_v23 = vld [vmem:[%s2439_s26 + $0x1cc] sm:$0xf]  ;;  %v201_v24 = vld [vmem:[%s2439_s26 + $0x1e0] sm:$0xf] }
  0x1e   : > { %174 = vst [vmem:[%s2444_s27 + $0x28] sm:$0xf] %v173_v10  ;;  %v203_v25 = vld [vmem:[%s2439_s26 + $0x1f4] sm:$0xf]  ;;  %v205_v26 = vld [vmem:[%s2439_s26 + $0x208] sm:$0xf] }
  0x1f   : > { %176 = vst [vmem:[%s2444_s27 + $0x2c] sm:$0xf] %v175_v11  ;;  %v207_v27 = vld [vmem:[%s2439_s26 + $0x21c] sm:$0xf]  ;;  %v209_v28 = vld [vmem:[%s2439_s26 + $0x230] sm:$0xf] }
  0x20   : > { %178 = vst [vmem:[%s2444_s27 + $0x30] sm:$0xf] %v177_v12  ;;  %v211_v29 = vld [vmem:[%s2439_s26 + $0x244] sm:$0xf]  ;;  %v213_v30 = vld [vmem:[%s2439_s26 + $0x258] sm:$0xf] }
  0x21   : > { %180 = vst [vmem:[%s2444_s27 + $0x34] sm:$0xf] %v179_v13  ;;  %v215_v31 = vld [vmem:[%s2439_s26 + $0x26c] sm:$0xf]  ;;  %v217_v32 = vld [vmem:[%s2439_s26 + $0x280] sm:$0xf] }
  0x22   : > { %182 = vst [vmem:[%s2444_s27 + $0x38] sm:$0xf] %v181_v14  ;;  %v219_v33 = vld [vmem:[%s2439_s26 + $0x294] sm:$0xf]  ;;  %v221_v34 = vld [vmem:[%s2439_s26 + $0x2a8] sm:$0xf] }
  0x23   : > { %184 = vst [vmem:[%s2444_s27 + $0x3c] sm:$0xf] %v183_v15  ;;  %v223_v35 = vld [vmem:[%s2439_s26 + $0x2bc] sm:$0xf]  ;;  %v225_v36 = vld [vmem:[%s2439_s26 + $0x2d0] sm:$0xf] }
  0x24   : > { %186 = vst [vmem:[%s2444_s27 + $0x40] sm:$0xf] %v185_v16  ;;  %v227_v37 = vld [vmem:[%s2439_s26 + $0x2e4] sm:$0xf]  ;;  %v229_v38 = vld [vmem:[%s2439_s26 + $0x2f8] sm:$0xf] }
  0x25   : > { %188 = vst [vmem:[%s2444_s27 + $0x44] sm:$0xf] %v187_v17  ;;  %v231_v39 = vld [vmem:[%s2439_s26 + $0x30c] sm:$0xf]  ;;  %v233_v40 = vld [vmem:[%s2439_s26 + $0x320] sm:$0xf] }
  0x26   : > { %190 = vst [vmem:[%s2444_s27 + $0x48] sm:$0xf] %v189_v18  ;;  %v235_v41 = vld [vmem:[%s2439_s26 + $0x334] sm:$0xf]  ;;  %v237_v42 = vld [vmem:[%s2439_s26 + $0x348] sm:$0xf] }
  0x27   : > { %192 = vst [vmem:[%s2444_s27 + $0x4c] sm:$0xf] %v191_v19  ;;  %v239_v43 = vld [vmem:[%s2439_s26 + $0x35c] sm:$0xf]  ;;  %v241_v44 = vld [vmem:[%s2439_s26 + $0x370] sm:$0xf] }
  0x28   : > { %194 = vst [vmem:[%s2444_s27 + $0x50] sm:$0xf] %v193_v20  ;;  %v243_v45 = vld [vmem:[%s2439_s26 + $0x384] sm:$0xf]  ;;  %v245_v46 = vld [vmem:[%s2439_s26 + $0x398] sm:$0xf] }
  0x29   : > { %196 = vst [vmem:[%s2444_s27 + $0x54] sm:$0xf] %v195_v21  ;;  %v247_v47 = vld [vmem:[%s2439_s26 + $0x3ac] sm:$0xf]  ;;  %v249_v48 = vld [vmem:[%s2439_s26 + $0x3c0] sm:$0xf] }
  0x2a   : > { %198 = vst [vmem:[%s2444_s27 + $0x58] sm:$0xf] %v197_v22  ;;  %v251_v49 = vld [vmem:[%s2439_s26 + $0x3d4] sm:$0xf]  ;;  %v253_v50 = vld [vmem:[%s2439_s26 + $0x3e8] sm:$0xf] }
  0x2b   : > { %200 = vst [vmem:[%s2444_s27 + $0x5c] sm:$0xf] %v199_v23  ;;  %v255_v51 = vld [vmem:[%s2439_s26 + $0x3fc] sm:$0xf]  ;;  %v257_v52 = vld [vmem:[%s2439_s26 + $0x410] sm:$0xf] }
  0x2c   : > { %202 = vst [vmem:[%s2444_s27 + $0x60] sm:$0xf] %v201_v24  ;;  %v259_v53 = vld [vmem:[%s2439_s26 + $0x424] sm:$0xf]  ;;  %v261_v54 = vld [vmem:[%s2439_s26 + $0x438] sm:$0xf] }
  0x2d   : > { %204 = vst [vmem:[%s2444_s27 + $0x64] sm:$0xf] %v203_v25  ;;  %v263_v55 = vld [vmem:[%s2439_s26 + $0x44c] sm:$0xf]  ;;  %v265_v56 = vld [vmem:[%s2439_s26 + $0x460] sm:$0xf] }
  0x2e   : > { %206 = vst [vmem:[%s2444_s27 + $0x68] sm:$0xf] %v205_v26  ;;  %v267_v57 = vld [vmem:[%s2439_s26 + $0x474] sm:$0xf]  ;;  %v269_v58 = vld [vmem:[%s2439_s26 + $0x488] sm:$0xf] }
  0x2f   : > { %208 = vst [vmem:[%s2444_s27 + $0x6c] sm:$0xf] %v207_v27  ;;  %v271_v59 = vld [vmem:[%s2439_s26 + $0x49c] sm:$0xf]  ;;  %v273_v60 = vld [vmem:[%s2439_s26 + $0x4b0] sm:$0xf] }
  0x30   : > { %210 = vst [vmem:[%s2444_s27 + $0x70] sm:$0xf] %v209_v28  ;;  %v275_v61 = vld [vmem:[%s2439_s26 + $0x4c4] sm:$0xf]  ;;  %v277_v62 = vld [vmem:[%s2439_s26 + $0x4d8] sm:$0xf] }
  0x31   : > { %212 = vst [vmem:[%s2444_s27 + $0x74] sm:$0xf] %v211_v29  ;;  %v279_v63 = vld [vmem:[%s2439_s26 + $0x4ec] sm:$0xf]  ;;  %v281_v0 = vld [vmem:[%s2439_s26 + $0x500] sm:$0xf] }
  0x32   : > { %214 = vst [vmem:[%s2444_s27 + $0x78] sm:$0xf] %v213_v30  ;;  %v283_v1 = vld [vmem:[%s2439_s26 + $0x514] sm:$0xf]  ;;  %v285_v2 = vld [vmem:[%s2439_s26 + $0x528] sm:$0xf] }
  0x33   : > { %216 = vst [vmem:[%s2444_s27 + $0x7c] sm:$0xf] %v215_v31  ;;  %v287_v3 = vld [vmem:[%s2439_s26 + $0x53c] sm:$0xf]  ;;  %v289_v4 = vld [vmem:[%s2439_s26 + $0x550] sm:$0xf] }
  0x34   : > { %218 = vst [vmem:[%s2444_s27 + $0x80] sm:$0xf] %v217_v32  ;;  %v291_v5 = vld [vmem:[%s2439_s26 + $0x564] sm:$0xf]  ;;  %v293_v6 = vld [vmem:[%s2439_s26 + $0x578] sm:$0xf] }
  0x35   : > { %220 = vst [vmem:[%s2444_s27 + $0x84] sm:$0xf] %v219_v33  ;;  %v295_v7 = vld [vmem:[%s2439_s26 + $0x58c] sm:$0xf]  ;;  %v297_v8 = vld [vmem:[%s2439_s26 + $0x5a0] sm:$0xf] }
  0x36   : > { %222 = vst [vmem:[%s2444_s27 + $0x88] sm:$0xf] %v221_v34  ;;  %v299_v9 = vld [vmem:[%s2439_s26 + $0x5b4] sm:$0xf]  ;;  %v301_v10 = vld [vmem:[%s2439_s26 + $0x5c8] sm:$0xf] }
  0x37   : > { %224 = vst [vmem:[%s2444_s27 + $0x8c] sm:$0xf] %v223_v35  ;;  %v303_v11 = vld [vmem:[%s2439_s26 + $0x5dc] sm:$0xf]  ;;  %v305_v12 = vld [vmem:[%s2439_s26 + $0x5f0] sm:$0xf] }
  0x38   : > { %226 = vst [vmem:[%s2444_s27 + $0x90] sm:$0xf] %v225_v36  ;;  %v307_v13 = vld [vmem:[%s2439_s26 + $0x604] sm:$0xf]  ;;  %v309_v14 = vld [vmem:[%s2439_s26 + $0x618] sm:$0xf] }
  0x39   : > { %228 = vst [vmem:[%s2444_s27 + $0x94] sm:$0xf] %v227_v37  ;;  %v311_v15 = vld [vmem:[%s2439_s26 + $0x62c] sm:$0xf]  ;;  %v313_v16 = vld [vmem:[%s2439_s26 + $0x640] sm:$0xf] }
  0x3a   : > { %230 = vst [vmem:[%s2444_s27 + $0x98] sm:$0xf] %v229_v38  ;;  %v315_v17 = vld [vmem:[%s2439_s26 + $0x654] sm:$0xf]  ;;  %v317_v18 = vld [vmem:[%s2439_s26 + $0x668] sm:$0xf] }
  0x3b   : > { %232 = vst [vmem:[%s2444_s27 + $0x9c] sm:$0xf] %v231_v39  ;;  %v319_v19 = vld [vmem:[%s2439_s26 + $0x67c] sm:$0xf]  ;;  %v321_v20 = vld [vmem:[%s2439_s26 + $0x690] sm:$0xf] }
  0x3c   : > { %234 = vst [vmem:[%s2444_s27 + $0xa0] sm:$0xf] %v233_v40  ;;  %v323_v21 = vld [vmem:[%s2439_s26 + $0x6a4] sm:$0xf]  ;;  %v325_v22 = vld [vmem:[%s2439_s26 + $0x6b8] sm:$0xf] }
  0x3d   : > { %236 = vst [vmem:[%s2444_s27 + $0xa4] sm:$0xf] %v235_v41  ;;  %v327_v23 = vld [vmem:[%s2439_s26 + $0x6cc] sm:$0xf]  ;;  %v329_v24 = vld [vmem:[%s2439_s26 + $0x6e0] sm:$0xf] }
  0x3e   : > { %238 = vst [vmem:[%s2444_s27 + $0xa8] sm:$0xf] %v237_v42  ;;  %v331_v25 = vld [vmem:[%s2439_s26 + $0x6f4] sm:$0xf]  ;;  %v333_v26 = vld [vmem:[%s2439_s26 + $0x708] sm:$0xf] }
  0x3f   : > { %240 = vst [vmem:[%s2444_s27 + $0xac] sm:$0xf] %v239_v43  ;;  %v335_v27 = vld [vmem:[%s2439_s26 + $0x71c] sm:$0xf]  ;;  %v337_v28 = vld [vmem:[%s2439_s26 + $0x730] sm:$0xf] }
  0x40   : > { %242 = vst [vmem:[%s2444_s27 + $0xb0] sm:$0xf] %v241_v44  ;;  %v339_v29 = vld [vmem:[%s2439_s26 + $0x744] sm:$0xf]  ;;  %v341_v30 = vld [vmem:[%s2439_s26 + $0x758] sm:$0xf] }
  0x41   : > { %244 = vst [vmem:[%s2444_s27 + $0xb4] sm:$0xf] %v243_v45  ;;  %v343_v31 = vld [vmem:[%s2439_s26 + $0x76c] sm:$0xf]  ;;  %v345_v32 = vld [vmem:[%s2439_s26 + $0x780] sm:$0xf] }
  0x42   : > { %246 = vst [vmem:[%s2444_s27 + $0xb8] sm:$0xf] %v245_v46  ;;  %v347_v33 = vld [vmem:[%s2439_s26 + $0x794] sm:$0xf]  ;;  %v349_v34 = vld [vmem:[%s2439_s26 + $0x7a8] sm:$0xf] }
  0x43   : > { %248 = vst [vmem:[%s2444_s27 + $0xbc] sm:$0xf] %v247_v47  ;;  %v351_v35 = vld [vmem:[%s2439_s26 + $0x7bc] sm:$0xf]  ;;  %v353_v36 = vld [vmem:[%s2439_s26 + $0x7d0] sm:$0xf] }
  0x44   : > { %250 = vst [vmem:[%s2444_s27 + $0xc0] sm:$0xf] %v249_v48  ;;  %v355_v37 = vld [vmem:[%s2439_s26 + $0x7e4] sm:$0xf]  ;;  %v357_v38 = vld [vmem:[%s2439_s26 + $0x7f8] sm:$0xf] }
  0x45   : > { %252 = vst [vmem:[%s2444_s27 + $0xc4] sm:$0xf] %v251_v49  ;;  %v359_v39 = vld [vmem:[%s2439_s26 + $0x80c] sm:$0xf]  ;;  %v361_v40 = vld [vmem:[%s2439_s26 + $0x820] sm:$0xf] }
  0x46   : > { %254 = vst [vmem:[%s2444_s27 + $0xc8] sm:$0xf] %v253_v50  ;;  %v363_v41 = vld [vmem:[%s2439_s26 + $0x834] sm:$0xf]  ;;  %v365_v42 = vld [vmem:[%s2439_s26 + $0x848] sm:$0xf] }
  0x47   : > { %256 = vst [vmem:[%s2444_s27 + $0xcc] sm:$0xf] %v255_v51  ;;  %v367_v43 = vld [vmem:[%s2439_s26 + $0x85c] sm:$0xf]  ;;  %v369_v44 = vld [vmem:[%s2439_s26 + $0x870] sm:$0xf] }
  0x48   : > { %258 = vst [vmem:[%s2444_s27 + $0xd0] sm:$0xf] %v257_v52  ;;  %v371_v45 = vld [vmem:[%s2439_s26 + $0x884] sm:$0xf]  ;;  %v373_v46 = vld [vmem:[%s2439_s26 + $0x898] sm:$0xf] }
  0x49   : > { %260 = vst [vmem:[%s2444_s27 + $0xd4] sm:$0xf] %v259_v53  ;;  %v375_v47 = vld [vmem:[%s2439_s26 + $0x8ac] sm:$0xf]  ;;  %v377_v48 = vld [vmem:[%s2439_s26 + $0x8c0] sm:$0xf] }
  0x4a   : > { %262 = vst [vmem:[%s2444_s27 + $0xd8] sm:$0xf] %v261_v54  ;;  %v379_v49 = vld [vmem:[%s2439_s26 + $0x8d4] sm:$0xf]  ;;  %v381_v50 = vld [vmem:[%s2439_s26 + $0x8e8] sm:$0xf] }
  0x4b   : > { %264 = vst [vmem:[%s2444_s27 + $0xdc] sm:$0xf] %v263_v55  ;;  %v383_v51 = vld [vmem:[%s2439_s26 + $0x8fc] sm:$0xf]  ;;  %v385_v52 = vld [vmem:[%s2439_s26 + $0x910] sm:$0xf] }
  0x4c   : > { %266 = vst [vmem:[%s2444_s27 + $0xe0] sm:$0xf] %v265_v56  ;;  %v387_v53 = vld [vmem:[%s2439_s26 + $0x924] sm:$0xf]  ;;  %v389_v54 = vld [vmem:[%s2439_s26 + $0x938] sm:$0xf] }
  0x4d   : > { %268 = vst [vmem:[%s2444_s27 + $0xe4] sm:$0xf] %v267_v57  ;;  %v391_v55 = vld [vmem:[%s2439_s26 + $0x94c] sm:$0xf]  ;;  %v393_v56 = vld [vmem:[%s2439_s26 + $0x960] sm:$0xf] }
  0x4e   : > { %270 = vst [vmem:[%s2444_s27 + $0xe8] sm:$0xf] %v269_v58  ;;  %v395_v57 = vld [vmem:[%s2439_s26 + $0x974] sm:$0xf]  ;;  %v397_v58 = vld [vmem:[%s2439_s26 + $0x988] sm:$0xf] }
  0x4f   : > { %272 = vst [vmem:[%s2444_s27 + $0xec] sm:$0xf] %v271_v59  ;;  %v399_v59 = vld [vmem:[%s2439_s26 + $0x99c] sm:$0xf] }
  0x50   : > { %274 = vst [vmem:[%s2444_s27 + $0xf0] sm:$0xf] %v273_v60  ;;  %v401_v60 = vld [vmem:[%s2439_s26 + $0x9b0] sm:$0xf] }
  0x51   : > { %276 = vst [vmem:[%s2444_s27 + $0xf4] sm:$0xf] %v275_v61  ;;  %v403_v61 = vld [vmem:[%s2439_s26 + $0x9c4] sm:$0xf] }
  0x52   : > { %278 = vst [vmem:[%s2444_s27 + $0xf8] sm:$0xf] %v277_v62  ;;  %v405_v62 = vld [vmem:[%s2439_s26 + $0x9d8] sm:$0xf] }
  0x53   : > { %280 = vst [vmem:[%s2444_s27 + $0xfc] sm:$0xf] %v279_v63  ;;  %v407_v63 = vld [vmem:[%s2439_s26 + $0x9ec] sm:$0xf] }
  0x54   : > { %282 = vst [vmem:[%s2444_s27 + $0x100] sm:$0xf] %v281_v0  ;;  %v409_v0 = vld [vmem:[%s2439_s26 + $0xa00] sm:$0xf] }
  0x55   : > { %284 = vst [vmem:[%s2444_s27 + $0x104] sm:$0xf] %v283_v1  ;;  %v411_v1 = vld [vmem:[%s2439_s26 + $0xa14] sm:$0xf] }
  0x56   : > { %286 = vst [vmem:[%s2444_s27 + $0x108] sm:$0xf] %v285_v2  ;;  %v413_v2 = vld [vmem:[%s2439_s26 + $0xa28] sm:$0xf] }
  0x57   : > { %288 = vst [vmem:[%s2444_s27 + $0x10c] sm:$0xf] %v287_v3  ;;  %v415_v3 = vld [vmem:[%s2439_s26 + $0xa3c] sm:$0xf] }
  0x58   : > { %290 = vst [vmem:[%s2444_s27 + $0x110] sm:$0xf] %v289_v4  ;;  %v417_v4 = vld [vmem:[%s2439_s26 + $0xa50] sm:$0xf] }
  0x59   : > { %292 = vst [vmem:[%s2444_s27 + $0x114] sm:$0xf] %v291_v5  ;;  %v419_v5 = vld [vmem:[%s2439_s26 + $0xa64] sm:$0xf] }
  0x5a   : > { %294 = vst [vmem:[%s2444_s27 + $0x118] sm:$0xf] %v293_v6  ;;  %v421_v6 = vld [vmem:[%s2439_s26 + $0xa78] sm:$0xf] }
  0x5b   : > { %296 = vst [vmem:[%s2444_s27 + $0x11c] sm:$0xf] %v295_v7  ;;  %v423_v7 = vld [vmem:[%s2439_s26 + $0xa8c] sm:$0xf] }
  0x5c   : > { %298 = vst [vmem:[%s2444_s27 + $0x120] sm:$0xf] %v297_v8  ;;  %v425_v8 = vld [vmem:[%s2439_s26 + $0xaa0] sm:$0xf] }
  0x5d   : > { %300 = vst [vmem:[%s2444_s27 + $0x124] sm:$0xf] %v299_v9  ;;  %v427_v9 = vld [vmem:[%s2439_s26 + $0xab4] sm:$0xf] }
  0x5e   : > { %302 = vst [vmem:[%s2444_s27 + $0x128] sm:$0xf] %v301_v10  ;;  %v429_v10 = vld [vmem:[%s2439_s26 + $0xac8] sm:$0xf] }
  0x5f   : > { %304 = vst [vmem:[%s2444_s27 + $0x12c] sm:$0xf] %v303_v11  ;;  %v431_v11 = vld [vmem:[%s2439_s26 + $0xadc] sm:$0xf] }
  0x60   : > { %306 = vst [vmem:[%s2444_s27 + $0x130] sm:$0xf] %v305_v12  ;;  %v433_v12 = vld [vmem:[%s2439_s26 + $0xaf0] sm:$0xf] }
  0x61   : > { %308 = vst [vmem:[%s2444_s27 + $0x134] sm:$0xf] %v307_v13  ;;  %v435_v13 = vld [vmem:[%s2439_s26 + $0xb04] sm:$0xf] }
  0x62   : > { %310 = vst [vmem:[%s2444_s27 + $0x138] sm:$0xf] %v309_v14  ;;  %v437_v14 = vld [vmem:[%s2439_s26 + $0xb18] sm:$0xf] }
  0x63   : > { %312 = vst [vmem:[%s2444_s27 + $0x13c] sm:$0xf] %v311_v15  ;;  %v439_v15 = vld [vmem:[%s2439_s26 + $0xb2c] sm:$0xf] }
  0x64   : > { %314 = vst [vmem:[%s2444_s27 + $0x140] sm:$0xf] %v313_v16  ;;  %v441_v16 = vld [vmem:[%s2439_s26 + $0xb40] sm:$0xf] }
  0x65   : > { %316 = vst [vmem:[%s2444_s27 + $0x144] sm:$0xf] %v315_v17  ;;  %v443_v17 = vld [vmem:[%s2439_s26 + $0xb54] sm:$0xf] }
  0x66   : > { %318 = vst [vmem:[%s2444_s27 + $0x148] sm:$0xf] %v317_v18  ;;  %v445_v18 = vld [vmem:[%s2439_s26 + $0xb68] sm:$0xf] }
  0x67   : > { %320 = vst [vmem:[%s2444_s27 + $0x14c] sm:$0xf] %v319_v19  ;;  %v447_v19 = vld [vmem:[%s2439_s26 + $0xb7c] sm:$0xf] }
  0x68   : > { %322 = vst [vmem:[%s2444_s27 + $0x150] sm:$0xf] %v321_v20  ;;  %v449_v20 = vld [vmem:[%s2439_s26 + $0xb90] sm:$0xf] }
  0x69   : > { %324 = vst [vmem:[%s2444_s27 + $0x154] sm:$0xf] %v323_v21  ;;  %v451_v21 = vld [vmem:[%s2439_s26 + $0xba4] sm:$0xf] }
  0x6a   : > { %326 = vst [vmem:[%s2444_s27 + $0x158] sm:$0xf] %v325_v22  ;;  %v453_v22 = vld [vmem:[%s2439_s26 + $0xbb8] sm:$0xf] }
  0x6b   : > { %328 = vst [vmem:[%s2444_s27 + $0x15c] sm:$0xf] %v327_v23  ;;  %v455_v23 = vld [vmem:[%s2439_s26 + $0xbcc] sm:$0xf] }
  0x6c   : > { %330 = vst [vmem:[%s2444_s27 + $0x160] sm:$0xf] %v329_v24  ;;  %v457_v24 = vld [vmem:[%s2439_s26 + $0xbe0] sm:$0xf] }
  0x6d   : > { %332 = vst [vmem:[%s2444_s27 + $0x164] sm:$0xf] %v331_v25  ;;  %v459_v25 = vld [vmem:[%s2439_s26 + $0xbf4] sm:$0xf] }
  0x6e   : > { %334 = vst [vmem:[%s2444_s27 + $0x168] sm:$0xf] %v333_v26  ;;  %v461_v26 = vld [vmem:[%s2439_s26 + $0xc08] sm:$0xf] }
  0x6f   : > { %336 = vst [vmem:[%s2444_s27 + $0x16c] sm:$0xf] %v335_v27  ;;  %v463_v27 = vld [vmem:[%s2439_s26 + $0xc1c] sm:$0xf] }
  0x70   : > { %338 = vst [vmem:[%s2444_s27 + $0x170] sm:$0xf] %v337_v28  ;;  %v465_v28 = vld [vmem:[%s2439_s26 + $0xc30] sm:$0xf] }
  0x71   : > { %340 = vst [vmem:[%s2444_s27 + $0x174] sm:$0xf] %v339_v29  ;;  %v467_v29 = vld [vmem:[%s2439_s26 + $0xc44] sm:$0xf] }
  0x72   : > { %342 = vst [vmem:[%s2444_s27 + $0x178] sm:$0xf] %v341_v30  ;;  %v469_v30 = vld [vmem:[%s2439_s26 + $0xc58] sm:$0xf] }
  0x73   : > { %344 = vst [vmem:[%s2444_s27 + $0x17c] sm:$0xf] %v343_v31  ;;  %v471_v31 = vld [vmem:[%s2439_s26 + $0xc6c] sm:$0xf] }
  0x74   : > { %346 = vst [vmem:[%s2444_s27 + $0x180] sm:$0xf] %v345_v32  ;;  %v473_v32 = vld [vmem:[%s2439_s26 + $0xc80] sm:$0xf] }
  0x75   : > { %348 = vst [vmem:[%s2444_s27 + $0x184] sm:$0xf] %v347_v33  ;;  %v475_v33 = vld [vmem:[%s2439_s26 + $0xc94] sm:$0xf] }
  0x76   : > { %350 = vst [vmem:[%s2444_s27 + $0x188] sm:$0xf] %v349_v34 }
  0x77   : > { %352 = vst [vmem:[%s2444_s27 + $0x18c] sm:$0xf] %v351_v35 }
  0x78   : > { %354 = vst [vmem:[%s2444_s27 + $0x190] sm:$0xf] %v353_v36 }
  0x79   : > { %356 = vst [vmem:[%s2444_s27 + $0x194] sm:$0xf] %v355_v37 }
  0x7a   : > { %358 = vst [vmem:[%s2444_s27 + $0x198] sm:$0xf] %v357_v38 }
  0x7b   : > { %360 = vst [vmem:[%s2444_s27 + $0x19c] sm:$0xf] %v359_v39 }
  0x7c   : > { %362 = vst [vmem:[%s2444_s27 + $0x1a0] sm:$0xf] %v361_v40 }
  0x7d   : > { %364 = vst [vmem:[%s2444_s27 + $0x1a4] sm:$0xf] %v363_v41 }
  0x7e   : > { %366 = vst [vmem:[%s2444_s27 + $0x1a8] sm:$0xf] %v365_v42 }
  0x7f   : > { %368 = vst [vmem:[%s2444_s27 + $0x1ac] sm:$0xf] %v367_v43 }
  0x80   : > { %370 = vst [vmem:[%s2444_s27 + $0x1b0] sm:$0xf] %v369_v44 }
  0x81   : > { %372 = vst [vmem:[%s2444_s27 + $0x1b4] sm:$0xf] %v371_v45 }
  0x82   : > { %374 = vst [vmem:[%s2444_s27 + $0x1b8] sm:$0xf] %v373_v46 }
  0x83   : > { %376 = vst [vmem:[%s2444_s27 + $0x1bc] sm:$0xf] %v375_v47 }
  0x84   : > { %378 = vst [vmem:[%s2444_s27 + $0x1c0] sm:$0xf] %v377_v48 }
  0x85   : > { %380 = vst [vmem:[%s2444_s27 + $0x1c4] sm:$0xf] %v379_v49 }
  0x86   : > { %382 = vst [vmem:[%s2444_s27 + $0x1c8] sm:$0xf] %v381_v50 }
  0x87   : > { %384 = vst [vmem:[%s2444_s27 + $0x1cc] sm:$0xf] %v383_v51 }
  0x88   : > { %386 = vst [vmem:[%s2444_s27 + $0x1d0] sm:$0xf] %v385_v52 }
  0x89   : > { %388 = vst [vmem:[%s2444_s27 + $0x1d4] sm:$0xf] %v387_v53 }
  0x8a   : > { %390 = vst [vmem:[%s2444_s27 + $0x1d8] sm:$0xf] %v389_v54 }
  0x8b   : > { %392 = vst [vmem:[%s2444_s27 + $0x1dc] sm:$0xf] %v391_v55 }
  0x8c   : > { %394 = vst [vmem:[%s2444_s27 + $0x1e0] sm:$0xf] %v393_v56 }
  0x8d   : > { %396 = vst [vmem:[%s2444_s27 + $0x1e4] sm:$0xf] %v395_v57 }
  0x8e   : > { %398 = vst [vmem:[%s2444_s27 + $0x1e8] sm:$0xf] %v397_v58 }
  0x8f   : > { %400 = vst [vmem:[%s2444_s27 + $0x1ec] sm:$0xf] %v399_v59 }
  0x90   : > { %402 = vst [vmem:[%s2444_s27 + $0x1f0] sm:$0xf] %v401_v60 }
  0x91   : > { %404 = vst [vmem:[%s2444_s27 + $0x1f4] sm:$0xf] %v403_v61 }
  0x92   : > { %406 = vst [vmem:[%s2444_s27 + $0x1f8] sm:$0xf] %v405_v62 }
  0x93   : > { %408 = vst [vmem:[%s2444_s27 + $0x1fc] sm:$0xf] %v407_v63 }
  0x94   : > { %410 = vst [vmem:[%s2444_s27 + $0x200] sm:$0xf] %v409_v0 }
  0x95   : > { %412 = vst [vmem:[%s2444_s27 + $0x204] sm:$0xf] %v411_v1 }
  0x96   : > { %414 = vst [vmem:[%s2444_s27 + $0x208] sm:$0xf] %v413_v2 }
  0x97   : > { %416 = vst [vmem:[%s2444_s27 + $0x20c] sm:$0xf] %v415_v3 }
  0x98   : > { %418 = vst [vmem:[%s2444_s27 + $0x210] sm:$0xf] %v417_v4 }
  0x99   : > { %420 = vst [vmem:[%s2444_s27 + $0x214] sm:$0xf] %v419_v5 }
  0x9a   : > { %422 = vst [vmem:[%s2444_s27 + $0x218] sm:$0xf] %v421_v6 }
  0x9b   : > { %424 = vst [vmem:[%s2444_s27 + $0x21c] sm:$0xf] %v423_v7 }
  0x9c   : > { %426 = vst [vmem:[%s2444_s27 + $0x220] sm:$0xf] %v425_v8 }
  0x9d   : > { %428 = vst [vmem:[%s2444_s27 + $0x224] sm:$0xf] %v427_v9 }
  0x9e   : > { %430 = vst [vmem:[%s2444_s27 + $0x228] sm:$0xf] %v429_v10 }
  0x9f   : > { %432 = vst [vmem:[%s2444_s27 + $0x22c] sm:$0xf] %v431_v11 }
  0xa0   : > { %434 = vst [vmem:[%s2444_s27 + $0x230] sm:$0xf] %v433_v12 }
  0xa1   : > { %436 = vst [vmem:[%s2444_s27 + $0x234] sm:$0xf] %v435_v13 }
  0xa2   : > { %438 = vst [vmem:[%s2444_s27 + $0x238] sm:$0xf] %v437_v14 }
  0xa3   : > { %440 = vst [vmem:[%s2444_s27 + $0x23c] sm:$0xf] %v439_v15 }
  0xa4   : > { %442 = vst [vmem:[%s2444_s27 + $0x240] sm:$0xf] %v441_v16 }
  0xa5   : > { %444 = vst [vmem:[%s2444_s27 + $0x244] sm:$0xf] %v443_v17 }
  0xa6   : > { %446 = vst [vmem:[%s2444_s27 + $0x248] sm:$0xf] %v445_v18 }
  0xa7   : > { %448 = vst [vmem:[%s2444_s27 + $0x24c] sm:$0xf] %v447_v19 }
  0xa8   : > { %450 = vst [vmem:[%s2444_s27 + $0x250] sm:$0xf] %v449_v20 }
  0xa9   : > { %452 = vst [vmem:[%s2444_s27 + $0x254] sm:$0xf] %v451_v21 }
  0xaa   : > { %454 = vst [vmem:[%s2444_s27 + $0x258] sm:$0xf] %v453_v22 }
  0xab   : > { %456 = vst [vmem:[%s2444_s27 + $0x25c] sm:$0xf] %v455_v23 }
  0xac   : > { %458 = vst [vmem:[%s2444_s27 + $0x260] sm:$0xf] %v457_v24 }
  0xad   : > { %460 = vst [vmem:[%s2444_s27 + $0x264] sm:$0xf] %v459_v25 }
  0xae   : > { %462 = vst [vmem:[%s2444_s27 + $0x268] sm:$0xf] %v461_v26 }
  0xaf   : > { %464 = vst [vmem:[%s2444_s27 + $0x26c] sm:$0xf] %v463_v27 }
  0xb0   : > { %466 = vst [vmem:[%s2444_s27 + $0x270] sm:$0xf] %v465_v28 }
  0xb1   : > { %468 = vst [vmem:[%s2444_s27 + $0x274] sm:$0xf] %v467_v29 }
  0xb2   : > { %470 = vst [vmem:[%s2444_s27 + $0x278] sm:$0xf] %v469_v30 }
  0xb3   : > { %472 = vst [vmem:[%s2444_s27 + $0x27c] sm:$0xf] %v471_v31 }
  0xb4   : > { %474 = vst [vmem:[%s2444_s27 + $0x280] sm:$0xf] %v473_v32 }
  0xb5   : > { %476 = vst [vmem:[%s2444_s27 + $0x284] sm:$0xf] %v475_v33 }
  0xb6 PF: > { %p1859_p7 = scmp.ge.s32.totalorder %s2376_s14, 1  ;;  %p823_p8 = scmp.lt.s32.totalorder %s2376_s14, 6 }
  0xb8   : > { %p824_p9 = pnand %p1859_p7, %p823_p8 }
  0xb9   : > { %s830_s28 = sand.u32 (!%p824_p9), 1, %s2368_s12  }
  0xba   : > { %827 = sbr.rel (%p824_p9) target bundleno = 440 (0x1b8), region = 69 }
  0xbb   : > { %s2327_s29 = smul.u32 (!%p824_p9), 648, %s830_s28 }
  0xbd   : > { %s2772_s30 = scalar_lea.vmem (!%p824_p9), [#allocation2], %s2327_s29 }
  0xbf   : > { %v2252_v34 = vld [vmem:[%s2772_s30 + $0x38] sm:$0xff]  ;;  %v2251_v38 = vld [vmem:[%s2772_s30 + $0x30] sm:$0xff]  ;;  %v2250_v42 = vld [vmem:[%s2772_s30 + $0x28] sm:$0xff]  ;;  %v2378_v26 = vmov 0   ;;  %vm1580_vm0 = vcmask 130048   ;;  %s2231_s12 = sshll.u32 (%p2429_p5), %s1854_s15, 2 }
  0xc0   : > { %v2260_v35 = vld [vmem:[%s2772_s30 + $0x78] sm:$0xff]  ;;  %1584 = vmatpush.bf16.msra.mxu0 %v2252_v34  ;;  %v2259_v39 = vld [vmem:[%s2772_s30 + $0x70] sm:$0xff]  ;;  %v2258_v43 = vld [vmem:[%s2772_s30 + $0x68] sm:$0xff]  ;;  %2353 = vset.pattern.permute.xlu0 %v2378_v26  ;;  %s1752_s25 = scalar_lea.vmem (%p2429_p5), %s2949_s3, %s2231_s12 }
  0xc1   : > { %v2268_v36 = vld [vmem:[%s2772_s30 + $0xb8] sm:$0xff]  ;;  %1598 = vmatpush.bf16.msra.mxu1 %v2260_v35  ;;  %v2267_v40 = vld [vmem:[%s2772_s30 + $0xb0] sm:$0xff]  ;;  %v2266_v44 = vld [vmem:[%s2772_s30 + $0xa8] sm:$0xff] }
  0xc2   : > { %v2276_v37 = vld [vmem:[%s2772_s30 + $0xf8] sm:$0xff]  ;;  %1612 = vmatpush.bf16.msra.mxu2 %v2268_v36  ;;  %v2275_v41 = vld [vmem:[%s2772_s30 + $0xf0] sm:$0xff]  ;;  %v2274_v45 = vld [vmem:[%s2772_s30 + $0xe8] sm:$0xff] }
  0xc3   : > { %1626 = vmatpush.bf16.msra.mxu3 %v2276_v37  ;;  %v2249_v46 = vld [vmem:[%s2772_s30 + $0x20] sm:$0xff]  ;;  %v2248_v50 = vld [vmem:[%s2772_s30 + $0x18] sm:$0xff]  ;;  %v2247_v54 = vld [vmem:[%s2772_s30 + $0x10] sm:$0xff] }
  0xc4   : > { %1585 = vmatpush.bf16.msra.mxu0 %v2251_v38  ;;  %v2257_v47 = vld [vmem:[%s2772_s30 + $0x60] sm:$0xff]  ;;  %v2256_v51 = vld [vmem:[%s2772_s30 + $0x58] sm:$0xff]  ;;  %v2255_v55 = vld [vmem:[%s2772_s30 + $0x50] sm:$0xff] }
  0xc5   : > { %1599 = vmatpush.bf16.msra.mxu1 %v2259_v39  ;;  %v2265_v48 = vld [vmem:[%s2772_s30 + $0xa0] sm:$0xff]  ;;  %v2264_v52 = vld [vmem:[%s2772_s30 + $0x98] sm:$0xff]  ;;  %v2263_v56 = vld [vmem:[%s2772_s30 + $0x90] sm:$0xff] }
  0xc6   : > { %1613 = vmatpush.bf16.msra.mxu2 %v2267_v40  ;;  %v2273_v49 = vld [vmem:[%s2772_s30 + $0xe0] sm:$0xff]  ;;  %v2272_v53 = vld [vmem:[%s2772_s30 + $0xd8] sm:$0xff]  ;;  %v2271_v57 = vld [vmem:[%s2772_s30 + $0xd0] sm:$0xff] }
  0xc7   : > { %1627 = vmatpush.bf16.msra.mxu3 %v2275_v41  ;;  %v2246_v58 = vld [vmem:[%s2772_s30 + $0x8] sm:$0xff]  ;;  %v2245_v62 = vld [vmem:[%s2772_s30] sm:$0xff]  ;;  %v2284_v1 = vld [vmem:[%s2772_s30 + $0x138] sm:$0xff] }
  0xc8   : > { %1586 = vmatpush.bf16.msra.mxu0 %v2250_v42  ;;  %v2254_v59 = vld [vmem:[%s2772_s30 + $0x48] sm:$0xff]  ;;  %v2253_v63 = vld [vmem:[%s2772_s30 + $0x40] sm:$0xff]  ;;  %v2292_v4 = vld [vmem:[%s2772_s30 + $0x178] sm:$0xff] }
  0xc9   : > { %1600 = vmatpush.bf16.msra.mxu1 %v2258_v43  ;;  %v2262_v60 = vld [vmem:[%s2772_s30 + $0x88] sm:$0xff]  ;;  %v2261_v0 = vld [vmem:[%s2772_s30 + $0x80] sm:$0xff]  ;;  %v2300_v7 = vld [vmem:[%s2772_s30 + $0x1b8] sm:$0xff] }
  0xca   : > { %1614 = vmatpush.bf16.msra.mxu2 %v2266_v44  ;;  %v2270_v61 = vld [vmem:[%s2772_s30 + $0xc8] sm:$0xff]  ;;  %v1863_v2 = vld [vmem:[%s2946_s0] sm:$0xf]  ;;  %v2234_v8 = vld [vmem:[%s2946_s0 + $0x4] sm:$0xf] }
  0xcb   : > { %1628 = vmatpush.bf16.msra.mxu3 %v2274_v45  ;;  %v2239_v3 = vld [vmem:[%s2946_s0 + $0x28] sm:$0x30]  ;;  %v1871_v5 = vld [vmem:[%s2946_s0 + $0x8] sm:$0xf]  ;;  %v2240_v6 = vld [vmem:[%s2946_s0 + $0x30] sm:$0x30] }
  0xcc   : > { %1587 = vmatpush.bf16.msra.mxu0 %v2249_v46  ;;  %v1865_v9 = vld [vmem:[%s2946_s0 + $0x2c] sm:$0x30]  ;;  %v2269_v10 = vld [vmem:[%s2772_s30 + $0xc0] sm:$0xff]  ;;  %v1864_v11 = vor.u32 %v2239_v3, %v1863_v2  ;;  %v2308_v12 = vld [vmem:[%s2772_s30 + $0x1f8] sm:$0xff]  ;;  %v1872_v13 = vor.u32 %v2240_v6, %v1871_v5 }
  0xcd   : > { %1601 = vmatpush.bf16.msra.mxu1 %v2257_v47  ;;  %v2235_v14 = vld [vmem:[%s2946_s0 + $0xc] sm:$0xf]  ;;  %v1873_v15 = vld [vmem:[%s2946_s0 + $0x34] sm:$0x30]  ;;  %v1868_v17 = vor.u32 %v2234_v8, %v1865_v9  ;;  %v1027_v23 = vld [vmem:[%s2948_s2] sm:$0xff] }
  0xce   : > { %1615 = vmatpush.bf16.msra.mxu2 %v2265_v48  ;;  %v2283_v16 = vld [vmem:[%s2772_s30 + $0x130] sm:$0xff]  ;;  %v1876_v20 = vor.u32 %v2235_v14, %v1873_v15  ;;  %v2282_v22 = vld [vmem:[%s2772_s30 + $0x128] sm:$0xff]  ;;  %1031 = vperm.xlu0 %2353, %v1027_v23   ;;  %v2281_v28 = vld [vmem:[%s2772_s30 + $0x120] sm:$0xff] }
  0xcf   : > { %1629 = vmatpush.bf16.msra.mxu3 %v2273_v49  ;;  %v2291_v18 = vld [vmem:[%s2772_s30 + $0x170] sm:$0xff]  ;;  %v2290_v24 = vld [vmem:[%s2772_s30 + $0x168] sm:$0xff]  ;;  %v2289_v29 = vld [vmem:[%s2772_s30 + $0x160] sm:$0xff] }
  0xd0   : > { %1588 = vmatpush.bf16.msra.mxu0 %v2248_v50  ;;  %v2299_v19 = vld [vmem:[%s2772_s30 + $0x1b0] sm:$0xff]  ;;  %v2298_v25 = vld [vmem:[%s2772_s30 + $0x1a8] sm:$0xff]  ;;  %v2297_v30 = vld [vmem:[%s2772_s30 + $0x1a0] sm:$0xff] }
  0xd1   : > { %1602 = vmatpush.bf16.msra.mxu1 %v2256_v51  ;;  %v2307_v21 = vld [vmem:[%s2772_s30 + $0x1f0] sm:$0xff]  ;;  %v2306_v27 = vld [vmem:[%s2772_s30 + $0x1e8] sm:$0xff]  ;;  %v2305_v31 = vld [vmem:[%s2772_s30 + $0x1e0] sm:$0xff] }
  0xd2   : > { %1616 = vmatpush.bf16.msra.mxu2 %v2264_v52  ;;  %v2280_v32 = vld [vmem:[%s2772_s30 + $0x118] sm:$0xff]  ;;  %v1028_v33 = vld [vmem:[%s2948_s2 + $0x8] sm:$0xf]  ;;  %v2279_v37 = vld [vmem:[%s2772_s30 + $0x110] sm:$0xff] }
  0xd3   : > { %1630 = vmatpush.bf16.msra.mxu3 %v2272_v53  ;;  %v2288_v34 = vld [vmem:[%s2772_s30 + $0x158] sm:$0xff]  ;;  %v2287_v38 = vld [vmem:[%s2772_s30 + $0x150] sm:$0xff]  ;;  %v2278_v41 = vld [vmem:[%s2772_s30 + $0x108] sm:$0xff] }
  0xd4   : > { %1589 = vmatpush.bf16.msra.mxu0 %v2247_v54  ;;  %v2296_v35 = vld [vmem:[%s2772_s30 + $0x198] sm:$0xff]  ;;  %v2295_v39 = vld [vmem:[%s2772_s30 + $0x190] sm:$0xff]  ;;  %v2286_v42 = vld [vmem:[%s2772_s30 + $0x148] sm:$0xff] }
  0xd5   : > { %1603 = vmatpush.bf16.msra.mxu1 %v2255_v55  ;;  %v2304_v36 = vld [vmem:[%s2772_s30 + $0x1d8] sm:$0xff]  ;;  %v2303_v40 = vld [vmem:[%s2772_s30 + $0x1d0] sm:$0xff]  ;;  %v2294_v43 = vld [vmem:[%s2772_s30 + $0x188] sm:$0xff] }
  0xd6   : > { %1617 = vmatpush.bf16.msra.mxu2 %v2263_v56  ;;  %1036 = vperm.xlu0 %2353, %v1028_v33   ;;  %v2302_v44 = vld [vmem:[%s2772_s30 + $0x1c8] sm:$0xff]  ;;  %v2277_v45 = vld [vmem:[%s2772_s30 + $0x100] sm:$0xff]  ;;  %v2241_v49 = vld [vmem:[%s2946_s0 + $0x38] sm:$0x30] }
  0xd7   : > { %1631 = vmatpush.bf16.msra.mxu3 %v2271_v57  ;;  %v2285_v46 = vld [vmem:[%s2772_s30 + $0x140] sm:$0xff]  ;;  %v1879_v48 = vld [vmem:[%s2946_s0 + $0x10] sm:$0xf]  ;;  %v1887_v50 = vld [vmem:[%s2946_s0 + $0x18] sm:$0xf] }
  0xd8   : > { %1590 = vmatpush.bf16.msra.mxu0 %v2246_v58  ;;  %v2293_v47 = vld [vmem:[%s2772_s30 + $0x180] sm:$0xff]  ;;  %v2236_v52 = vld [vmem:[%s2946_s0 + $0x14] sm:$0xf]  ;;  %v2316_v54 = vld [vmem:[%s2772_s30 + $0x238] sm:$0xff]  ;;  %v1880_v57 = vor.u32 %v2241_v49, %v1879_v48 }
  0xd9   : > { %1604 = vmatpush.bf16.msra.mxu1 %v2254_v59  ;;  %v2242_v51 = vld [vmem:[%s2946_s0 + $0x40] sm:$0x30]  ;;  %v1881_v53 = vld [vmem:[%s2946_s0 + $0x3c] sm:$0x30]  ;;  %v2237_v58 = vld [vmem:[%s2946_s0 + $0x1c] sm:$0xf] }
  0xda   : > { %1618 = vmatpush.bf16.msra.mxu2 %v2262_v60  ;;  %v2324_v55 = vld [vmem:[%s2772_s30 + $0x278] sm:$0xff]  ;;  %v2301_v56 = vld [vmem:[%s2772_s30 + $0x1c0] sm:$0xff]  ;;  %v1888_v60 = vor.u32 %v2242_v51, %v1887_v50  ;;  %v2314_v2 = vld [vmem:[%s2772_s30 + $0x228] sm:$0xff] }
  0xdb   : > { %1632 = vmatpush.bf16.msra.mxu3 %v2270_v61  ;;  %v1889_v59 = vld [vmem:[%s2946_s0 + $0x44] sm:$0x30]  ;;  %v1884_v61 = vor.u32 %v2236_v52, %v1881_v53  ;;  %v2312_v8 = vld [vmem:[%s2772_s30 + $0x218] sm:$0xff] }
  0xdc   : > { %1591 = vmatpush.bf16.msra.mxu0 %v2245_v62  ;;  %v2325_v62 = vld [vmem:[%s2772_s30 + $0x280] sm:$0xff]  ;;  %v2322_v3 = vld [vmem:[%s2772_s30 + $0x268] sm:$0xff]  ;;  %v2320_v9 = vld [vmem:[%s2772_s30 + $0x258] sm:$0xff] }
  0xdd   : > { %1605 = vmatpush.bf16.msra.mxu1 %v2253_v63  ;;  %v1892_v63 = vor.u32 %v2237_v58, %v1889_v59  ;;  %v2321_v5 = vld [vmem:[%s2772_s30 + $0x260] sm:$0xff]  ;;  %v2318_v14 = vld [vmem:[%s2772_s30 + $0x248] sm:$0xff] }
  0xde   : > { %1619 = vmatpush.bf16.msra.mxu2 %v2261_v0  ;;  %v2315_v0 = vld [vmem:[%s2772_s30 + $0x230] sm:$0xff]  ;;  %v1903_v6 = vld [vmem:[%s2946_s0 + $0x28] sm:$0xf] }
  0xdf   : > { %1633 = vmatpush.bf16.msra.mxu3 %v2269_v10  ;;  %1592 = vmatmul.bf16.vlgmr.msra.gmra.mxu0 %v1864_v11  ;;  %v2311_v11 = vld [vmem:[%s2772_s30 + $0x210] sm:$0xff]  ;;  %v2309_v15 = vld [vmem:[%s2772_s30 + $0x200] sm:$0xff] }
  0xe0   : > { %1640 = vmatpush.bf16.msrb.mxu0 %v2284_v1  ;;  %1606 = vmatmul.bf16.vlgmr.msra.gmra.mxu1 %v1868_v17  ;;  %v2323_v1 = vld [vmem:[%s2772_s30 + $0x270] sm:$0xff]  ;;  %v2243_v17 = vld [vmem:[%s2946_s0 + $0x48] sm:$0x30] }
  0xe1   : > { %1654 = vmatpush.bf16.msrb.mxu1 %v2292_v4  ;;  %1620 = vmatmul.bf16.vlgmr.msra.gmra.mxu2 %v1872_v13  ;;  %v2313_v4 = vld [vmem:[%s2772_s30 + $0x220] sm:$0xff]  ;;  %v2310_v13 = vld [vmem:[%s2772_s30 + $0x208] sm:$0xff] }
  0xe2   : > { %1668 = vmatpush.bf16.msrb.mxu2 %v2300_v7  ;;  %1634 = vmatmul.bf16.vlgmr.msra.gmra.mxu3 %v1876_v20  ;;  %v2244_v7 = vld [vmem:[%s2946_s0 + $0x50] sm:$0x30]  ;;  %v1897_v20 = vld [vmem:[%s2946_s0 + $0x4c] sm:$0x30] }
  0xe3   : > { %1682 = vmatpush.bf16.msrb.mxu3 %v2308_v12  ;;  %v1904_v10 = vor.u32 %v2244_v7, %v1903_v6  ;;  %v2319_v12 = vld [vmem:[%s2772_s30 + $0x250] sm:$0xff] }
  0xe4   : > { %1641 = vmatpush.bf16.msrb.mxu0 %v2283_v16  ;;  %v1895_v16 = vld [vmem:[%s2946_s0 + $0x20] sm:$0xf] }
  0xe5   : > { %1655 = vmatpush.bf16.msrb.mxu1 %v2291_v18  ;;  %v2317_v18 = vld [vmem:[%s2772_s30 + $0x240] sm:$0xff]  ;;  %s1860_s30 = sshll.u32 %s830_s28, 3 }
  0xe6   : > { %1669 = vmatpush.bf16.msrb.mxu2 %v2299_v19  ;;  %v2238_v19 = vld [vmem:[%s2946_s0 + $0x24] sm:$0xf]  ;;  %s851_s23 = scalar_lea.vmem [#allocation3], %s1860_s30 }
  0xe7   : > { %1683 = vmatpush.bf16.msrb.mxu3 %v2307_v21  ;;  %v1896_v21 = vor.u32 %v2243_v17, %v1895_v16 }
  0xe8   : > { %1642 = vmatpush.bf16.msrb.mxu0 %v2282_v22  ;;  %v1900_v22 = vor.u32 %v2238_v19, %v1897_v20 }
  0xe9   : > { %1656 = vmatpush.bf16.msrb.mxu1 %v2290_v24 }
  0xea   : > { %1670 = vmatpush.bf16.msrb.mxu2 %v2298_v25 }
  0xeb   : > { %1684 = vmatpush.bf16.msrb.mxu3 %v2306_v27 }
  0xec   : > { %1643 = vmatpush.bf16.msrb.mxu0 %v2281_v28 }
  0xed   : > { %1657 = vmatpush.bf16.msrb.mxu1 %v2289_v29 }
  0xee   : > { %1671 = vmatpush.bf16.msrb.mxu2 %v2297_v30 }
  0xef   : > { %1685 = vmatpush.bf16.msrb.mxu3 %v2305_v31 }
  0xf0   : > { %1644 = vmatpush.bf16.msrb.mxu0 %v2280_v32 }
  0xf1   : > { %1658 = vmatpush.bf16.msrb.mxu1 %v2288_v34 }
  0xf2   : > { %1672 = vmatpush.bf16.msrb.mxu2 %v2296_v35 }
  0xf3   : > { %1686 = vmatpush.bf16.msrb.mxu3 %v2304_v36 }
  0xf4   : > { %1645 = vmatpush.bf16.msrb.mxu0 %v2279_v37 }
  0xf5   : > { %1659 = vmatpush.bf16.msrb.mxu1 %v2287_v38 }
  0xf6   : > { %1673 = vmatpush.bf16.msrb.mxu2 %v2295_v39 }
  0xf7   : > { %1687 = vmatpush.bf16.msrb.mxu3 %v2303_v40 }
  0xf8   : > { %1646 = vmatpush.bf16.msrb.mxu0 %v2278_v41 }
  0xf9   : > { %1660 = vmatpush.bf16.msrb.mxu1 %v2286_v42 }
  0xfa   : > { %1674 = vmatpush.bf16.msrb.mxu2 %v2294_v43 }
  0xfb   : > { %1688 = vmatpush.bf16.msrb.mxu3 %v2302_v44 }
  0xfc   : > { %1647 = vmatpush.bf16.msrb.mxu0 %v2277_v45 }
  0xfd   : > { %1661 = vmatpush.bf16.msrb.mxu1 %v2285_v46 }
  0xfe   : > { %1675 = vmatpush.bf16.msrb.mxu2 %v2293_v47 }
  0xff   : > { %1689 = vmatpush.bf16.msrb.mxu3 %v2301_v56  ;;  %1648 = vmatmul.bf16.vlgmr.msrb.gmra.mxu0 %v1880_v57 }
 0x100   : > { %1696 = vmatpush.bf16.msra.mxu0 %v2316_v54  ;;  %1662 = vmatmul.bf16.vlgmr.msrb.gmra.mxu1 %v1884_v61 }
 0x101   : > { %1710 = vmatpush.bf16.msra.mxu1 %v2324_v55  ;;  %1676 = vmatmul.bf16.vlgmr.msrb.gmra.mxu2 %v1888_v60 }
 0x102   : > { %1731 = vmatpush.bf16.msra.mxu2 %v2325_v62  ;;  %1690 = vmatmul.bf16.vlgmr.msrb.gmra.mxu3 %v1892_v63 }
 0x104   : > { %1697 = vmatpush.bf16.msra.mxu0 %v2315_v0 }
 0x105   : > { %1711 = vmatpush.bf16.msra.mxu1 %v2323_v1 }
 0x108   : > { %1698 = vmatpush.bf16.msra.mxu0 %v2314_v2 }
 0x109   : > { %1712 = vmatpush.bf16.msra.mxu1 %v2322_v3 }
 0x10c   : > { %1699 = vmatpush.bf16.msra.mxu0 %v2313_v4 }
 0x10d   : > { %1713 = vmatpush.bf16.msra.mxu1 %v2321_v5 }
 0x110   : > { %1700 = vmatpush.bf16.msra.mxu0 %v2312_v8 }
 0x111   : > { %1714 = vmatpush.bf16.msra.mxu1 %v2320_v9  ;;  %2229 = vmatmul.msk.bf16.vlgmr.msra.gmra.mxu2 %vm1580_vm0, %v1904_v10 }
 0x114   : > { %1701 = vmatpush.bf16.msra.mxu0 %v2311_v11 }
 0x115   : > { %1715 = vmatpush.bf16.msra.mxu1 %v2319_v12 }
 0x118   : > { %1702 = vmatpush.bf16.msra.mxu0 %v2310_v13 }
 0x119   : > { %1716 = vmatpush.bf16.msra.mxu1 %v2318_v14 }
 0x11c   : > { %1703 = vmatpush.bf16.msra.mxu0 %v2309_v15 }
 0x11d   : > { %1717 = vmatpush.bf16.msra.mxu1 %v2317_v18 }
 0x11f   : > { %1704 = vmatmul.bf16.vlgmr.msra.gmra.mxu0 %v1896_v21 }
 0x120   : > { %1718 = vmatmul.bf16.vlgmr.msra.gmra.mxu1 %v1900_v22 }
 0x140   : > { %v1032_v26 = vpop.permute.xlu0 %1031 }
 0x148   : > { %v1037_v34 = vpop.permute.xlu0 %1036 }
 0x15c   : > { %v1593_v23 = vpop.f32.mrf.mxu0 }
 0x15d   : > { %v1607_v24 = vpop.f32.mrf.mxu1  ;;  %v1594_v27 = vadd.f32 %v1593_v23, %v1032_v26 }
 0x15f   : > { %v1608_v32 = vadd.f32 %v1607_v24, %v1594_v27 }
 0x164   : > { %v1621_v25 = vpop.f32.mrf.mxu2  ;;  %v1595_v28 = vpop.f32.mrf.mxu0 }
 0x165   : > { %v1609_v29 = vpop.f32.mrf.mxu1  ;;  %v1635_v30 = vpop.f32.mrf.mxu3  ;;  %v1622_v33 = vadd.f32 %v1621_v25, %v1608_v32  ;;  %v1596_v37 = vadd.f32 %v1595_v28, %v1037_v34 }
 0x167   : > { %v1636_v36 = vadd.f32 %v1635_v30, %v1622_v33  ;;  %v1610_v41 = vadd.f32 %v1609_v29, %v1596_v37 }
 0x16c   : > { %v1623_v31 = vpop.f32.mrf.mxu2 }
 0x16d   : > { %v1637_v39 = vpop.f32.mrf.mxu3  ;;  %v1624_v43 = vadd.f32 %v1623_v31, %v1610_v41 }
 0x16f   : > { %v1638_v49 = vadd.f32 %v1637_v39, %v1624_v43 }
 0x17c   : > { %v1649_v35 = vpop.f32.mrf.mxu0 }
 0x17d   : > { %v1663_v38 = vpop.f32.mrf.mxu1  ;;  %v1650_v42 = vadd.f32 %v1649_v35, %v1636_v36 }
 0x17f   : > { %v1664_v44 = vadd.f32 %v1663_v38, %v1650_v42 }
 0x184   : > { %v1677_v40 = vpop.f32.mrf.mxu2  ;;  %v1651_v45 = vpop.f32.mrf.mxu0 }
 0x185   : > { %v1665_v46 = vpop.f32.mrf.mxu1  ;;  %v1691_v47 = vpop.f32.mrf.mxu3  ;;  %v1678_v50 = vadd.f32 %v1677_v40, %v1664_v44  ;;  %v1652_v51 = vadd.f32 %v1651_v45, %v1638_v49 }
 0x187   : > { %v1692_v52 = vadd.f32 %v1691_v47, %v1678_v50  ;;  %v1666_v54 = vadd.f32 %v1665_v46, %v1652_v51 }
 0x18c   : > { %v1679_v48 = vpop.f32.mrf.mxu2 }
 0x18d   : > { %v1680_v58 = vadd.f32 %v1679_v48, %v1666_v54  ;;  %v1693_v60 = vpop.f32.mrf.mxu3 }
 0x18f   : > { %v1694_v62 = vadd.f32 %v1693_v60, %v1680_v58 }
 0x194   : > { %v1733_v57 = vpop.f32.mrf.mxu2 }
 0x19c   : > { %v1705_v53 = vpop.f32.mrf.mxu0  ;;  %v1735_v5 = vpop.f32.mrf.mxu2 }
 0x19d   : > { %v1706_v55 = vadd.f32 %v1705_v53, %v1692_v52  ;;  %v1719_v56 = vpop.f32.mrf.mxu1 }
 0x19f   : > { %v1720_v59 = vadd.f32 %v1719_v56, %v1706_v55 }
 0x1a1   : > { %v1734_v61 = vadd.f32 %v1733_v57, %v1720_v59 }
 0x1a3   : > { %v1738_v63 = vmax.f32 %v1734_v61, 0.0 }
 0x1a4   : > { %v1707_v0 = vpop.f32.mrf.mxu0 }
 0x1a5   : > { %v1740_v1 = vpack.c.bf16 %v1738_v63, %v1738_v63  ;;  %v1708_v2 = vadd.f32 %v1707_v0, %v1694_v62  ;;  %v1721_v3 = vpop.f32.mrf.mxu1 }
 0x1a7   : > { %1742 = vst [vmem:[%s851_s23] sm:$0xf] %v1740_v1  ;;  %v1722_v4 = vadd.f32 %v1721_v3, %v1708_v2 }
 0x1a9   : > { %v1736_v6 = vadd.f32 %v1735_v5, %v1722_v4 }
 0x1ab   : > { %v1739_v7 = vmax.f32 %v1736_v6, 0.0  ;;  %1750 = sbr.rel (!%p2429_p5) target bundleno = 440 (0x1b8), region = 77 }
 0x1ad   : > { %v1741_v8 = vpack.c.bf16 %v1739_v7, %v1739_v7 }
 0x1ae   : > { %v1769_v9 = vld [vmem:[%s851_s23] sm:$0xf] (%p2429_p5) }
 0x1af   : > { %1743 = vst [vmem:[%s851_s23 + $0x4] sm:$0x3] %v1741_v8 }
 0x1b0   : > { %1770 = vst [vmem:[%s1752_s25] sm:$0xf] %v1769_v9 }
 0x1b6   : > { %v1771_v10 = vld [vmem:[%s851_s23 + $0x4] sm:$0xf] }
 0x1b7   : > { %1772 = vst [vmem:[%s1752_s25 + $0x14] sm:$0xf] %v1771_v10 }
 0x1b8 PF: > { %p10_p10 = scmp.ge.s32.totalorder %s2416_s16, 7   ;;  %s2951_s12 = smov %s2372_s13 }
 0x1b9   : > { %s2952_s13 = smov %s2427_s19  ;;  %s2953_s14 = smov %s2416_s16 }
 0x1ba   :  { %12 = sbr.rel (!%p10_p10) target bundleno = 2 (0x2), region = 149 }

// kernel: ddcd_lam_forward.17
= control target key start
LH: loop header
LB: loop body
LE: loop exit
PB: predicated region body
PF: predicated region fallthrough
CT: control target
= control target key end

     0   :  { %s930_s12 = smov 0   ;;  %s932_s13 = smov 0   ;;  %s1127_s0 = inlined_call_operand.vmem [shape: bf16[12,324], index: 0, kind: input, shape index: {}]   ;;  %s1128_s1 = inlined_call_operand.vmem [shape: bf16[324,640], index: 1, kind: input, shape index: {}]   ;;  %s1129_s2 = inlined_call_operand.vmem [shape: f32[12,1], index: 2, kind: input, shape index: {}]   ;;  %s1130_s3 = inlined_call_operand.vmem [shape: bf16[12,640], index: 3, kind: output, shape index: {}]  }
   0x1   :  { %s934_s14 = smov 0  }
   0x2 LB: > { %s730_s15 = sadd.s32 4294967295, %s907_s14   ;;  %s947_s16 = sadd.s32 1, %s907_s14   ;;  %s907_s14 = sphi %s934_s14, %s1134_s14   ;;  %s903_s13 = sphi %s932_s13, %s1133_s13   ;;  %s899_s12 = sphi %s930_s12, %s1132_s12  }
   0x3   : > { %s38_s17 = ssub.s32 %s907_s14, %s947_s16  ;;  %s41_s18 = sadd.s32 1, %s903_s13 }
   0x4   : > { %p39_p0 = scmp.eq.s32.totalorder %s38_s17, 0  ;;  %p48_p1 = scmp.ne.s32.totalorder %s903_s13, %s899_s12 }
   0x5   : > { %p49_p2 = scmp.eq.s32.totalorder %s907_s14, 0  ;;  %p99_p3 = scmp.eq.s32.totalorder %s730_s15, 4 }
   0x6   : > { %s958_s19 = scalar_select %p39_p0, %s903_s13, %s41_s18  }
   0x7   : > { %p50_p4 = por %p49_p2, %p48_p1  ;;  %p960_p5 = por %p99_p3, %p48_p1 }
   0x8   : > { %p733_p6 = scmp.ge.s32.totalorder %s907_s14, 5 }
   0xa   : > { %127 = sbr.rel (%p733_p6) target bundleno = 61 (0x3d), region = 24 }
   0xf   : > { %130 = sbr.rel (!%p50_p4) target bundleno = 61 (0x3d), region = 28  ;;  %s132_s21 = sand.u32 (%p50_p4), 1, %s903_s13  }
  0x10   : > { %s734_s22 = sshll.u32 (%p50_p4), %s907_s14, 2  ;;  %s857_s23 = smul.u32 (%p50_p4), 164, %s132_s21 }
  0x11   : > { %s970_s26 = scalar_lea.vmem (%p50_p4), %s1128_s1, %s734_s22 }
  0x12   : > { %v153_v0 = vld [vmem:[%s970_s26] sm:$0xf] (%p50_p4)  ;;  %v155_v1 = vld [vmem:[%s970_s26 + $0x14] sm:$0xf] (%p50_p4)  ;;  %v157_v2 = vld [vmem:[%s970_s26 + $0x28] sm:$0xf] (%p50_p4) }
  0x13   : > { %s975_s27 = scalar_lea.vmem (%p50_p4), [#allocation2], %s857_s23  ;;  %v159_v3 = vld [vmem:[%s970_s26 + $0x3c] sm:$0xf] (%p50_p4)  ;;  %v161_v4 = vld [vmem:[%s970_s26 + $0x50] sm:$0xf] (%p50_p4) }
  0x14   : > { %154 = vst [vmem:[%s975_s27] sm:$0xf] %v153_v0  ;;  %v163_v5 = vld [vmem:[%s970_s26 + $0x64] sm:$0xf]  ;;  %v165_v6 = vld [vmem:[%s970_s26 + $0x78] sm:$0xf] }
  0x15   : > { %156 = vst [vmem:[%s975_s27 + $0x4] sm:$0xf] %v155_v1  ;;  %v167_v7 = vld [vmem:[%s970_s26 + $0x8c] sm:$0xf]  ;;  %v169_v8 = vld [vmem:[%s970_s26 + $0xa0] sm:$0xf] }
  0x16   : > { %158 = vst [vmem:[%s975_s27 + $0x8] sm:$0xf] %v157_v2  ;;  %v171_v9 = vld [vmem:[%s970_s26 + $0xb4] sm:$0xf]  ;;  %v173_v10 = vld [vmem:[%s970_s26 + $0xc8] sm:$0xf] }
  0x17   : > { %160 = vst [vmem:[%s975_s27 + $0xc] sm:$0xf] %v159_v3  ;;  %v175_v11 = vld [vmem:[%s970_s26 + $0xdc] sm:$0xf]  ;;  %v177_v12 = vld [vmem:[%s970_s26 + $0xf0] sm:$0xf] }
  0x18   : > { %162 = vst [vmem:[%s975_s27 + $0x10] sm:$0xf] %v161_v4  ;;  %v179_v13 = vld [vmem:[%s970_s26 + $0x104] sm:$0xf]  ;;  %v181_v14 = vld [vmem:[%s970_s26 + $0x118] sm:$0xf] }
  0x19   : > { %164 = vst [vmem:[%s975_s27 + $0x14] sm:$0xf] %v163_v5  ;;  %v183_v15 = vld [vmem:[%s970_s26 + $0x12c] sm:$0xf]  ;;  %v185_v16 = vld [vmem:[%s970_s26 + $0x140] sm:$0xf] }
  0x1a   : > { %166 = vst [vmem:[%s975_s27 + $0x18] sm:$0xf] %v165_v6  ;;  %v187_v17 = vld [vmem:[%s970_s26 + $0x154] sm:$0xf]  ;;  %v189_v18 = vld [vmem:[%s970_s26 + $0x168] sm:$0xf] }
  0x1b   : > { %168 = vst [vmem:[%s975_s27 + $0x1c] sm:$0xf] %v167_v7  ;;  %v191_v19 = vld [vmem:[%s970_s26 + $0x17c] sm:$0xf]  ;;  %v193_v20 = vld [vmem:[%s970_s26 + $0x190] sm:$0xf] }
  0x1c   : > { %170 = vst [vmem:[%s975_s27 + $0x20] sm:$0xf] %v169_v8  ;;  %v195_v21 = vld [vmem:[%s970_s26 + $0x1a4] sm:$0xf]  ;;  %v197_v22 = vld [vmem:[%s970_s26 + $0x1b8] sm:$0xf] }
  0x1d   : > { %172 = vst [vmem:[%s975_s27 + $0x24] sm:$0xf] %v171_v9  ;;  %v199_v23 = vld [vmem:[%s970_s26 + $0x1cc] sm:$0xf]  ;;  %v201_v24 = vld [vmem:[%s970_s26 + $0x1e0] sm:$0xf] }
  0x1e   : > { %174 = vst [vmem:[%s975_s27 + $0x28] sm:$0xf] %v173_v10  ;;  %v203_v25 = vld [vmem:[%s970_s26 + $0x1f4] sm:$0xf]  ;;  %v205_v26 = vld [vmem:[%s970_s26 + $0x208] sm:$0xf] }
  0x1f   : > { %176 = vst [vmem:[%s975_s27 + $0x2c] sm:$0xf] %v175_v11  ;;  %v207_v27 = vld [vmem:[%s970_s26 + $0x21c] sm:$0xf]  ;;  %v209_v28 = vld [vmem:[%s970_s26 + $0x230] sm:$0xf] }
  0x20   : > { %178 = vst [vmem:[%s975_s27 + $0x30] sm:$0xf] %v177_v12  ;;  %v211_v29 = vld [vmem:[%s970_s26 + $0x244] sm:$0xf]  ;;  %v213_v30 = vld [vmem:[%s970_s26 + $0x258] sm:$0xf] }
  0x21   : > { %180 = vst [vmem:[%s975_s27 + $0x34] sm:$0xf] %v179_v13  ;;  %v215_v31 = vld [vmem:[%s970_s26 + $0x26c] sm:$0xf]  ;;  %v217_v32 = vld [vmem:[%s970_s26 + $0x280] sm:$0xf] }
  0x22   : > { %182 = vst [vmem:[%s975_s27 + $0x38] sm:$0xf] %v181_v14  ;;  %v219_v33 = vld [vmem:[%s970_s26 + $0x294] sm:$0xf]  ;;  %v221_v34 = vld [vmem:[%s970_s26 + $0x2a8] sm:$0xf] }
  0x23   : > { %184 = vst [vmem:[%s975_s27 + $0x3c] sm:$0xf] %v183_v15  ;;  %v223_v35 = vld [vmem:[%s970_s26 + $0x2bc] sm:$0xf]  ;;  %v225_v36 = vld [vmem:[%s970_s26 + $0x2d0] sm:$0xf] }
  0x24   : > { %186 = vst [vmem:[%s975_s27 + $0x40] sm:$0xf] %v185_v16  ;;  %v227_v37 = vld [vmem:[%s970_s26 + $0x2e4] sm:$0xf]  ;;  %v229_v38 = vld [vmem:[%s970_s26 + $0x2f8] sm:$0xf] }
  0x25   : > { %188 = vst [vmem:[%s975_s27 + $0x44] sm:$0xf] %v187_v17  ;;  %v231_v39 = vld [vmem:[%s970_s26 + $0x30c] sm:$0xf]  ;;  %v233_v40 = vld [vmem:[%s970_s26 + $0x320] sm:$0xf] }
  0x26   : > { %190 = vst [vmem:[%s975_s27 + $0x48] sm:$0xf] %v189_v18 }
  0x27   : > { %192 = vst [vmem:[%s975_s27 + $0x4c] sm:$0xf] %v191_v19 }
  0x28   : > { %194 = vst [vmem:[%s975_s27 + $0x50] sm:$0xf] %v193_v20 }
  0x29   : > { %196 = vst [vmem:[%s975_s27 + $0x54] sm:$0xf] %v195_v21 }
  0x2a   : > { %198 = vst [vmem:[%s975_s27 + $0x58] sm:$0xf] %v197_v22 }
  0x2b   : > { %200 = vst [vmem:[%s975_s27 + $0x5c] sm:$0xf] %v199_v23 }
  0x2c   : > { %202 = vst [vmem:[%s975_s27 + $0x60] sm:$0xf] %v201_v24 }
  0x2d   : > { %204 = vst [vmem:[%s975_s27 + $0x64] sm:$0xf] %v203_v25 }
  0x2e   : > { %206 = vst [vmem:[%s975_s27 + $0x68] sm:$0xf] %v205_v26 }
  0x2f   : > { %208 = vst [vmem:[%s975_s27 + $0x6c] sm:$0xf] %v207_v27 }
  0x30   : > { %210 = vst [vmem:[%s975_s27 + $0x70] sm:$0xf] %v209_v28 }
  0x31   : > { %212 = vst [vmem:[%s975_s27 + $0x74] sm:$0xf] %v211_v29 }
  0x32   : > { %214 = vst [vmem:[%s975_s27 + $0x78] sm:$0xf] %v213_v30 }
  0x33   : > { %216 = vst [vmem:[%s975_s27 + $0x7c] sm:$0xf] %v215_v31 }
  0x34   : > { %218 = vst [vmem:[%s975_s27 + $0x80] sm:$0xf] %v217_v32 }
  0x35   : > { %220 = vst [vmem:[%s975_s27 + $0x84] sm:$0xf] %v219_v33 }
  0x36   : > { %222 = vst [vmem:[%s975_s27 + $0x88] sm:$0xf] %v221_v34 }
  0x37   : > { %224 = vst [vmem:[%s975_s27 + $0x8c] sm:$0xf] %v223_v35 }
  0x38   : > { %226 = vst [vmem:[%s975_s27 + $0x90] sm:$0xf] %v225_v36 }
  0x39   : > { %228 = vst [vmem:[%s975_s27 + $0x94] sm:$0xf] %v227_v37 }
  0x3a   : > { %230 = vst [vmem:[%s975_s27 + $0x98] sm:$0xf] %v229_v38 }
  0x3b   : > { %232 = vst [vmem:[%s975_s27 + $0x9c] sm:$0xf] %v231_v39 }
  0x3c   : > { %234 = vst [vmem:[%s975_s27 + $0xa0] sm:$0xf] %v233_v40 }
  0x3d PF: > { %p735_p7 = scmp.ge.s32.totalorder %s907_s14, 1  ;;  %p339_p8 = scmp.lt.s32.totalorder %s907_s14, 6 }
  0x3f   : > { %p340_p9 = pnand %p735_p7, %p339_p8 }
  0x40   : > { %s346_s28 = sand.u32 (!%p340_p9), 1, %s899_s12  }
  0x41   : > { %343 = sbr.rel (%p340_p9) target bundleno = 255 (0xff), region = 69  ;;  %s736_s27 = sshll.u32 (!%p340_p9), %s346_s28, 3 }
  0x42   : > { %s858_s29 = smul.u32 (!%p340_p9), 164, %s346_s28 }
  0x44   : > { %s1061_s30 = scalar_lea.vmem (!%p340_p9), [#allocation2], %s858_s29  ;;  %s367_s29 = scalar_lea.vmem (!%p340_p9), [#allocation3], %s736_s27 }
  0x46   : > { %v844_v41 = vld [vmem:[%s1061_s30 + $0x38] sm:$0xff]  ;;  %v413_v43 = vld [vmem:[%s1061_s30 + $0xa0] sm:$0x3]  ;;  %vm568_vm0 = vcmask 1041408   ;;  %v843_v45 = vld [vmem:[%s1061_s30 + $0x30] sm:$0xff]  ;;  %v909_v48 = vmov 0  }
  0x47   : > { %v852_v42 = vld [vmem:[%s1061_s30 + $0x78] sm:$0xff]  ;;  %v522_v44 = vunpack.c.l.b16 %v413_v43  ;;  %572 = vmatpush.bf16.msra.mxu0 %v844_v41  ;;  %v851_v47 = vld [vmem:[%s1061_s30 + $0x70] sm:$0xff]  ;;  %884 = vset.pattern.permute.xlu0 %v909_v48  ;;  %v842_v51 = vld [vmem:[%s1061_s30 + $0x28] sm:$0xff]  ;;  %vm564_vm1 = vcmask 556032   ;;  %s831_s12 = sshll.u32 (%p960_p5), %s730_s15, 2 }
  0x48   : > { %586 = vmatpush.bf16.msra.mxu1 %v852_v42  ;;  %v856_v50 = vld [vmem:[%s1061_s30 + $0x98] sm:$0xff]  ;;  %v850_v52 = vld [vmem:[%s1061_s30 + $0x68] sm:$0xff]  ;;  %v855_v54 = vld [vmem:[%s1061_s30 + $0x90] sm:$0xff]  ;;  %s628_s4 = scalar_lea.vmem (%p960_p5), %s1130_s3, %s831_s12 }
  0x49   : > { %v543_v46 = vpack.c.b16 %v522_v44, %v522_v44  ;;  %v414_v53 = vld [vmem:[%s1129_s2] sm:$0xff]  ;;  %v415_v57 = vld [vmem:[%s1129_s2 + $0x8] sm:$0xf]  ;;  %v839_v63 = vld [vmem:[%s1061_s30 + $0x10] sm:$0xff] }
  0x4a   : > { %418 = vperm.xlu0 %884, %v414_v53   ;;  %v841_v55 = vld [vmem:[%s1061_s30 + $0x20] sm:$0xff]  ;;  %v854_v58 = vld [vmem:[%s1061_s30 + $0x88] sm:$0xff]  ;;  %v840_v59 = vld [vmem:[%s1061_s30 + $0x18] sm:$0xff] }
  0x4b   : > { %v570_v49 = vsel %vm568_vm0, %v543_v46, 0  ;;  %573 = vmatpush.bf16.msra.mxu0 %v843_v45  ;;  %v849_v56 = vld [vmem:[%s1061_s30 + $0x60] sm:$0xff]  ;;  %v848_v60 = vld [vmem:[%s1061_s30 + $0x58] sm:$0xff]  ;;  %v836_v0 = vld [vmem:[%s1127_s0 + $0x10] sm:$0x30] }
  0x4c   : > { %603 = vmatpush.bf16.msra.mxu2 %v570_v49  ;;  %587 = vmatpush.bf16.msra.mxu1 %v851_v47  ;;  %v747_v61 = vld [vmem:[%s1127_s0 + $0x8] sm:$0xf]  ;;  %v847_v1 = vld [vmem:[%s1061_s30 + $0x50] sm:$0xff]  ;;  %v739_v6 = vld [vmem:[%s1127_s0] sm:$0xf] }
  0x4d   : > { %v853_v62 = vld [vmem:[%s1061_s30 + $0x80] sm:$0xff]  ;;  %v748_v2 = vor.u32 %v836_v0, %v747_v61  ;;  %v838_v3 = vld [vmem:[%s1061_s30 + $0x8] sm:$0xff] }
  0x4e   : > { %v846_v4 = vld [vmem:[%s1061_s30 + $0x48] sm:$0xff]  ;;  %v837_v5 = vld [vmem:[%s1061_s30] sm:$0xff] }
  0x4f   : > { %574 = vmatpush.bf16.msra.mxu0 %v842_v51  ;;  %v835_v7 = vld [vmem:[%s1127_s0 + $0x8] sm:$0x30]  ;;  %v845_v8 = vld [vmem:[%s1061_s30 + $0x40] sm:$0xff]  ;;  %v741_v10 = vld [vmem:[%s1127_s0 + $0xc] sm:$0x30] }
  0x50   : > { %604 = vmatpush.bf16.msra.mxu2 %v856_v50  ;;  %588 = vmatpush.bf16.msra.mxu1 %v850_v52  ;;  %v834_v9 = vld [vmem:[%s1127_s0 + $0x4] sm:$0xf]  ;;  %v740_v11 = vor.u32 %v835_v7, %v739_v6 }
  0x51   : > { %v744_v12 = vor.u32 %v834_v9, %v741_v10 }
  0x52   : > { %423 = vperm.xlu0 %884, %v415_v57  }
  0x53   : > { %575 = vmatpush.bf16.msra.mxu0 %v841_v55 }
  0x54   : > { %605 = vmatpush.bf16.msra.mxu2 %v855_v54  ;;  %589 = vmatpush.bf16.msra.mxu1 %v849_v56 }
  0x57   : > { %576 = vmatpush.bf16.msra.mxu0 %v840_v59 }
  0x58   : > { %606 = vmatpush.bf16.msra.mxu2 %v854_v58  ;;  %590 = vmatpush.bf16.msra.mxu1 %v848_v60 }
  0x5b   : > { %577 = vmatpush.bf16.msra.mxu0 %v839_v63 }
  0x5c   : > { %607 = vmatpush.bf16.msra.mxu2 %v853_v62  ;;  %591 = vmatpush.bf16.msra.mxu1 %v847_v1 }
  0x5f   : > { %829 = vmatmul.msk.bf16.vlgmr.msra.gmra.mxu2 %vm564_vm1, %v748_v2  ;;  %578 = vmatpush.bf16.msra.mxu0 %v838_v3 }
  0x60   : > { %592 = vmatpush.bf16.msra.mxu1 %v846_v4 }
  0x63   : > { %579 = vmatpush.bf16.msra.mxu0 %v837_v5 }
  0x64   : > { %593 = vmatpush.bf16.msra.mxu1 %v845_v8 }
  0x66   : > { %580 = vmatmul.bf16.vlgmr.msra.gmra.mxu0 %v740_v11 }
  0x67   : > { %594 = vmatmul.bf16.vlgmr.msra.gmra.mxu1 %v744_v12 }
  0xbc   : > { %v419_v13 = vpop.permute.xlu0 %418 }
  0xc4   : > { %v424_v21 = vpop.permute.xlu0 %423 }
  0xe2   : > { %v609_v17 = vpop.f32.mrf.mxu2 }
  0xe3   : > { %v581_v14 = vpop.f32.mrf.mxu0 }
  0xe4   : > { %v582_v15 = vadd.f32 %v581_v14, %v419_v13  ;;  %v595_v16 = vpop.f32.mrf.mxu1 }
  0xe6   : > { %v596_v18 = vadd.f32 %v595_v16, %v582_v15 }
  0xe8   : > { %v610_v19 = vadd.f32 %v609_v17, %v596_v18 }
  0xea   : > { %v614_v20 = vmax.f32 %v610_v19, 0.0  ;;  %v611_v27 = vpop.f32.mrf.mxu2 }
  0xeb   : > { %v583_v22 = vpop.f32.mrf.mxu0 }
  0xec   : > { %v616_v23 = vpack.c.bf16 %v614_v20, %v614_v20  ;;  %v584_v24 = vadd.f32 %v583_v22, %v424_v21  ;;  %v597_v25 = vpop.f32.mrf.mxu1 }
  0xee   : > { %618 = vst [vmem:[%s367_s29] sm:$0xf] %v616_v23  ;;  %v598_v26 = vadd.f32 %v597_v25, %v584_v24 }
  0xf0   : > { %v612_v28 = vadd.f32 %v611_v27, %v598_v26 }
  0xf2   : > { %v615_v29 = vmax.f32 %v612_v28, 0.0  ;;  %626 = sbr.rel (!%p960_p5) target bundleno = 255 (0xff), region = 77 }
  0xf4   : > { %v617_v30 = vpack.c.bf16 %v615_v29, %v615_v29 }
  0xf5   : > { %v645_v31 = vld [vmem:[%s367_s29] sm:$0xf] (%p960_p5) }
  0xf6   : > { %619 = vst [vmem:[%s367_s29 + $0x4] sm:$0x3] %v617_v30 }
  0xf7   : > { %646 = vst [vmem:[%s628_s4] sm:$0xf] %v645_v31 }
  0xfd   : > { %v647_v32 = vld [vmem:[%s367_s29 + $0x4] sm:$0xf] }
  0xfe   : > { %648 = vst [vmem:[%s628_s4 + $0x14] sm:$0xf] %v647_v32 }
  0xff PF: > { %p10_p10 = scmp.ge.s32.totalorder %s947_s16, 7   ;;  %s1132_s12 = smov %s903_s13 }
 0x100   : > { %s1133_s13 = smov %s958_s19  ;;  %s1134_s14 = smov %s947_s16 }
 0x101   :  { %12 = sbr.rel (!%p10_p10) target bundleno = 2 (0x2), region = 149 }

// kernel: ddcd_lam_forward.18
= control target key start
LH: loop header
LB: loop body
LE: loop exit
PB: predicated region body
PF: predicated region fallthrough
CT: control target
= control target key end

     0   :  { %vm332_vm0 = vcmask 1043456   ;;  %v654_v7 = vmov 0   ;;  %vm319_vm1 = vcmask 850944   ;;  %s859_s1 = inlined_call_operand.vmem [shape: bf16[360,128], index: 1, kind: input, shape index: {}]   ;;  %s860_s2 = inlined_call_operand.vmem [shape: f32[60,1], index: 2, kind: input, shape index: {}]   ;;  %s861_s0 = inlined_call_operand.vmem [shape: bf16[60,360], index: 0, kind: input, shape index: {}]   ;;  %s862_s3 = inlined_call_operand.vmem [shape: bf16[60,128], index: 3, kind: output, shape index: {}]  }
   0x1   :  { %v610_v0 = vld [vmem:[%s859_s1 + $0x38] sm:$0xff]  ;;  %v75_v2 = vld [vmem:[%s859_s1 + $0xb0] sm:$0xf]  ;;  %651 = vset.pattern.permute.xlu0 %v654_v7  ;;  %652 = vset.pattern.permute.xlu1 %v654_v7  ;;  %v624_v9 = vld [vmem:[%s859_s1 + $0xa8] sm:$0xff] }
   0x2   :  { %v618_v1 = vld [vmem:[%s859_s1 + $0x78] sm:$0xff]  ;;  %v273_v3 = vunpack.c.l.b16 %v75_v2  ;;  %336 = vmatpush.bf16.msra.mxu0 %v610_v0  ;;  %642 = vmatpush.bf16.msra.mxu3 %v610_v0  ;;  %v609_v4 = vld [vmem:[%s859_s1 + $0x30] sm:$0xff]  ;;  %v608_v10 = vld [vmem:[%s859_s1 + $0x28] sm:$0xff] }
   0x3   :  { %365 = vmatpush.bf16.msra.mxu1 %v618_v1  ;;  %v617_v6 = vld [vmem:[%s859_s1 + $0x70] sm:$0xff]  ;;  %653 = vset.pattern.permute.xlu2 %v654_v7  ;;  %v616_v11 = vld [vmem:[%s859_s1 + $0x68] sm:$0xff]  ;;  %v623_v12 = vld [vmem:[%s859_s1 + $0xa0] sm:$0xff] }
   0x4   :  { %v296_v5 = vpack.c.b16 %v273_v3, %v273_v3  ;;  %v607_v13 = vld [vmem:[%s859_s1 + $0x20] sm:$0xff]  ;;  %v622_v16 = vld [vmem:[%s859_s1 + $0x98] sm:$0xff]  ;;  %v621_v19 = vld [vmem:[%s859_s1 + $0x90] sm:$0xff] }
   0x5   :  { %v76_v14 = vld [vmem:[%s860_s2] sm:$0xff]  ;;  %v606_v17 = vld [vmem:[%s859_s1 + $0x18] sm:$0xff]  ;;  %v605_v20 = vld [vmem:[%s859_s1 + $0x10] sm:$0xff] }
   0x6   :  { %v334_v8 = vsel %vm332_vm0, %v296_v5, 0  ;;  %337 = vmatpush.bf16.msra.mxu0 %v609_v4  ;;  %643 = vmatpush.bf16.msra.mxu3 %v609_v4  ;;  %v615_v15 = vld [vmem:[%s859_s1 + $0x60] sm:$0xff]  ;;  %v614_v18 = vld [vmem:[%s859_s1 + $0x58] sm:$0xff]  ;;  %v77_v21 = vld [vmem:[%s860_s2 + $0x8] sm:$0xff] }
   0x7   :  { %395 = vmatpush.bf16.msra.mxu2 %v334_v8  ;;  %366 = vmatpush.bf16.msra.mxu1 %v617_v6  ;;  %v78_v22 = vld [vmem:[%s860_s2 + $0x10] sm:$0xff]  ;;  %v620_v24 = vld [vmem:[%s859_s1 + $0x88] sm:$0xff]  ;;  %v619_v27 = vld [vmem:[%s859_s1 + $0x80] sm:$0xff] }
   0x8   :  { %86 = vperm.xlu0 %651, %v76_v14   ;;  %v613_v23 = vld [vmem:[%s859_s1 + $0x50] sm:$0xff]  ;;  %96 = vperm.xlu1 %652, %v78_v22   ;;  %v604_v25 = vld [vmem:[%s859_s1 + $0x8] sm:$0xff]  ;;  %v603_v28 = vld [vmem:[%s859_s1] sm:$0xff] }
   0x9   :  { %v612_v26 = vld [vmem:[%s859_s1 + $0x48] sm:$0xff]  ;;  %v611_v29 = vld [vmem:[%s859_s1 + $0x40] sm:$0xff]  ;;  %v593_v31 = vld [vmem:[%s861_s0 + $0x10] sm:$0xf0] }
   0xa   :  { %338 = vmatpush.bf16.msra.mxu0 %v608_v10  ;;  %644 = vmatpush.bf16.msra.mxu3 %v608_v10  ;;  %v461_v30 = vld [vmem:[%s861_s0 + $0x8] sm:$0xf]  ;;  %v79_v32 = vld [vmem:[%s860_s2 + $0x18] sm:$0xff]  ;;  %v453_v33 = vld [vmem:[%s861_s0] sm:$0xf] }
   0xb   :  { %396 = vmatpush.bf16.msra.mxu2 %v624_v9  ;;  %367 = vmatpush.bf16.msra.mxu1 %v616_v11  ;;  %v592_v34 = vld [vmem:[%s861_s0 + $0x8] sm:$0xf0]  ;;  %v465_v35 = vld [vmem:[%s861_s0 + $0x18] sm:$0xf]  ;;  %v595_v36 = vld [vmem:[%s861_s0 + $0x20] sm:$0xf0]  ;;  %v462_v39 = vor.u32 %v593_v31, %v461_v30 }
   0xc   :  { %v591_v37 = vld [vmem:[%s861_s0 + $0x4] sm:$0xf]  ;;  %v455_v38 = vld [vmem:[%s861_s0 + $0xc] sm:$0xf0]  ;;  %v454_v40 = vor.u32 %v592_v34, %v453_v33  ;;  %v466_v41 = vor.u32 %v595_v36, %v465_v35  ;;  %v473_v43 = vld [vmem:[%s861_s0 + $0x20] sm:$0xf] }
   0xd   :  { %v458_v42 = vor.u32 %v591_v37, %v455_v38  ;;  %v596_v44 = vld [vmem:[%s861_s0 + $0x28] sm:$0xf0]  ;;  %v477_v45 = vld [vmem:[%s861_s0 + $0x30] sm:$0xf]  ;;  %v598_v46 = vld [vmem:[%s861_s0 + $0x38] sm:$0xf0] }
   0xe   :  { %339 = vmatpush.bf16.msra.mxu0 %v607_v13  ;;  %645 = vmatpush.bf16.msra.mxu3 %v607_v13  ;;  %v594_v47 = vld [vmem:[%s861_s0 + $0x1c] sm:$0xf]  ;;  %v467_v48 = vld [vmem:[%s861_s0 + $0x24] sm:$0xf0]  ;;  %v474_v49 = vor.u32 %v596_v44, %v473_v43  ;;  %v478_v50 = vor.u32 %v598_v46, %v477_v45  ;;  %v83_v52 = vld [vmem:[%s860_s2 + $0x38] sm:$0xf] }
   0xf   :  { %397 = vmatpush.bf16.msra.mxu2 %v623_v12  ;;  %368 = vmatpush.bf16.msra.mxu1 %v615_v15  ;;  %v470_v51 = vor.u32 %v594_v47, %v467_v48  ;;  %v82_v53 = vld [vmem:[%s860_s2 + $0x30] sm:$0xff]  ;;  %v80_v54 = vld [vmem:[%s860_s2 + $0x20] sm:$0xff]  ;;  %v81_v55 = vld [vmem:[%s860_s2 + $0x28] sm:$0xff] }
  0x10   :  { %91 = vperm.xlu0 %651, %v77_v21   ;;  %101 = vperm.xlu1 %652, %v79_v32   ;;  %v485_v56 = vld [vmem:[%s861_s0 + $0x38] sm:$0xf]  ;;  %v599_v57 = vld [vmem:[%s861_s0 + $0x40] sm:$0xf0]  ;;  %v489_v58 = vld [vmem:[%s861_s0 + $0x48] sm:$0xf] }
  0x11   :  { %106 = vperm.xlu2 %653, %v80_v54   ;;  %v601_v59 = vld [vmem:[%s861_s0 + $0x50] sm:$0x30]  ;;  %v479_v61 = vld [vmem:[%s861_s0 + $0x3c] sm:$0xf0]  ;;  %v486_v62 = vor.u32 %v599_v57, %v485_v56  ;;  %v497_v1 = vld [vmem:[%s861_s0 + $0x50] sm:$0xf] }
  0x12   :  { %340 = vmatpush.bf16.msra.mxu0 %v606_v17  ;;  %646 = vmatpush.bf16.msra.mxu3 %v606_v17  ;;  %v597_v60 = vld [vmem:[%s861_s0 + $0x34] sm:$0xf]  ;;  %v490_v63 = vor.u32 %v601_v59, %v489_v58  ;;  %v602_v2 = vld [vmem:[%s861_s0 + $0x58] sm:$0x30]  ;;  %v600_v3 = vld [vmem:[%s861_s0 + $0x4c] sm:$0xf] }
  0x13   :  { %398 = vmatpush.bf16.msra.mxu2 %v622_v16  ;;  %369 = vmatpush.bf16.msra.mxu1 %v614_v18  ;;  %v482_v0 = vor.u32 %v597_v60, %v479_v61  ;;  %v491_v4 = vld [vmem:[%s861_s0 + $0x54] sm:$0x30]  ;;  %v498_v5 = vor.u32 %v602_v2, %v497_v1 }
  0x14   :  { %v494_v6 = vor.u32 %v600_v3, %v491_v4 }
  0x16   :  { %341 = vmatpush.bf16.msra.mxu0 %v605_v20  ;;  %647 = vmatpush.bf16.msra.mxu3 %v605_v20 }
  0x17   :  { %399 = vmatpush.bf16.msra.mxu2 %v621_v19  ;;  %370 = vmatpush.bf16.msra.mxu1 %v613_v23 }
  0x18   :  { %121 = vperm.xlu1 %652, %v83_v52   ;;  %116 = vperm.xlu0 %651, %v82_v53  }
  0x19   :  { %111 = vperm.xlu2 %653, %v81_v55  }
  0x1a   :  { %342 = vmatpush.bf16.msra.mxu0 %v604_v25  ;;  %648 = vmatpush.bf16.msra.mxu3 %v604_v25 }
  0x1b   :  { %400 = vmatpush.bf16.msra.mxu2 %v620_v24  ;;  %371 = vmatpush.bf16.msra.mxu1 %v612_v26 }
  0x1e   :  { %343 = vmatpush.bf16.msra.mxu0 %v603_v28  ;;  %649 = vmatpush.bf16.msra.mxu3 %v603_v28 }
  0x1f   :  { %401 = vmatpush.bf16.msra.mxu2 %v619_v27  ;;  %372 = vmatpush.bf16.msra.mxu1 %v611_v29 }
  0x21   :  { %344 = vmatmul.bf16.vlgmr.msra.gmra.mxu0 %v454_v40  ;;  %349 = vmatmul.bf16.vlgmr.msra.gmra.mxu3 %v466_v41 }
  0x22   :  { %587 = vmatmul.msk.bf16.vlgmr.msra.gmra.mxu2 %vm319_vm1, %v462_v39  ;;  %373 = vmatmul.bf16.vlgmr.msra.gmra.mxu1 %v458_v42 }
  0x31   :  { %354 = vmatmul.bf16.gmra.mxu3 %v478_v50 }
  0x32   :  { %588 = vmatmul.msk.bf16.gmra.mxu2 %vm319_vm1, %v474_v49  ;;  %378 = vmatmul.bf16.gmra.mxu1 %v470_v51 }
  0x41   :  { %359 = vmatmul.bf16.gmra.mxu3 %v490_v63 }
  0x42   :  { %589 = vmatmul.msk.bf16.gmra.mxu2 %vm319_vm1, %v486_v62  ;;  %383 = vmatmul.bf16.gmra.mxu1 %v482_v0 }
  0x52   :  { %590 = vmatmul.msk.bf16.gmra.mxu2 %vm319_vm1, %v498_v5  ;;  %388 = vmatmul.bf16.gmra.mxu1 %v494_v6 }
  0x6b   :  { %v107_v37 = vpop.permute.xlu2 %106 }
  0x73   :  { %v112_v47 = vpop.permute.xlu2 %111 }
  0x7a   :  { %v87_v7 = vpop.permute.xlu0 %86  ;;  %v97_v20 = vpop.permute.xlu1 %96 }
  0x82   :  { %v92_v12 = vpop.permute.xlu0 %91  ;;  %v102_v30 = vpop.permute.xlu1 %101 }
  0x8a   :  { %v117_v56 = vpop.permute.xlu0 %116  ;;  %v122_v3 = vpop.permute.xlu1 %121 }
  0x9e   :  { %v345_v8 = vpop.f32.mrf.mxu0 }
  0x9f   :  { %v374_v9 = vpop.f32.mrf.mxu1  ;;  %v346_v10 = vadd.f32 %v345_v8, %v87_v7 }
  0xa1   :  { %v375_v15 = vadd.f32 %v374_v9, %v346_v10 }
  0xa4   :  { %v350_v13 = vpop.f32.mrf.mxu3 }
  0xa5   :  { %v403_v11 = vpop.f32.mrf.mxu2  ;;  %v351_v28 = vadd.f32 %v350_v13, %v97_v20 }
  0xa6   :  { %v347_v14 = vpop.f32.mrf.mxu0  ;;  %v404_v18 = vadd.f32 %v403_v11, %v375_v15 }
  0xa7   :  { %v348_v16 = vadd.f32 %v347_v14, %v92_v12  ;;  %v376_v17 = vpop.f32.mrf.mxu1 }
  0xa8   :  { %v423_v24 = vmax.f32 %v404_v18, 0.0 }
  0xa9   :  { %v377_v19 = vadd.f32 %v376_v17, %v348_v16 }
  0xac   :  { %v352_v23 = vpop.f32.mrf.mxu3 }
  0xad   :  { %v405_v21 = vpop.f32.mrf.mxu2  ;;  %v353_v34 = vadd.f32 %v352_v23, %v102_v30 }
  0xae   :  { %v406_v22 = vadd.f32 %v405_v21, %v377_v19 }
  0xaf   :  { %v379_v26 = vpop.f32.mrf.mxu1 }
  0xb0   :  { %v424_v25 = vmax.f32 %v406_v22, 0.0  ;;  %v380_v31 = vadd.f32 %v379_v26, %v351_v28 }
  0xb2   :  { %v628_v27 = vpack.c.bf16 %v424_v25, %v423_v24 }
  0xb4   :  { %629 = vst [vmem:[%s862_s3] sm:$0xff] %v628_v27   ;;  %v355_v33 = vpop.f32.mrf.mxu3 }
  0xb5   :  { %v408_v29 = vpop.f32.mrf.mxu2  ;;  %v356_v45 = vadd.f32 %v355_v33, %v107_v37 }
  0xb6   :  { %v409_v35 = vadd.f32 %v408_v29, %v380_v31 }
  0xb7   :  { %v381_v32 = vpop.f32.mrf.mxu1 }
  0xb8   :  { %v382_v36 = vadd.f32 %v381_v32, %v353_v34  ;;  %v425_v40 = vmax.f32 %v409_v35, 0.0 }
  0xbc   :  { %v357_v44 = vpop.f32.mrf.mxu3 }
  0xbd   :  { %v410_v38 = vpop.f32.mrf.mxu2  ;;  %v358_v50 = vadd.f32 %v357_v44, %v112_v47 }
  0xbe   :  { %v411_v39 = vadd.f32 %v410_v38, %v382_v36 }
  0xbf   :  { %v384_v42 = vpop.f32.mrf.mxu1 }
  0xc0   :  { %v426_v41 = vmax.f32 %v411_v39, 0.0  ;;  %v385_v48 = vadd.f32 %v384_v42, %v356_v45 }
  0xc2   :  { %v633_v43 = vpack.c.bf16 %v426_v41, %v425_v40 }
  0xc4   :  { %640 = vst [vmem:[%s862_s3 + $0x8] sm:$0xff] %v633_v43   ;;  %v360_v53 = vpop.f32.mrf.mxu3 }
  0xc5   :  { %v413_v46 = vpop.f32.mrf.mxu2  ;;  %v361_v60 = vadd.f32 %v360_v53, %v117_v56 }
  0xc6   :  { %v414_v51 = vadd.f32 %v413_v46, %v385_v48 }
  0xc7   :  { %v386_v49 = vpop.f32.mrf.mxu1 }
  0xc8   :  { %v387_v52 = vadd.f32 %v386_v49, %v358_v50  ;;  %v427_v57 = vmax.f32 %v414_v51, 0.0 }
  0xcc   :  { %v362_v1 = vpop.f32.mrf.mxu3 }
  0xcd   :  { %v415_v54 = vpop.f32.mrf.mxu2  ;;  %v363_v5 = vadd.f32 %v362_v1, %v122_v3 }
  0xce   :  { %v416_v55 = vadd.f32 %v415_v54, %v387_v52 }
  0xcf   :  { %v389_v59 = vpop.f32.mrf.mxu1 }
  0xd0   :  { %v428_v58 = vmax.f32 %v416_v55, 0.0  ;;  %v390_v62 = vadd.f32 %v389_v59, %v361_v60 }
  0xd2   :  { %v638_v61 = vpack.c.bf16 %v428_v58, %v427_v57 }
  0xd4   :  { %641 = vst [vmem:[%s862_s3 + $0x10] sm:$0xff] %v638_v61  }
  0xd5   :  { %v418_v63 = vpop.f32.mrf.mxu2 }
  0xd6   :  { %v419_v0 = vadd.f32 %v418_v63, %v390_v62 }
  0xd7   :  { %v391_v4 = vpop.f32.mrf.mxu1 }
  0xd8   :  { %v429_v2 = vmax.f32 %v419_v0, 0.0  ;;  %v392_v7 = vadd.f32 %v391_v4, %v363_v5 }
  0xda   :  { %v437_v6 = vpack.c.bf16 %v429_v2, %v429_v2 }
  0xdc   :  { %445 = vst [vmem:[%s862_s3 + $0x18] sm:$0xf] %v437_v6 }
  0xdd   :  { %v420_v8 = vpop.f32.mrf.mxu2 }
  0xde   :  { %v421_v9 = vadd.f32 %v420_v8, %v392_v7 }
  0xe0   :  { %v430_v10 = vmax.f32 %v421_v9, 0.0 }
  0xe2   :  { %v438_v11 = vpack.c.bf16 %v430_v10, %v430_v10 }
  0xe4   :  { %446 = vst [vmem:[%s862_s3 + $0x1c] sm:$0x3] %v438_v11 }

// kernel: ddcd_lam_forward.19
= control target key start
LH: loop header
LB: loop body
LE: loop exit
PB: predicated region body
PF: predicated region fallthrough
CT: control target
= control target key end

     0   :  { %vm43_vm0 = vcmask 1043456   ;;  %v89_v2 = vmov 0   ;;  %vm36_vm1 = vcmask 490496   ;;  %s152_s1 = inlined_call_operand.vmem [shape: f32[60,128], index: 1, kind: input, shape index: {}]   ;;  %s153_s2 = inlined_call_operand.vmem [shape: f32[9,1], index: 2, kind: input, shape index: {}]   ;;  %s154_s0 = inlined_call_operand.vmem [shape: f32[9,60], index: 0, kind: input, shape index: {}]   ;;  %s155_s3 = inlined_call_operand.vmem [shape: f32[9,128], index: 3, kind: output, shape index: {}]  }
   0x1   :  { %v23_v0 = vld [vmem:[%s152_s1 + $0x38] sm:$0xf]  ;;  %v22_v1 = vld [vmem:[%s152_s1 + $0x30] sm:$0xff]  ;;  %88 = vset.pattern.permute.xlu0 %v89_v2  ;;  %v24_v3 = vld [vmem:[%s153_s2] sm:$0xff] }
   0x2   :  { %76 = vmatpush.msk.msra.mxu0 %vm43_vm0, %v23_v0  ;;  %79 = vmatpush.msk.msra.mxu1 %vm43_vm0, %v23_v0  ;;  %v21_v4 = vld [vmem:[%s152_s1 + $0x28] sm:$0xff]  ;;  %v20_v5 = vld [vmem:[%s152_s1 + $0x20] sm:$0xff]  ;;  %v19_v6 = vld [vmem:[%s152_s1 + $0x18] sm:$0xff] }
   0x3   :  { %28 = vperm.xlu0 %88, %v24_v3   ;;  %v25_v7 = vld [vmem:[%s153_s2 + $0x8] sm:$0x1]  ;;  %v18_v8 = vld [vmem:[%s152_s1 + $0x10] sm:$0xff]  ;;  %v16_v10 = vld [vmem:[%s152_s1] sm:$0xff] }
   0x4   :  { %56 = vmatpush.msra.mxu0 %v22_v1  ;;  %80 = vmatpush.msra.mxu1 %v22_v1  ;;  %v17_v9 = vld [vmem:[%s152_s1 + $0x8] sm:$0xff]  ;;  %v14_v11 = vld [vmem:[%s154_s0] sm:$0xff] }
   0x5   :  { %v15_v12 = vld [vmem:[%s154_s0 + $0x8] sm:$0x1] }
   0x6   :  { %57 = vmatpush.msra.mxu0 %v21_v4  ;;  %81 = vmatpush.msra.mxu1 %v21_v4 }
   0x8   :  { %58 = vmatpush.msra.mxu0 %v20_v5  ;;  %82 = vmatpush.msra.mxu1 %v20_v5 }
   0xa   :  { %59 = vmatpush.msra.mxu0 %v19_v6  ;;  %83 = vmatpush.msra.mxu1 %v19_v6 }
   0xb   :  { %33 = vperm.xlu0 %88, %v25_v7  }
   0xc   :  { %60 = vmatpush.msra.mxu0 %v18_v8  ;;  %84 = vmatpush.msra.mxu1 %v18_v8 }
   0xe   :  { %61 = vmatpush.msra.mxu0 %v17_v9  ;;  %85 = vmatpush.msra.mxu1 %v17_v9 }
  0x10   :  { %62 = vmatpush.msra.mxu0 %v16_v10  ;;  %86 = vmatpush.msra.mxu1 %v16_v10 }
  0x11   :  { %77 = vmatmul.msk.f32.vlgmr.msra.gmra.mxu0 %vm36_vm1, %v14_v11  ;;  %78 = vmatmul.msk.f32.vlgmr.msra.gmra.mxu1 %vm36_vm1, %v15_v12 }
  0x75   :  { %v29_v13 = vpop.permute.xlu0 %28 }
  0x7d   :  { %v34_v14 = vpop.permute.xlu0 %33 }
  0x8e   :  { %v64_v15 = vpop.f32.mrf.mxu0  ;;  %v67_v16 = vpop.f32.mrf.mxu1 }
  0x8f   :  { %v65_v17 = vadd.f32 %v64_v15, %v29_v13  ;;  %v68_v18 = vadd.f32 %v67_v16, %v34_v14 }
  0x91   :  { %70 = vst [vmem:[%s155_s3] sm:$0xff] %v65_v17 }
  0x92   :  { %71 = vst [vmem:[%s155_s3 + $0x8] sm:$0x1] %v68_v18 }

</bundles_post_ra>
